<compile_context>
chip_gen: v7x
topology: tpu7x:2x2x1
jax: 0.10.0
libtpu: 0.0.40
codegen_flags: <defaults>
</compile_context>

<pallas_src>
import functools

import jax
import jax.numpy as jnp
from jax import lax
from jax.experimental import pallas as pl
from jax.experimental.pallas import tpu as pltpu

EPS = 1e-5  # torch.nn.GroupNorm default eps
GROUPS = 8


# ---------------------------------------------------------------------------
# In-kernel helpers
# ---------------------------------------------------------------------------
def _elu(x):
    # torch.nn.ELU (alpha=1.0); clamp exp argument so the unselected branch
    # never produces inf for large positive x.
    return jnp.where(x > 0, x, jnp.exp(jnp.minimum(x, 0.0)) - 1.0)


def _gn_elu(y, b, gamma, beta, gavg, n, p):
    """GroupNorm(8, C) + affine + ELU for n samples stacked along rows.

    y:     (n*p, C) conv output WITHOUT bias (bias folded in analytically).
    b, gamma, beta: (1, C).
    gavg:  (C, C) group-averaging matrix (1/(C/G) where channels share a group).
    Returns (n*p, C).
    """
    C = y.shape[-1]
    inv_p = 1.0 / float(p)

    # Per-sample, per-channel raw moments of y over the spatial positions.
    m1s, m2s = [], []
    for i in range(n):
        yi = y[i * p:(i + 1) * p]
        m1s.append(jnp.sum(yi, axis=0, keepdims=True) * inv_p)
        m2s.append(jnp.sum(yi * yi, axis=0, keepdims=True) * inv_p)
    e1 = jnp.concatenate(m1s, axis=0)                   # (n, C)  E[y]
    e2 = jnp.concatenate(m2s, axis=0)                   # (n, C)  E[y^2]

    # Fold the conv bias into the moments of (y + b) analytically.
    m1 = e1 + b                                         # E[y + b]
    m2 = e2 + 2.0 * b * e1 + b * b                      # E[(y + b)^2]

    # One (2n, C) x (C, C) matmul averages both moments within each group.
    g = jnp.dot(jnp.concatenate([m1, m2], axis=0), gavg,
                preferred_element_type=jnp.float32)     # (2n, C)
    mean = g[:n]                                        # (n, C) group mean
    var = jnp.maximum(g[n:] - mean * mean, 0.0)         # biased var (torch GN)

    # Fused per-channel scale/shift; bias never materialized on (p, C).
    scale = gamma * lax.rsqrt(var + EPS)                # (n, C)
    shift = (b - mean) * scale + beta                   # (n, C)

    outs = []
    for i in range(n):
        yi = y[i * p:(i + 1) * p]
        outs.append(_elu(yi * scale[i:i + 1] + shift[i:i + 1]))
    return jnp.concatenate(outs, axis=0)                # (n*p, C)


# ---------------------------------------------------------------------------
# Fused kernel: down_conv(2x2/s2) + GN + ELU -> nConvs x (3x3 conv + GN + ELU)
#               -> residual add + ELU            (both samples in one step)
# ---------------------------------------------------------------------------
def _fused_kernel(xp_ref, dw_ref, dp_ref, cw_ref, cp_ref, gavg_ref,
                  o_ref, pad_ref, *, n, n_convs, ho, wo):
    C = gavg_ref.shape[0]
    p = ho * wo
    gavg = gavg_ref[...]

    # ---- down_conv (2x2 stride 2) as one (N*P, 4Cin) x (4Cin, C) matmul ----
    y0 = jnp.dot(xp_ref[...], dw_ref[...], preferred_element_type=jnp.float32)
    dprm = dp_ref[...]                                  # (3, C): bias, gamma, beta
    down = _gn_elu(y0, dprm[0:1], dprm[1:2], dprm[2:3], gavg, n, p)

    # do1 = passthrough (dropout=False)
    out = down

    # ---- nConvs x LUConv2d: 3x3 "same" conv + GN + ELU ----
    # Persistent zero-bordered padded-image scratch: border zeroed once, only
    # the interior is re-stored each iteration.
    pad_ref[...] = jnp.zeros_like(pad_ref)
    for j in range(n_convs):                            # static unroll
        pad_ref[:, 1:1 + ho, 1:1 + wo, :] = out.reshape(n, ho, wo, C)
        pj = cp_ref[j]                                  # (3, C)
        acc = None
        for kh in range(3):
            for kw in range(3):
                tap = pad_ref[:, kh:kh + ho, kw:kw + wo, :].reshape(n * p, C)
                contrib = jnp.dot(tap, cw_ref[j, kh * 3 + kw],
                                  preferred_element_type=jnp.float32)
                acc = contrib if acc is None else acc + contrib
        out = _gn_elu(acc, pj[0:1], pj[1:2], pj[2:3], gavg, n, p)

    # ---- residual add + ELU, stored lane-dense as (N, Ho, Wo*C) ----
    res = (out + down).reshape(n, ho, wo, C)
    cols = [lax.slice(res, (0, 0, w, 0), (n, ho, w + 1, C)).reshape(n, ho, C)
            for w in range(wo)]
    dense = jnp.concatenate(cols, axis=-1)              # (n, ho, wo*C) = (2,8,128)
    o_ref[...] = _elu(dense)                            # full 128-lane stores


# ---------------------------------------------------------------------------
# Parameter setup + full forward
# ---------------------------------------------------------------------------
def _group_avg_matrix(C, G):
    cg = C // G
    c = jnp.arange(C)
    same = (c[:, None] // cg) == (c[None, :] // cg)
    return same.astype(jnp.float32) / float(cg)


def init_params(key, in_chans, out_chans, n_convs):
    ks = jax.random.split(key, 2 + 2 * n_convs)
    params = {
        # down_conv weights stored directly in HWIO: (2, 2, Cin, Cout)
        "down_w": 0.1 * jax.random.normal(ks[0], (2, 2, in_chans, out_chans),
                                          jnp.float32),
        "down_b": 0.05 * jax.random.normal(ks[1], (out_chans,), jnp.float32),
        "down_gamma": jnp.ones((out_chans,), jnp.float32),
        "down_beta": jnp.zeros((out_chans,), jnp.float32),
        "convs": [],
    }
    for i in range(n_convs):
        params["convs"].append({
            # LUConv conv weights in HWIO: (3, 3, C, C)
            "w": 0.1 * jax.random.normal(ks[2 + 2 * i],
                                         (3, 3, out_chans, out_chans),
                                         jnp.float32),
            "b": 0.05 * jax.random.normal(ks[3 + 2 * i], (out_chans,),
                                          jnp.float32),
            "gamma": jnp.ones((out_chans,), jnp.float32),
            "beta": jnp.zeros((out_chans,), jnp.float32),
        })
    return params


def down_transition_2d(x_nchw, params, groups=GROUPS):
    """Fused Pallas implementation. Input/output in NCHW (PyTorch convention)."""
    N, Cin, H, W = x_nchw.shape
    Cout = params["down_w"].shape[-1]
    Ho, Wo = H // 2, W // 2
    P = Ho * Wo
    Kd = 4 * Cin
    n_convs = len(params["convs"])

    x = x_nchw.astype(jnp.float32)
    # Single fused XLA copy: NCHW -> stride-2 2x2 patches, (kh, kw, cin) order,
    # with both samples stacked along rows (M = N*P = 128).
    xp = (x.reshape(N, Cin, Ho, 2, Wo, 2)
           .transpose(0, 2, 4, 3, 5, 1)
           .reshape(N * P, Kd))

    dw = params["down_w"].reshape(Kd, Cout)                       # (K, Cout)
    dp = jnp.stack([params["down_b"], params["down_gamma"],
                    params["down_beta"]])                         # (3, Cout)
    cw = jnp.stack([c["w"].reshape(9, Cout, Cout)
                    for c in params["convs"]])                    # (nC, 9, C, C)
    cp = jnp.stack([jnp.stack([c["b"], c["gamma"], c["beta"]])
                    for c in params["convs"]])                    # (nC, 3, C)
    gavg = _group_avg_matrix(Cout, groups)

    kernel = functools.partial(_fused_kernel, n=N, n_convs=n_convs,
                               ho=Ho, wo=Wo)
    out = pl.pallas_call(
        kernel,
        out_shape=jax.ShapeDtypeStruct((N, Ho, Wo * Cout), jnp.float32),
        grid=(1,),
        in_specs=[
            pl.BlockSpec((N * P, Kd), lambda i: (0, 0)),
            pl.BlockSpec((Kd, Cout), lambda i: (0, 0)),
            pl.BlockSpec((3, Cout), lambda i: (0, 0)),
            pl.BlockSpec((n_convs, 9, Cout, Cout), lambda i: (0, 0, 0, 0)),
            pl.BlockSpec((n_convs, 3, Cout), lambda i: (0, 0, 0)),
            pl.BlockSpec((Cout, Cout), lambda i: (0, 0)),
        ],
        out_specs=pl.BlockSpec((N, Ho, Wo * Cout), lambda i: (0, 0, 0)),
        scratch_shapes=[
            pltpu.VMEM((N, Ho + 2, Wo + 2, Cout), jnp.float32),  # padded image
        ],
        compiler_params=pltpu.CompilerParams(
            dimension_semantics=("arbitrary",)),
    )(xp, dw, dp, cw, cp, gavg)

    # (N, Ho, Wo*C) -> NHWC -> NCHW (tiny 8 KiB transpose at the boundary)
    return out.reshape(N, Ho, Wo, Cout).transpose(0, 3, 1, 2)
    # TODO(synk): PReLU branch (elu=False) and nn.Dropout2d (dropout=True) are
    # not exercised by this configuration and are not implemented.


# ---------------------------------------------------------------------------
# Pure-JAX reference (for correctness check only)
# ---------------------------------------------------------------------------
def _ref_gn(x_nhwc, gamma, beta, groups):
    N, H, W, C = x_nhwc.shape
    xg = x_nhwc.reshape(N, H, W, groups, C // groups)
    mean = xg.mean(axis=(1, 2, 4), keepdims=True)
    var = ((xg - mean) ** 2).mean(axis=(1, 2, 4), keepdims=True)
    xn = ((xg - mean) / jnp.sqrt(var + EPS)).reshape(N, H, W, C)
    return xn * gamma + beta


def _ref_elu(x):
    return jnp.where(x > 0, x, jnp.exp(jnp.minimum(x, 0.0)) - 1.0)


def ref_forward(x_nchw, params, groups=GROUPS):
    x = jnp.transpose(x_nchw, (0, 2, 3, 1)).astype(jnp.float32)
    dn = lax.conv_general_dilated(
        x, params["down_w"], (2, 2), "VALID",
        dimension_numbers=("NHWC", "HWIO", "NHWC")) + params["down_b"]
    down = _ref_elu(_ref_gn(dn, params["down_gamma"], params["down_beta"],
                            groups))
    out = down
    for p in params["convs"]:
        y = lax.conv_general_dilated(
            out, p["w"], (1, 1), "SAME",
            dimension_numbers=("NHWC", "HWIO", "NHWC")) + p["b"]
        out = _ref_elu(_ref_gn(y, p["gamma"], p["beta"], groups))
    out = _ref_elu(out + down)
    return jnp.transpose(out, (0, 3, 1, 2))


# ---------------------------------------------------------------------------
if __name__ == "__main__":
    key = jax.random.PRNGKey(0)
    k_x, k_p = jax.random.split(key)

    N, IN_CH, OUT_CH, H, W, N_CONVS = 2, 4, 16, 16, 16, 2
    x = jax.random.normal(k_x, (N, IN_CH, H, W), jnp.float32)
    params = init_params(k_p, IN_CH, OUT_CH, N_CONVS)

    out = jax.block_until_ready(down_transition_2d(x, params))

    ref = jax.block_until_ready(ref_forward(x, params))
    assert out.shape == (N, OUT_CH, H // 2, W // 2), out.shape
    assert jnp.allclose(out, ref, atol=2e-4, rtol=2e-4), float(
        jnp.max(jnp.abs(out - ref)))

    print("KERNEL_OK")
</pallas_src>

<mosaic_0001>
module attributes {stable_mosaic.version = 11 : i64} {
  func.func @_fused_kernel(%arg0: i32, %arg1: memref<128x16xf32, #tpu.memory_space<vmem>>, %arg2: memref<16x16xf32, #tpu.memory_space<vmem>>, %arg3: memref<3x16xf32, #tpu.memory_space<vmem>>, %arg4: memref<2x9x16x16xf32, #tpu.memory_space<vmem>>, %arg5: memref<2x3x16xf32, #tpu.memory_space<vmem>>, %arg6: memref<16x16xf32, #tpu.memory_space<vmem>>, %arg7: memref<2x8x128xf32, #tpu.memory_space<vmem>>, %arg8: memref<2x10x10x16xf32, #tpu.memory_space<vmem>>) attributes {dimension_semantics = [#tpu.dimension_semantics<arbitrary>], iteration_bounds = array<i64: 1>, scalar_prefetch = 0 : i64, scratch_operands = 1 : i64, tpu.core_type = #tpu.core_type<tc>, window_params = [{pipeline_mode = #tpu.pipeline_mode<synchronous>, transform_indices = @transform_0, window_bounds = array<i64: 128, 16>}, {pipeline_mode = #tpu.pipeline_mode<synchronous>, transform_indices = @transform_1, window_bounds = array<i64: 16, 16>}, {pipeline_mode = #tpu.pipeline_mode<synchronous>, transform_indices = @transform_2, window_bounds = array<i64: 3, 16>}, {pipeline_mode = #tpu.pipeline_mode<synchronous>, transform_indices = @transform_3, window_bounds = array<i64: 2, 9, 16, 16>}, {pipeline_mode = #tpu.pipeline_mode<synchronous>, transform_indices = @transform_4, window_bounds = array<i64: 2, 3, 16>}, {pipeline_mode = #tpu.pipeline_mode<synchronous>, transform_indices = @transform_5, window_bounds = array<i64: 16, 16>}, {pipeline_mode = #tpu.pipeline_mode<synchronous>, transform_indices = @transform_6, window_bounds = array<i64: 2, 8, 128>}]} {
    %c0 = arith.constant 0 : index
    %c0_0 = arith.constant 0 : index
    %0 = vector.load %arg6[%c0, %c0_0] : memref<16x16xf32, #tpu.memory_space<vmem>>, vector<16x16xf32>
    %c0_1 = arith.constant 0 : index
    %c0_2 = arith.constant 0 : index
    %1 = vector.load %arg1[%c0_1, %c0_2] : memref<128x16xf32, #tpu.memory_space<vmem>>, vector<128x16xf32>
    %c0_3 = arith.constant 0 : index
    %c0_4 = arith.constant 0 : index
    %2 = vector.load %arg2[%c0_3, %c0_4] : memref<16x16xf32, #tpu.memory_space<vmem>>, vector<16x16xf32>
    %cst = arith.constant dense<0.000000e+00> : vector<128x16xf32>
    %3 = tpu.matmul %1, %2, %cst {dimension_numbers = #tpu.dot_dimension_numbers<[1], [0], [0], [1], [0, 0, 1, 1], [], []>} : vector<128x16xf32>, vector<16x16xf32>, vector<128x16xf32> -> vector<128x16xf32>
    %c0_5 = arith.constant 0 : index
    %c0_6 = arith.constant 0 : index
    %4 = vector.load %arg3[%c0_5, %c0_6] : memref<3x16xf32, #tpu.memory_space<vmem>>, vector<3x16xf32>
    %5 = vector.extract_strided_slice %4 {offsets = [0, 0], sizes = [1, 16], strides = [1, 1]} : vector<3x16xf32> to vector<1x16xf32>
    %6 = vector.extract_strided_slice %4 {offsets = [1, 0], sizes = [1, 16], strides = [1, 1]} : vector<3x16xf32> to vector<1x16xf32>
    %7 = vector.extract_strided_slice %4 {offsets = [2, 0], sizes = [1, 16], strides = [1, 1]} : vector<3x16xf32> to vector<1x16xf32>
    %8 = vector.extract_strided_slice %3 {offsets = [0, 0], sizes = [64, 16], strides = [1, 1]} : vector<128x16xf32> to vector<64x16xf32>
    %cst_7 = arith.constant dense<0.000000e+00> : vector<16xf32>
    %9 = vector.multi_reduction <add>, %8, %cst_7 [0] : vector<64x16xf32> to vector<16xf32>
    %10 = vector.shape_cast %9 : vector<16xf32> to vector<1x16xf32>
    %cst_8 = arith.constant 1.562500e-02 : f32
    %11 = vector.broadcast %cst_8 : f32 to vector<1x16xf32>
    %12 = arith.mulf %10, %11 : vector<1x16xf32>
    %13 = arith.mulf %8, %8 : vector<64x16xf32>
    %cst_9 = arith.constant dense<0.000000e+00> : vector<16xf32>
    %14 = vector.multi_reduction <add>, %13, %cst_9 [0] : vector<64x16xf32> to vector<16xf32>
    %15 = vector.shape_cast %14 : vector<16xf32> to vector<1x16xf32>
    %cst_10 = arith.constant 1.562500e-02 : f32
    %16 = vector.broadcast %cst_10 : f32 to vector<1x16xf32>
    %17 = arith.mulf %15, %16 : vector<1x16xf32>
    %18 = vector.extract_strided_slice %3 {offsets = [64, 0], sizes = [64, 16], strides = [1, 1]} : vector<128x16xf32> to vector<64x16xf32>
    %cst_11 = arith.constant dense<0.000000e+00> : vector<16xf32>
    %19 = vector.multi_reduction <add>, %18, %cst_11 [0] : vector<64x16xf32> to vector<16xf32>
    %20 = vector.shape_cast %19 : vector<16xf32> to vector<1x16xf32>
    %cst_12 = arith.constant 1.562500e-02 : f32
    %21 = vector.broadcast %cst_12 : f32 to vector<1x16xf32>
    %22 = arith.mulf %20, %21 : vector<1x16xf32>
    %23 = arith.mulf %18, %18 : vector<64x16xf32>
    %cst_13 = arith.constant dense<0.000000e+00> : vector<16xf32>
    %24 = vector.multi_reduction <add>, %23, %cst_13 [0] : vector<64x16xf32> to vector<16xf32>
    %25 = vector.shape_cast %24 : vector<16xf32> to vector<1x16xf32>
    %cst_14 = arith.constant 1.562500e-02 : f32
    %26 = vector.broadcast %cst_14 : f32 to vector<1x16xf32>
    %27 = arith.mulf %25, %26 : vector<1x16xf32>
    %28 = tpu.concatenate %12, %22 in 0 : vector<1x16xf32>, vector<1x16xf32> -> vector<2x16xf32>
    %29 = tpu.concatenate %17, %27 in 0 : vector<1x16xf32>, vector<1x16xf32> -> vector<2x16xf32>
    %30 = vector.broadcast %5 : vector<1x16xf32> to vector<2x16xf32>
    %31 = arith.addf %28, %30 : vector<2x16xf32>
    %cst_15 = arith.constant 2.000000e+00 : f32
    %32 = vector.broadcast %cst_15 : f32 to vector<1x16xf32>
    %33 = arith.mulf %32, %5 : vector<1x16xf32>
    %34 = vector.broadcast %33 : vector<1x16xf32> to vector<2x16xf32>
    %35 = arith.mulf %34, %28 : vector<2x16xf32>
    %36 = arith.addf %29, %35 : vector<2x16xf32>
    %37 = arith.mulf %5, %5 : vector<1x16xf32>
    %38 = vector.broadcast %37 : vector<1x16xf32> to vector<2x16xf32>
    %39 = arith.addf %36, %38 : vector<2x16xf32>
    %40 = tpu.concatenate %31, %39 in 0 : vector<2x16xf32>, vector<2x16xf32> -> vector<4x16xf32>
    %cst_16 = arith.constant dense<0.000000e+00> : vector<4x16xf32>
    %41 = tpu.matmul %40, %0, %cst_16 {dimension_numbers = #tpu.dot_dimension_numbers<[1], [0], [0], [1], [0, 0, 1, 1], [], []>} : vector<4x16xf32>, vector<16x16xf32>, vector<4x16xf32> -> vector<4x16xf32>
    %42 = vector.extract_strided_slice %41 {offsets = [0, 0], sizes = [2, 16], strides = [1, 1]} : vector<4x16xf32> to vector<2x16xf32>
    %43 = vector.extract_strided_slice %41 {offsets = [2, 0], sizes = [2, 16], strides = [1, 1]} : vector<4x16xf32> to vector<2x16xf32>
    %44 = arith.mulf %42, %42 : vector<2x16xf32>
    %45 = arith.subf %43, %44 : vector<2x16xf32>
    %cst_17 = arith.constant 0.000000e+00 : f32
    %46 = vector.broadcast %cst_17 : f32 to vector<2x16xf32>
    %47 = arith.maximumf %45, %46 : vector<2x16xf32>
    %cst_18 = arith.constant 9.99999974E-6 : f32
    %48 = vector.broadcast %cst_18 : f32 to vector<2x16xf32>
    %49 = arith.addf %47, %48 : vector<2x16xf32>
    %50 = math.rsqrt %49 : vector<2x16xf32>
    %51 = vector.broadcast %6 : vector<1x16xf32> to vector<2x16xf32>
    %52 = arith.mulf %51, %50 : vector<2x16xf32>
    %53 = vector.broadcast %5 : vector<1x16xf32> to vector<2x16xf32>
    %54 = arith.subf %53, %42 : vector<2x16xf32>
    %55 = arith.mulf %54, %52 : vector<2x16xf32>
    %56 = vector.broadcast %7 : vector<1x16xf32> to vector<2x16xf32>
    %57 = arith.addf %55, %56 : vector<2x16xf32>
    %58 = vector.extract_strided_slice %3 {offsets = [0, 0], sizes = [64, 16], strides = [1, 1]} : vector<128x16xf32> to vector<64x16xf32>
    %59 = vector.extract_strided_slice %52 {offsets = [0, 0], sizes = [1, 16], strides = [1, 1]} : vector<2x16xf32> to vector<1x16xf32>
    %60 = vector.broadcast %59 : vector<1x16xf32> to vector<64x16xf32>
    %61 = arith.mulf %58, %60 : vector<64x16xf32>
    %62 = vector.extract_strided_slice %57 {offsets = [0, 0], sizes = [1, 16], strides = [1, 1]} : vector<2x16xf32> to vector<1x16xf32>
    %63 = vector.broadcast %62 : vector<1x16xf32> to vector<64x16xf32>
    %64 = arith.addf %61, %63 : vector<64x16xf32>
    %cst_19 = arith.constant 0.000000e+00 : f32
    %65 = vector.broadcast %cst_19 : f32 to vector<64x16xf32>
    %66 = arith.cmpf ogt, %64, %65 : vector<64x16xf32>
    %cst_20 = arith.constant 0.000000e+00 : f32
    %67 = vector.broadcast %cst_20 : f32 to vector<64x16xf32>
    %68 = arith.minimumf %64, %67 : vector<64x16xf32>
    %69 = math.exp %68 : vector<64x16xf32>
    %cst_21 = arith.constant 1.000000e+00 : f32
    %70 = vector.broadcast %cst_21 : f32 to vector<64x16xf32>
    %71 = arith.subf %69, %70 : vector<64x16xf32>
    %72 = arith.select %66, %64, %71 : vector<64x16xi1>, vector<64x16xf32>
    %73 = vector.extract_strided_slice %3 {offsets = [64, 0], sizes = [64, 16], strides = [1, 1]} : vector<128x16xf32> to vector<64x16xf32>
    %74 = vector.extract_strided_slice %52 {offsets = [1, 0], sizes = [1, 16], strides = [1, 1]} : vector<2x16xf32> to vector<1x16xf32>
    %75 = vector.broadcast %74 : vector<1x16xf32> to vector<64x16xf32>
    %76 = arith.mulf %73, %75 : vector<64x16xf32>
    %77 = vector.extract_strided_slice %57 {offsets = [1, 0], sizes = [1, 16], strides = [1, 1]} : vector<2x16xf32> to vector<1x16xf32>
    %78 = vector.broadcast %77 : vector<1x16xf32> to vector<64x16xf32>
    %79 = arith.addf %76, %78 : vector<64x16xf32>
    %cst_22 = arith.constant 0.000000e+00 : f32
    %80 = vector.broadcast %cst_22 : f32 to vector<64x16xf32>
    %81 = arith.cmpf ogt, %79, %80 : vector<64x16xf32>
    %cst_23 = arith.constant 0.000000e+00 : f32
    %82 = vector.broadcast %cst_23 : f32 to vector<64x16xf32>
    %83 = arith.minimumf %79, %82 : vector<64x16xf32>
    %84 = math.exp %83 : vector<64x16xf32>
    %cst_24 = arith.constant 1.000000e+00 : f32
    %85 = vector.broadcast %cst_24 : f32 to vector<64x16xf32>
    %86 = arith.subf %84, %85 : vector<64x16xf32>
    %87 = arith.select %81, %79, %86 : vector<64x16xi1>, vector<64x16xf32>
    %88 = tpu.concatenate %72, %87 in 0 : vector<64x16xf32>, vector<64x16xf32> -> vector<128x16xf32>
    %cst_25 = arith.constant 0.000000e+00 : f32
    %89 = vector.broadcast %cst_25 : f32 to vector<2x10x10x16xf32>
    %c0_26 = arith.constant 0 : index
    %c0_27 = arith.constant 0 : index
    %c0_28 = arith.constant 0 : index
    %c0_29 = arith.constant 0 : index
    %90 = vector.load %arg8[%c0_26, %c0_27, %c0_28, %c0_29] : memref<2x10x10x16xf32, #tpu.memory_space<vmem>>, vector<2x10x10x16xf32>
    tpu.vector_store %arg8[%c0_26, %c0_27, %c0_28, %c0_29], %89 {strides = array<i32>} : memref<2x10x10x16xf32, #tpu.memory_space<vmem>>, vector<2x10x10x16xf32>,
    %91 = vector.shape_cast %88 : vector<128x16xf32> to vector<2x8x8x16xf32>
    %c0_30 = arith.constant 0 : index
    %c1 = arith.constant 1 : index
    %c1_31 = arith.constant 1 : index
    %c0_32 = arith.constant 0 : index
    %92 = vector.load %arg8[%c0_30, %c1, %c1_31, %c0_32] : memref<2x10x10x16xf32, #tpu.memory_space<vmem>>, vector<2x8x8x16xf32>
    tpu.vector_store %arg8[%c0_30, %c1, %c1_31, %c0_32], %91 {strides = array<i32>} : memref<2x10x10x16xf32, #tpu.memory_space<vmem>>, vector<2x8x8x16xf32>,
    %c0_33 = arith.constant 0 : index
    %c0_34 = arith.constant 0 : index
    %c0_35 = arith.constant 0 : index
    %93 = vector.load %arg5[%c0_33, %c0_34, %c0_35] : memref<2x3x16xf32, #tpu.memory_space<vmem>>, vector<1x3x16xf32>
    %94 = vector.shape_cast %93 : vector<1x3x16xf32> to vector<3x16xf32>
    %c0_36 = arith.constant 0 : index
    %c0_37 = arith.constant 0 : index
    %c0_38 = arith.constant 0 : index
    %c0_39 = arith.constant 0 : index
    %95 = vector.load %arg8[%c0_36, %c0_37, %c0_38, %c0_39] : memref<2x10x10x16xf32, #tpu.memory_space<vmem>>, vector<2x8x8x16xf32>
    %96 = vector.shape_cast %95 : vector<2x8x8x16xf32> to vector<128x16xf32>
    %c0_40 = arith.constant 0 : index
    %c0_41 = arith.constant 0 : index
    %c0_42 = arith.constant 0 : index
    %c0_43 = arith.constant 0 : index
    %97 = vector.load %arg4[%c0_40, %c0_41, %c0_42, %c0_43] : memref<2x9x16x16xf32, #tpu.memory_space<vmem>>, vector<1x1x16x16xf32>
    %98 = vector.shape_cast %97 : vector<1x1x16x16xf32> to vector<16x16xf32>
    %cst_44 = arith.constant dense<0.000000e+00> : vector<128x16xf32>
    %99 = tpu.matmul %96, %98, %cst_44 {dimension_numbers = #tpu.dot_dimension_numbers<[1], [0], [0], [1], [0, 0, 1, 1], [], []>} : vector<128x16xf32>, vector<16x16xf32>, vector<128x16xf32> -> vector<128x16xf32>
    %c0_45 = arith.constant 0 : index
    %c0_46 = arith.constant 0 : index
    %c1_47 = arith.constant 1 : index
    %c0_48 = arith.constant 0 : index
    %100 = vector.load %arg8[%c0_45, %c0_46, %c1_47, %c0_48] : memref<2x10x10x16xf32, #tpu.memory_space<vmem>>, vector<2x8x8x16xf32>
    %101 = vector.shape_cast %100 : vector<2x8x8x16xf32> to vector<128x16xf32>
    %c0_49 = arith.constant 0 : index
    %c1_50 = arith.constant 1 : index
    %c0_51 = arith.constant 0 : index
    %c0_52 = arith.constant 0 : index
    %102 = vector.load %arg4[%c0_49, %c1_50, %c0_51, %c0_52] : memref<2x9x16x16xf32, #tpu.memory_space<vmem>>, vector<1x1x16x16xf32>
    %103 = vector.shape_cast %102 : vector<1x1x16x16xf32> to vector<16x16xf32>
    %cst_53 = arith.constant dense<0.000000e+00> : vector<128x16xf32>
    %104 = tpu.matmul %101, %103, %cst_53 {dimension_numbers = #tpu.dot_dimension_numbers<[1], [0], [0], [1], [0, 0, 1, 1], [], []>} : vector<128x16xf32>, vector<16x16xf32>, vector<128x16xf32> -> vector<128x16xf32>
    %105 = arith.addf %99, %104 : vector<128x16xf32>
    %c0_54 = arith.constant 0 : index
    %c0_55 = arith.constant 0 : index
    %c2 = arith.constant 2 : index
    %c0_56 = arith.constant 0 : index
    %106 = vector.load %arg8[%c0_54, %c0_55, %c2, %c0_56] : memref<2x10x10x16xf32, #tpu.memory_space<vmem>>, vector<2x8x8x16xf32>
    %107 = vector.shape_cast %106 : vector<2x8x8x16xf32> to vector<128x16xf32>
    %c0_57 = arith.constant 0 : index
    %c2_58 = arith.constant 2 : index
    %c0_59 = arith.constant 0 : index
    %c0_60 = arith.constant 0 : index
    %108 = vector.load %arg4[%c0_57, %c2_58, %c0_59, %c0_60] : memref<2x9x16x16xf32, #tpu.memory_space<vmem>>, vector<1x1x16x16xf32>
    %109 = vector.shape_cast %108 : vector<1x1x16x16xf32> to vector<16x16xf32>
    %cst_61 = arith.constant dense<0.000000e+00> : vector<128x16xf32>
    %110 = tpu.matmul %107, %109, %cst_61 {dimension_numbers = #tpu.dot_dimension_numbers<[1], [0], [0], [1], [0, 0, 1, 1], [], []>} : vector<128x16xf32>, vector<16x16xf32>, vector<128x16xf32> -> vector<128x16xf32>
    %111 = arith.addf %105, %110 : vector<128x16xf32>
    %c0_62 = arith.constant 0 : index
    %c1_63 = arith.constant 1 : index
    %c0_64 = arith.constant 0 : index
    %c0_65 = arith.constant 0 : index
    %112 = vector.load %arg8[%c0_62, %c1_63, %c0_64, %c0_65] : memref<2x10x10x16xf32, #tpu.memory_space<vmem>>, vector<2x8x8x16xf32>
    %113 = vector.shape_cast %112 : vector<2x8x8x16xf32> to vector<128x16xf32>
    %c0_66 = arith.constant 0 : index
    %c3 = arith.constant 3 : index
    %c0_67 = arith.constant 0 : index
    %c0_68 = arith.constant 0 : index
    %114 = vector.load %arg4[%c0_66, %c3, %c0_67, %c0_68] : memref<2x9x16x16xf32, #tpu.memory_space<vmem>>, vector<1x1x16x16xf32>
    %115 = vector.shape_cast %114 : vector<1x1x16x16xf32> to vector<16x16xf32>
    %cst_69 = arith.constant dense<0.000000e+00> : vector<128x16xf32>
    %116 = tpu.matmul %113, %115, %cst_69 {dimension_numbers = #tpu.dot_dimension_numbers<[1], [0], [0], [1], [0, 0, 1, 1], [], []>} : vector<128x16xf32>, vector<16x16xf32>, vector<128x16xf32> -> vector<128x16xf32>
    %117 = arith.addf %111, %116 : vector<128x16xf32>
    %c0_70 = arith.constant 0 : index
    %c1_71 = arith.constant 1 : index
    %c1_72 = arith.constant 1 : index
    %c0_73 = arith.constant 0 : index
    %118 = vector.load %arg8[%c0_70, %c1_71, %c1_72, %c0_73] : memref<2x10x10x16xf32, #tpu.memory_space<vmem>>, vector<2x8x8x16xf32>
    %119 = vector.shape_cast %118 : vector<2x8x8x16xf32> to vector<128x16xf32>
    %c0_74 = arith.constant 0 : index
    %c4 = arith.constant 4 : index
    %c0_75 = arith.constant 0 : index
    %c0_76 = arith.constant 0 : index
    %120 = vector.load %arg4[%c0_74, %c4, %c0_75, %c0_76] : memref<2x9x16x16xf32, #tpu.memory_space<vmem>>, vector<1x1x16x16xf32>
    %121 = vector.shape_cast %120 : vector<1x1x16x16xf32> to vector<16x16xf32>
    %cst_77 = arith.constant dense<0.000000e+00> : vector<128x16xf32>
    %122 = tpu.matmul %119, %121, %cst_77 {dimension_numbers = #tpu.dot_dimension_numbers<[1], [0], [0], [1], [0, 0, 1, 1], [], []>} : vector<128x16xf32>, vector<16x16xf32>, vector<128x16xf32> -> vector<128x16xf32>
    %123 = arith.addf %117, %122 : vector<128x16xf32>
    %c0_78 = arith.constant 0 : index
    %c1_79 = arith.constant 1 : index
    %c2_80 = arith.constant 2 : index
    %c0_81 = arith.constant 0 : index
    %124 = vector.load %arg8[%c0_78, %c1_79, %c2_80, %c0_81] : memref<2x10x10x16xf32, #tpu.memory_space<vmem>>, vector<2x8x8x16xf32>
    %125 = vector.shape_cast %124 : vector<2x8x8x16xf32> to vector<128x16xf32>
    %c0_82 = arith.constant 0 : index
    %c5 = arith.constant 5 : index
    %c0_83 = arith.constant 0 : index
    %c0_84 = arith.constant 0 : index
    %126 = vector.load %arg4[%c0_82, %c5, %c0_83, %c0_84] : memref<2x9x16x16xf32, #tpu.memory_space<vmem>>, vector<1x1x16x16xf32>
    %127 = vector.shape_cast %126 : vector<1x1x16x16xf32> to vector<16x16xf32>
    %cst_85 = arith.constant dense<0.000000e+00> : vector<128x16xf32>
    %128 = tpu.matmul %125, %127, %cst_85 {dimension_numbers = #tpu.dot_dimension_numbers<[1], [0], [0], [1], [0, 0, 1, 1], [], []>} : vector<128x16xf32>, vector<16x16xf32>, vector<128x16xf32> -> vector<128x16xf32>
    %129 = arith.addf %123, %128 : vector<128x16xf32>
    %c0_86 = arith.constant 0 : index
    %c2_87 = arith.constant 2 : index
    %c0_88 = arith.constant 0 : index
    %c0_89 = arith.constant 0 : index
    %130 = vector.load %arg8[%c0_86, %c2_87, %c0_88, %c0_89] : memref<2x10x10x16xf32, #tpu.memory_space<vmem>>, vector<2x8x8x16xf32>
    %131 = vector.shape_cast %130 : vector<2x8x8x16xf32> to vector<128x16xf32>
    %c0_90 = arith.constant 0 : index
    %c6 = arith.constant 6 : index
    %c0_91 = arith.constant 0 : index
    %c0_92 = arith.constant 0 : index
    %132 = vector.load %arg4[%c0_90, %c6, %c0_91, %c0_92] : memref<2x9x16x16xf32, #tpu.memory_space<vmem>>, vector<1x1x16x16xf32>
    %133 = vector.shape_cast %132 : vector<1x1x16x16xf32> to vector<16x16xf32>
    %cst_93 = arith.constant dense<0.000000e+00> : vector<128x16xf32>
    %134 = tpu.matmul %131, %133, %cst_93 {dimension_numbers = #tpu.dot_dimension_numbers<[1], [0], [0], [1], [0, 0, 1, 1], [], []>} : vector<128x16xf32>, vector<16x16xf32>, vector<128x16xf32> -> vector<128x16xf32>
    %135 = arith.addf %129, %134 : vector<128x16xf32>
    %c0_94 = arith.constant 0 : index
    %c2_95 = arith.constant 2 : index
    %c1_96 = arith.constant 1 : index
    %c0_97 = arith.constant 0 : index
    %136 = vector.load %arg8[%c0_94, %c2_95, %c1_96, %c0_97] : memref<2x10x10x16xf32, #tpu.memory_space<vmem>>, vector<2x8x8x16xf32>
    %137 = vector.shape_cast %136 : vector<2x8x8x16xf32> to vector<128x16xf32>
    %c0_98 = arith.constant 0 : index
    %c7 = arith.constant 7 : index
    %c0_99 = arith.constant 0 : index
    %c0_100 = arith.constant 0 : index
    %138 = vector.load %arg4[%c0_98, %c7, %c0_99, %c0_100] : memref<2x9x16x16xf32, #tpu.memory_space<vmem>>, vector<1x1x16x16xf32>
    %139 = vector.shape_cast %138 : vector<1x1x16x16xf32> to vector<16x16xf32>
    %cst_101 = arith.constant dense<0.000000e+00> : vector<128x16xf32>
    %140 = tpu.matmul %137, %139, %cst_101 {dimension_numbers = #tpu.dot_dimension_numbers<[1], [0], [0], [1], [0, 0, 1, 1], [], []>} : vector<128x16xf32>, vector<16x16xf32>, vector<128x16xf32> -> vector<128x16xf32>
    %141 = arith.addf %135, %140 : vector<128x16xf32>
    %c0_102 = arith.constant 0 : index
    %c2_103 = arith.constant 2 : index
    %c2_104 = arith.constant 2 : index
    %c0_105 = arith.constant 0 : index
    %142 = vector.load %arg8[%c0_102, %c2_103, %c2_104, %c0_105] : memref<2x10x10x16xf32, #tpu.memory_space<vmem>>, vector<2x8x8x16xf32>
    %143 = vector.shape_cast %142 : vector<2x8x8x16xf32> to vector<128x16xf32>
    %c0_106 = arith.constant 0 : index
    %c8 = arith.constant 8 : index
    %c0_107 = arith.constant 0 : index
    %c0_108 = arith.constant 0 : index
    %144 = vector.load %arg4[%c0_106, %c8, %c0_107, %c0_108] : memref<2x9x16x16xf32, #tpu.memory_space<vmem>>, vector<1x1x16x16xf32>
    %145 = vector.shape_cast %144 : vector<1x1x16x16xf32> to vector<16x16xf32>
    %cst_109 = arith.constant dense<0.000000e+00> : vector<128x16xf32>
    %146 = tpu.matmul %143, %145, %cst_109 {dimension_numbers = #tpu.dot_dimension_numbers<[1], [0], [0], [1], [0, 0, 1, 1], [], []>} : vector<128x16xf32>, vector<16x16xf32>, vector<128x16xf32> -> vector<128x16xf32>
    %147 = arith.addf %141, %146 : vector<128x16xf32>
    %148 = vector.extract_strided_slice %94 {offsets = [0, 0], sizes = [1, 16], strides = [1, 1]} : vector<3x16xf32> to vector<1x16xf32>
    %149 = vector.extract_strided_slice %94 {offsets = [1, 0], sizes = [1, 16], strides = [1, 1]} : vector<3x16xf32> to vector<1x16xf32>
    %150 = vector.extract_strided_slice %94 {offsets = [2, 0], sizes = [1, 16], strides = [1, 1]} : vector<3x16xf32> to vector<1x16xf32>
    %151 = vector.extract_strided_slice %147 {offsets = [0, 0], sizes = [64, 16], strides = [1, 1]} : vector<128x16xf32> to vector<64x16xf32>
    %cst_110 = arith.constant dense<0.000000e+00> : vector<16xf32>
    %152 = vector.multi_reduction <add>, %151, %cst_110 [0] : vector<64x16xf32> to vector<16xf32>
    %153 = vector.shape_cast %152 : vector<16xf32> to vector<1x16xf32>
    %cst_111 = arith.constant 1.562500e-02 : f32
    %154 = vector.broadcast %cst_111 : f32 to vector<1x16xf32>
    %155 = arith.mulf %153, %154 : vector<1x16xf32>
    %156 = arith.mulf %151, %151 : vector<64x16xf32>
    %cst_112 = arith.constant dense<0.000000e+00> : vector<16xf32>
    %157 = vector.multi_reduction <add>, %156, %cst_112 [0] : vector<64x16xf32> to vector<16xf32>
    %158 = vector.shape_cast %157 : vector<16xf32> to vector<1x16xf32>
    %cst_113 = arith.constant 1.562500e-02 : f32
    %159 = vector.broadcast %cst_113 : f32 to vector<1x16xf32>
    %160 = arith.mulf %158, %159 : vector<1x16xf32>
    %161 = vector.extract_strided_slice %147 {offsets = [64, 0], sizes = [64, 16], strides = [1, 1]} : vector<128x16xf32> to vector<64x16xf32>
    %cst_114 = arith.constant dense<0.000000e+00> : vector<16xf32>
    %162 = vector.multi_reduction <add>, %161, %cst_114 [0] : vector<64x16xf32> to vector<16xf32>
    %163 = vector.shape_cast %162 : vector<16xf32> to vector<1x16xf32>
    %cst_115 = arith.constant 1.562500e-02 : f32
    %164 = vector.broadcast %cst_115 : f32 to vector<1x16xf32>
    %165 = arith.mulf %163, %164 : vector<1x16xf32>
    %166 = arith.mulf %161, %161 : vector<64x16xf32>
    %cst_116 = arith.constant dense<0.000000e+00> : vector<16xf32>
    %167 = vector.multi_reduction <add>, %166, %cst_116 [0] : vector<64x16xf32> to vector<16xf32>
    %168 = vector.shape_cast %167 : vector<16xf32> to vector<1x16xf32>
    %cst_117 = arith.constant 1.562500e-02 : f32
    %169 = vector.broadcast %cst_117 : f32 to vector<1x16xf32>
    %170 = arith.mulf %168, %169 : vector<1x16xf32>
    %171 = tpu.concatenate %155, %165 in 0 : vector<1x16xf32>, vector<1x16xf32> -> vector<2x16xf32>
    %172 = tpu.concatenate %160, %170 in 0 : vector<1x16xf32>, vector<1x16xf32> -> vector<2x16xf32>
    %173 = vector.broadcast %148 : vector<1x16xf32> to vector<2x16xf32>
    %174 = arith.addf %171, %173 : vector<2x16xf32>
    %cst_118 = arith.constant 2.000000e+00 : f32
    %175 = vector.broadcast %cst_118 : f32 to vector<1x16xf32>
    %176 = arith.mulf %175, %148 : vector<1x16xf32>
    %177 = vector.broadcast %176 : vector<1x16xf32> to vector<2x16xf32>
    %178 = arith.mulf %177, %171 : vector<2x16xf32>
    %179 = arith.addf %172, %178 : vector<2x16xf32>
    %180 = arith.mulf %148, %148 : vector<1x16xf32>
    %181 = vector.broadcast %180 : vector<1x16xf32> to vector<2x16xf32>
    %182 = arith.addf %179, %181 : vector<2x16xf32>
    %183 = tpu.concatenate %174, %182 in 0 : vector<2x16xf32>, vector<2x16xf32> -> vector<4x16xf32>
    %cst_119 = arith.constant dense<0.000000e+00> : vector<4x16xf32>
    %184 = tpu.matmul %183, %0, %cst_119 {dimension_numbers = #tpu.dot_dimension_numbers<[1], [0], [0], [1], [0, 0, 1, 1], [], []>} : vector<4x16xf32>, vector<16x16xf32>, vector<4x16xf32> -> vector<4x16xf32>
    %185 = vector.extract_strided_slice %184 {offsets = [0, 0], sizes = [2, 16], strides = [1, 1]} : vector<4x16xf32> to vector<2x16xf32>
    %186 = vector.extract_strided_slice %184 {offsets = [2, 0], sizes = [2, 16], strides = [1, 1]} : vector<4x16xf32> to vector<2x16xf32>
    %187 = arith.mulf %185, %185 : vector<2x16xf32>
    %188 = arith.subf %186, %187 : vector<2x16xf32>
    %cst_120 = arith.constant 0.000000e+00 : f32
    %189 = vector.broadcast %cst_120 : f32 to vector<2x16xf32>
    %190 = arith.maximumf %188, %189 : vector<2x16xf32>
    %cst_121 = arith.constant 9.99999974E-6 : f32
    %191 = vector.broadcast %cst_121 : f32 to vector<2x16xf32>
    %192 = arith.addf %190, %191 : vector<2x16xf32>
    %193 = math.rsqrt %192 : vector<2x16xf32>
    %194 = vector.broadcast %149 : vector<1x16xf32> to vector<2x16xf32>
    %195 = arith.mulf %194, %193 : vector<2x16xf32>
    %196 = vector.broadcast %148 : vector<1x16xf32> to vector<2x16xf32>
    %197 = arith.subf %196, %185 : vector<2x16xf32>
    %198 = arith.mulf %197, %195 : vector<2x16xf32>
    %199 = vector.broadcast %150 : vector<1x16xf32> to vector<2x16xf32>
    %200 = arith.addf %198, %199 : vector<2x16xf32>
    %201 = vector.extract_strided_slice %147 {offsets = [0, 0], sizes = [64, 16], strides = [1, 1]} : vector<128x16xf32> to vector<64x16xf32>
    %202 = vector.extract_strided_slice %195 {offsets = [0, 0], sizes = [1, 16], strides = [1, 1]} : vector<2x16xf32> to vector<1x16xf32>
    %203 = vector.broadcast %202 : vector<1x16xf32> to vector<64x16xf32>
    %204 = arith.mulf %201, %203 : vector<64x16xf32>
    %205 = vector.extract_strided_slice %200 {offsets = [0, 0], sizes = [1, 16], strides = [1, 1]} : vector<2x16xf32> to vector<1x16xf32>
    %206 = vector.broadcast %205 : vector<1x16xf32> to vector<64x16xf32>
    %207 = arith.addf %204, %206 : vector<64x16xf32>
    %cst_122 = arith.constant 0.000000e+00 : f32
    %208 = vector.broadcast %cst_122 : f32 to vector<64x16xf32>
    %209 = arith.cmpf ogt, %207, %208 : vector<64x16xf32>
    %cst_123 = arith.constant 0.000000e+00 : f32
    %210 = vector.broadcast %cst_123 : f32 to vector<64x16xf32>
    %211 = arith.minimumf %207, %210 : vector<64x16xf32>
    %212 = math.exp %211 : vector<64x16xf32>
    %cst_124 = arith.constant 1.000000e+00 : f32
    %213 = vector.broadcast %cst_124 : f32 to vector<64x16xf32>
    %214 = arith.subf %212, %213 : vector<64x16xf32>
    %215 = arith.select %209, %207, %214 : vector<64x16xi1>, vector<64x16xf32>
    %216 = vector.extract_strided_slice %147 {offsets = [64, 0], sizes = [64, 16], strides = [1, 1]} : vector<128x16xf32> to vector<64x16xf32>
    %217 = vector.extract_strided_slice %195 {offsets = [1, 0], sizes = [1, 16], strides = [1, 1]} : vector<2x16xf32> to vector<1x16xf32>
    %218 = vector.broadcast %217 : vector<1x16xf32> to vector<64x16xf32>
    %219 = arith.mulf %216, %218 : vector<64x16xf32>
    %220 = vector.extract_strided_slice %200 {offsets = [1, 0], sizes = [1, 16], strides = [1, 1]} : vector<2x16xf32> to vector<1x16xf32>
    %221 = vector.broadcast %220 : vector<1x16xf32> to vector<64x16xf32>
    %222 = arith.addf %219, %221 : vector<64x16xf32>
    %cst_125 = arith.constant 0.000000e+00 : f32
    %223 = vector.broadcast %cst_125 : f32 to vector<64x16xf32>
    %224 = arith.cmpf ogt, %222, %223 : vector<64x16xf32>
    %cst_126 = arith.constant 0.000000e+00 : f32
    %225 = vector.broadcast %cst_126 : f32 to vector<64x16xf32>
    %226 = arith.minimumf %222, %225 : vector<64x16xf32>
    %227 = math.exp %226 : vector<64x16xf32>
    %cst_127 = arith.constant 1.000000e+00 : f32
    %228 = vector.broadcast %cst_127 : f32 to vector<64x16xf32>
    %229 = arith.subf %227, %228 : vector<64x16xf32>
    %230 = arith.select %224, %222, %229 : vector<64x16xi1>, vector<64x16xf32>
    %231 = tpu.concatenate %215, %230 in 0 : vector<64x16xf32>, vector<64x16xf32> -> vector<128x16xf32>
    %232 = vector.shape_cast %231 : vector<128x16xf32> to vector<2x8x8x16xf32>
    %c0_128 = arith.constant 0 : index
    %c1_129 = arith.constant 1 : index
    %c1_130 = arith.constant 1 : index
    %c0_131 = arith.constant 0 : index
    %233 = vector.load %arg8[%c0_128, %c1_129, %c1_130, %c0_131] : memref<2x10x10x16xf32, #tpu.memory_space<vmem>>, vector<2x8x8x16xf32>
    tpu.vector_store %arg8[%c0_128, %c1_129, %c1_130, %c0_131], %232 {strides = array<i32>} : memref<2x10x10x16xf32, #tpu.memory_space<vmem>>, vector<2x8x8x16xf32>,
    %c1_132 = arith.constant 1 : index
    %c0_133 = arith.constant 0 : index
    %c0_134 = arith.constant 0 : index
    %234 = vector.load %arg5[%c1_132, %c0_133, %c0_134] : memref<2x3x16xf32, #tpu.memory_space<vmem>>, vector<1x3x16xf32>
    %235 = vector.shape_cast %234 : vector<1x3x16xf32> to vector<3x16xf32>
    %c0_135 = arith.constant 0 : index
    %c0_136 = arith.constant 0 : index
    %c0_137 = arith.constant 0 : index
    %c0_138 = arith.constant 0 : index
    %236 = vector.load %arg8[%c0_135, %c0_136, %c0_137, %c0_138] : memref<2x10x10x16xf32, #tpu.memory_space<vmem>>, vector<2x8x8x16xf32>
    %237 = vector.shape_cast %236 : vector<2x8x8x16xf32> to vector<128x16xf32>
    %c1_139 = arith.constant 1 : index
    %c0_140 = arith.constant 0 : index
    %c0_141 = arith.constant 0 : index
    %c0_142 = arith.constant 0 : index
    %238 = vector.load %arg4[%c1_139, %c0_140, %c0_141, %c0_142] : memref<2x9x16x16xf32, #tpu.memory_space<vmem>>, vector<1x1x16x16xf32>
    %239 = vector.shape_cast %238 : vector<1x1x16x16xf32> to vector<16x16xf32>
    %cst_143 = arith.constant dense<0.000000e+00> : vector<128x16xf32>
    %240 = tpu.matmul %237, %239, %cst_143 {dimension_numbers = #tpu.dot_dimension_numbers<[1], [0], [0], [1], [0, 0, 1, 1], [], []>} : vector<128x16xf32>, vector<16x16xf32>, vector<128x16xf32> -> vector<128x16xf32>
    %c0_144 = arith.constant 0 : index
    %c0_145 = arith.constant 0 : index
    %c1_146 = arith.constant 1 : index
    %c0_147 = arith.constant 0 : index
    %241 = vector.load %arg8[%c0_144, %c0_145, %c1_146, %c0_147] : memref<2x10x10x16xf32, #tpu.memory_space<vmem>>, vector<2x8x8x16xf32>
    %242 = vector.shape_cast %241 : vector<2x8x8x16xf32> to vector<128x16xf32>
    %c1_148 = arith.constant 1 : index
    %c1_149 = arith.constant 1 : index
    %c0_150 = arith.constant 0 : index
    %c0_151 = arith.constant 0 : index
    %243 = vector.load %arg4[%c1_148, %c1_149, %c0_150, %c0_151] : memref<2x9x16x16xf32, #tpu.memory_space<vmem>>, vector<1x1x16x16xf32>
    %244 = vector.shape_cast %243 : vector<1x1x16x16xf32> to vector<16x16xf32>
    %cst_152 = arith.constant dense<0.000000e+00> : vector<128x16xf32>
    %245 = tpu.matmul %242, %244, %cst_152 {dimension_numbers = #tpu.dot_dimension_numbers<[1], [0], [0], [1], [0, 0, 1, 1], [], []>} : vector<128x16xf32>, vector<16x16xf32>, vector<128x16xf32> -> vector<128x16xf32>
    %246 = arith.addf %240, %245 : vector<128x16xf32>
    %c0_153 = arith.constant 0 : index
    %c0_154 = arith.constant 0 : index
    %c2_155 = arith.constant 2 : index
    %c0_156 = arith.constant 0 : index
    %247 = vector.load %arg8[%c0_153, %c0_154, %c2_155, %c0_156] : memref<2x10x10x16xf32, #tpu.memory_space<vmem>>, vector<2x8x8x16xf32>
    %248 = vector.shape_cast %247 : vector<2x8x8x16xf32> to vector<128x16xf32>
    %c1_157 = arith.constant 1 : index
    %c2_158 = arith.constant 2 : index
    %c0_159 = arith.constant 0 : index
    %c0_160 = arith.constant 0 : index
    %249 = vector.load %arg4[%c1_157, %c2_158, %c0_159, %c0_160] : memref<2x9x16x16xf32, #tpu.memory_space<vmem>>, vector<1x1x16x16xf32>
    %250 = vector.shape_cast %249 : vector<1x1x16x16xf32> to vector<16x16xf32>
    %cst_161 = arith.constant dense<0.000000e+00> : vector<128x16xf32>
    %251 = tpu.matmul %248, %250, %cst_161 {dimension_numbers = #tpu.dot_dimension_numbers<[1], [0], [0], [1], [0, 0, 1, 1], [], []>} : vector<128x16xf32>, vector<16x16xf32>, vector<128x16xf32> -> vector<128x16xf32>
    %252 = arith.addf %246, %251 : vector<128x16xf32>
    %c0_162 = arith.constant 0 : index
    %c1_163 = arith.constant 1 : index
    %c0_164 = arith.constant 0 : index
    %c0_165 = arith.constant 0 : index
    %253 = vector.load %arg8[%c0_162, %c1_163, %c0_164, %c0_165] : memref<2x10x10x16xf32, #tpu.memory_space<vmem>>, vector<2x8x8x16xf32>
    %254 = vector.shape_cast %253 : vector<2x8x8x16xf32> to vector<128x16xf32>
    %c1_166 = arith.constant 1 : index
    %c3_167 = arith.constant 3 : index
    %c0_168 = arith.constant 0 : index
    %c0_169 = arith.constant 0 : index
    %255 = vector.load %arg4[%c1_166, %c3_167, %c0_168, %c0_169] : memref<2x9x16x16xf32, #tpu.memory_space<vmem>>, vector<1x1x16x16xf32>
    %256 = vector.shape_cast %255 : vector<1x1x16x16xf32> to vector<16x16xf32>
    %cst_170 = arith.constant dense<0.000000e+00> : vector<128x16xf32>
    %257 = tpu.matmul %254, %256, %cst_170 {dimension_numbers = #tpu.dot_dimension_numbers<[1], [0], [0], [1], [0, 0, 1, 1], [], []>} : vector<128x16xf32>, vector<16x16xf32>, vector<128x16xf32> -> vector<128x16xf32>
    %258 = arith.addf %252, %257 : vector<128x16xf32>
    %c0_171 = arith.constant 0 : index
    %c1_172 = arith.constant 1 : index
    %c1_173 = arith.constant 1 : index
    %c0_174 = arith.constant 0 : index
    %259 = vector.load %arg8[%c0_171, %c1_172, %c1_173, %c0_174] : memref<2x10x10x16xf32, #tpu.memory_space<vmem>>, vector<2x8x8x16xf32>
    %260 = vector.shape_cast %259 : vector<2x8x8x16xf32> to vector<128x16xf32>
    %c1_175 = arith.constant 1 : index
    %c4_176 = arith.constant 4 : index
    %c0_177 = arith.constant 0 : index
    %c0_178 = arith.constant 0 : index
    %261 = vector.load %arg4[%c1_175, %c4_176, %c0_177, %c0_178] : memref<2x9x16x16xf32, #tpu.memory_space<vmem>>, vector<1x1x16x16xf32>
    %262 = vector.shape_cast %261 : vector<1x1x16x16xf32> to vector<16x16xf32>
    %cst_179 = arith.constant dense<0.000000e+00> : vector<128x16xf32>
    %263 = tpu.matmul %260, %262, %cst_179 {dimension_numbers = #tpu.dot_dimension_numbers<[1], [0], [0], [1], [0, 0, 1, 1], [], []>} : vector<128x16xf32>, vector<16x16xf32>, vector<128x16xf32> -> vector<128x16xf32>
    %264 = arith.addf %258, %263 : vector<128x16xf32>
    %c0_180 = arith.constant 0 : index
    %c1_181 = arith.constant 1 : index
    %c2_182 = arith.constant 2 : index
    %c0_183 = arith.constant 0 : index
    %265 = vector.load %arg8[%c0_180, %c1_181, %c2_182, %c0_183] : memref<2x10x10x16xf32, #tpu.memory_space<vmem>>, vector<2x8x8x16xf32>
    %266 = vector.shape_cast %265 : vector<2x8x8x16xf32> to vector<128x16xf32>
    %c1_184 = arith.constant 1 : index
    %c5_185 = arith.constant 5 : index
    %c0_186 = arith.constant 0 : index
    %c0_187 = arith.constant 0 : index
    %267 = vector.load %arg4[%c1_184, %c5_185, %c0_186, %c0_187] : memref<2x9x16x16xf32, #tpu.memory_space<vmem>>, vector<1x1x16x16xf32>
    %268 = vector.shape_cast %267 : vector<1x1x16x16xf32> to vector<16x16xf32>
    %cst_188 = arith.constant dense<0.000000e+00> : vector<128x16xf32>
    %269 = tpu.matmul %266, %268, %cst_188 {dimension_numbers = #tpu.dot_dimension_numbers<[1], [0], [0], [1], [0, 0, 1, 1], [], []>} : vector<128x16xf32>, vector<16x16xf32>, vector<128x16xf32> -> vector<128x16xf32>
    %270 = arith.addf %264, %269 : vector<128x16xf32>
    %c0_189 = arith.constant 0 : index
    %c2_190 = arith.constant 2 : index
    %c0_191 = arith.constant 0 : index
    %c0_192 = arith.constant 0 : index
    %271 = vector.load %arg8[%c0_189, %c2_190, %c0_191, %c0_192] : memref<2x10x10x16xf32, #tpu.memory_space<vmem>>, vector<2x8x8x16xf32>
    %272 = vector.shape_cast %271 : vector<2x8x8x16xf32> to vector<128x16xf32>
    %c1_193 = arith.constant 1 : index
    %c6_194 = arith.constant 6 : index
    %c0_195 = arith.constant 0 : index
    %c0_196 = arith.constant 0 : index
    %273 = vector.load %arg4[%c1_193, %c6_194, %c0_195, %c0_196] : memref<2x9x16x16xf32, #tpu.memory_space<vmem>>, vector<1x1x16x16xf32>
    %274 = vector.shape_cast %273 : vector<1x1x16x16xf32> to vector<16x16xf32>
    %cst_197 = arith.constant dense<0.000000e+00> : vector<128x16xf32>
    %275 = tpu.matmul %272, %274, %cst_197 {dimension_numbers = #tpu.dot_dimension_numbers<[1], [0], [0], [1], [0, 0, 1, 1], [], []>} : vector<128x16xf32>, vector<16x16xf32>, vector<128x16xf32> -> vector<128x16xf32>
    %276 = arith.addf %270, %275 : vector<128x16xf32>
    %c0_198 = arith.constant 0 : index
    %c2_199 = arith.constant 2 : index
    %c1_200 = arith.constant 1 : index
    %c0_201 = arith.constant 0 : index
    %277 = vector.load %arg8[%c0_198, %c2_199, %c1_200, %c0_201] : memref<2x10x10x16xf32, #tpu.memory_space<vmem>>, vector<2x8x8x16xf32>
    %278 = vector.shape_cast %277 : vector<2x8x8x16xf32> to vector<128x16xf32>
    %c1_202 = arith.constant 1 : index
    %c7_203 = arith.constant 7 : index
    %c0_204 = arith.constant 0 : index
    %c0_205 = arith.constant 0 : index
    %279 = vector.load %arg4[%c1_202, %c7_203, %c0_204, %c0_205] : memref<2x9x16x16xf32, #tpu.memory_space<vmem>>, vector<1x1x16x16xf32>
    %280 = vector.shape_cast %279 : vector<1x1x16x16xf32> to vector<16x16xf32>
    %cst_206 = arith.constant dense<0.000000e+00> : vector<128x16xf32>
    %281 = tpu.matmul %278, %280, %cst_206 {dimension_numbers = #tpu.dot_dimension_numbers<[1], [0], [0], [1], [0, 0, 1, 1], [], []>} : vector<128x16xf32>, vector<16x16xf32>, vector<128x16xf32> -> vector<128x16xf32>
    %282 = arith.addf %276, %281 : vector<128x16xf32>
    %c0_207 = arith.constant 0 : index
    %c2_208 = arith.constant 2 : index
    %c2_209 = arith.constant 2 : index
    %c0_210 = arith.constant 0 : index
    %283 = vector.load %arg8[%c0_207, %c2_208, %c2_209, %c0_210] : memref<2x10x10x16xf32, #tpu.memory_space<vmem>>, vector<2x8x8x16xf32>
    %284 = vector.shape_cast %283 : vector<2x8x8x16xf32> to vector<128x16xf32>
    %c1_211 = arith.constant 1 : index
    %c8_212 = arith.constant 8 : index
    %c0_213 = arith.constant 0 : index
    %c0_214 = arith.constant 0 : index
    %285 = vector.load %arg4[%c1_211, %c8_212, %c0_213, %c0_214] : memref<2x9x16x16xf32, #tpu.memory_space<vmem>>, vector<1x1x16x16xf32>
    %286 = vector.shape_cast %285 : vector<1x1x16x16xf32> to vector<16x16xf32>
    %cst_215 = arith.constant dense<0.000000e+00> : vector<128x16xf32>
    %287 = tpu.matmul %284, %286, %cst_215 {dimension_numbers = #tpu.dot_dimension_numbers<[1], [0], [0], [1], [0, 0, 1, 1], [], []>} : vector<128x16xf32>, vector<16x16xf32>, vector<128x16xf32> -> vector<128x16xf32>
    %288 = arith.addf %282, %287 : vector<128x16xf32>
    %289 = vector.extract_strided_slice %235 {offsets = [0, 0], sizes = [1, 16], strides = [1, 1]} : vector<3x16xf32> to vector<1x16xf32>
    %290 = vector.extract_strided_slice %235 {offsets = [1, 0], sizes = [1, 16], strides = [1, 1]} : vector<3x16xf32> to vector<1x16xf32>
    %291 = vector.extract_strided_slice %235 {offsets = [2, 0], sizes = [1, 16], strides = [1, 1]} : vector<3x16xf32> to vector<1x16xf32>
    %292 = vector.extract_strided_slice %288 {offsets = [0, 0], sizes = [64, 16], strides = [1, 1]} : vector<128x16xf32> to vector<64x16xf32>
    %cst_216 = arith.constant dense<0.000000e+00> : vector<16xf32>
    %293 = vector.multi_reduction <add>, %292, %cst_216 [0] : vector<64x16xf32> to vector<16xf32>
    %294 = vector.shape_cast %293 : vector<16xf32> to vector<1x16xf32>
    %cst_217 = arith.constant 1.562500e-02 : f32
    %295 = vector.broadcast %cst_217 : f32 to vector<1x16xf32>
    %296 = arith.mulf %294, %295 : vector<1x16xf32>
    %297 = arith.mulf %292, %292 : vector<64x16xf32>
    %cst_218 = arith.constant dense<0.000000e+00> : vector<16xf32>
    %298 = vector.multi_reduction <add>, %297, %cst_218 [0] : vector<64x16xf32> to vector<16xf32>
    %299 = vector.shape_cast %298 : vector<16xf32> to vector<1x16xf32>
    %cst_219 = arith.constant 1.562500e-02 : f32
    %300 = vector.broadcast %cst_219 : f32 to vector<1x16xf32>
    %301 = arith.mulf %299, %300 : vector<1x16xf32>
    %302 = vector.extract_strided_slice %288 {offsets = [64, 0], sizes = [64, 16], strides = [1, 1]} : vector<128x16xf32> to vector<64x16xf32>
    %cst_220 = arith.constant dense<0.000000e+00> : vector<16xf32>
    %303 = vector.multi_reduction <add>, %302, %cst_220 [0] : vector<64x16xf32> to vector<16xf32>
    %304 = vector.shape_cast %303 : vector<16xf32> to vector<1x16xf32>
    %cst_221 = arith.constant 1.562500e-02 : f32
    %305 = vector.broadcast %cst_221 : f32 to vector<1x16xf32>
    %306 = arith.mulf %304, %305 : vector<1x16xf32>
    %307 = arith.mulf %302, %302 : vector<64x16xf32>
    %cst_222 = arith.constant dense<0.000000e+00> : vector<16xf32>
    %308 = vector.multi_reduction <add>, %307, %cst_222 [0] : vector<64x16xf32> to vector<16xf32>
    %309 = vector.shape_cast %308 : vector<16xf32> to vector<1x16xf32>
    %cst_223 = arith.constant 1.562500e-02 : f32
    %310 = vector.broadcast %cst_223 : f32 to vector<1x16xf32>
    %311 = arith.mulf %309, %310 : vector<1x16xf32>
    %312 = tpu.concatenate %296, %306 in 0 : vector<1x16xf32>, vector<1x16xf32> -> vector<2x16xf32>
    %313 = tpu.concatenate %301, %311 in 0 : vector<1x16xf32>, vector<1x16xf32> -> vector<2x16xf32>
    %314 = vector.broadcast %289 : vector<1x16xf32> to vector<2x16xf32>
    %315 = arith.addf %312, %314 : vector<2x16xf32>
    %cst_224 = arith.constant 2.000000e+00 : f32
    %316 = vector.broadcast %cst_224 : f32 to vector<1x16xf32>
    %317 = arith.mulf %316, %289 : vector<1x16xf32>
    %318 = vector.broadcast %317 : vector<1x16xf32> to vector<2x16xf32>
    %319 = arith.mulf %318, %312 : vector<2x16xf32>
    %320 = arith.addf %313, %319 : vector<2x16xf32>
    %321 = arith.mulf %289, %289 : vector<1x16xf32>
    %322 = vector.broadcast %321 : vector<1x16xf32> to vector<2x16xf32>
    %323 = arith.addf %320, %322 : vector<2x16xf32>
    %324 = tpu.concatenate %315, %323 in 0 : vector<2x16xf32>, vector<2x16xf32> -> vector<4x16xf32>
    %cst_225 = arith.constant dense<0.000000e+00> : vector<4x16xf32>
    %325 = tpu.matmul %324, %0, %cst_225 {dimension_numbers = #tpu.dot_dimension_numbers<[1], [0], [0], [1], [0, 0, 1, 1], [], []>} : vector<4x16xf32>, vector<16x16xf32>, vector<4x16xf32> -> vector<4x16xf32>
    %326 = vector.extract_strided_slice %325 {offsets = [0, 0], sizes = [2, 16], strides = [1, 1]} : vector<4x16xf32> to vector<2x16xf32>
    %327 = vector.extract_strided_slice %325 {offsets = [2, 0], sizes = [2, 16], strides = [1, 1]} : vector<4x16xf32> to vector<2x16xf32>
    %328 = arith.mulf %326, %326 : vector<2x16xf32>
    %329 = arith.subf %327, %328 : vector<2x16xf32>
    %cst_226 = arith.constant 0.000000e+00 : f32
    %330 = vector.broadcast %cst_226 : f32 to vector<2x16xf32>
    %331 = arith.maximumf %329, %330 : vector<2x16xf32>
    %cst_227 = arith.constant 9.99999974E-6 : f32
    %332 = vector.broadcast %cst_227 : f32 to vector<2x16xf32>
    %333 = arith.addf %331, %332 : vector<2x16xf32>
    %334 = math.rsqrt %333 : vector<2x16xf32>
    %335 = vector.broadcast %290 : vector<1x16xf32> to vector<2x16xf32>
    %336 = arith.mulf %335, %334 : vector<2x16xf32>
    %337 = vector.broadcast %289 : vector<1x16xf32> to vector<2x16xf32>
    %338 = arith.subf %337, %326 : vector<2x16xf32>
    %339 = arith.mulf %338, %336 : vector<2x16xf32>
    %340 = vector.broadcast %291 : vector<1x16xf32> to vector<2x16xf32>
    %341 = arith.addf %339, %340 : vector<2x16xf32>
    %342 = vector.extract_strided_slice %288 {offsets = [0, 0], sizes = [64, 16], strides = [1, 1]} : vector<128x16xf32> to vector<64x16xf32>
    %343 = vector.extract_strided_slice %336 {offsets = [0, 0], sizes = [1, 16], strides = [1, 1]} : vector<2x16xf32> to vector<1x16xf32>
    %344 = vector.broadcast %343 : vector<1x16xf32> to vector<64x16xf32>
    %345 = arith.mulf %342, %344 : vector<64x16xf32>
    %346 = vector.extract_strided_slice %341 {offsets = [0, 0], sizes = [1, 16], strides = [1, 1]} : vector<2x16xf32> to vector<1x16xf32>
    %347 = vector.broadcast %346 : vector<1x16xf32> to vector<64x16xf32>
    %348 = arith.addf %345, %347 : vector<64x16xf32>
    %cst_228 = arith.constant 0.000000e+00 : f32
    %349 = vector.broadcast %cst_228 : f32 to vector<64x16xf32>
    %350 = arith.cmpf ogt, %348, %349 : vector<64x16xf32>
    %cst_229 = arith.constant 0.000000e+00 : f32
    %351 = vector.broadcast %cst_229 : f32 to vector<64x16xf32>
    %352 = arith.minimumf %348, %351 : vector<64x16xf32>
    %353 = math.exp %352 : vector<64x16xf32>
    %cst_230 = arith.constant 1.000000e+00 : f32
    %354 = vector.broadcast %cst_230 : f32 to vector<64x16xf32>
    %355 = arith.subf %353, %354 : vector<64x16xf32>
    %356 = arith.select %350, %348, %355 : vector<64x16xi1>, vector<64x16xf32>
    %357 = vector.extract_strided_slice %288 {offsets = [64, 0], sizes = [64, 16], strides = [1, 1]} : vector<128x16xf32> to vector<64x16xf32>
    %358 = vector.extract_strided_slice %336 {offsets = [1, 0], sizes = [1, 16], strides = [1, 1]} : vector<2x16xf32> to vector<1x16xf32>
    %359 = vector.broadcast %358 : vector<1x16xf32> to vector<64x16xf32>
    %360 = arith.mulf %357, %359 : vector<64x16xf32>
    %361 = vector.extract_strided_slice %341 {offsets = [1, 0], sizes = [1, 16], strides = [1, 1]} : vector<2x16xf32> to vector<1x16xf32>
    %362 = vector.broadcast %361 : vector<1x16xf32> to vector<64x16xf32>
    %363 = arith.addf %360, %362 : vector<64x16xf32>
    %cst_231 = arith.constant 0.000000e+00 : f32
    %364 = vector.broadcast %cst_231 : f32 to vector<64x16xf32>
    %365 = arith.cmpf ogt, %363, %364 : vector<64x16xf32>
    %cst_232 = arith.constant 0.000000e+00 : f32
    %366 = vector.broadcast %cst_232 : f32 to vector<64x16xf32>
    %367 = arith.minimumf %363, %366 : vector<64x16xf32>
    %368 = math.exp %367 : vector<64x16xf32>
    %cst_233 = arith.constant 1.000000e+00 : f32
    %369 = vector.broadcast %cst_233 : f32 to vector<64x16xf32>
    %370 = arith.subf %368, %369 : vector<64x16xf32>
    %371 = arith.select %365, %363, %370 : vector<64x16xi1>, vector<64x16xf32>
    %372 = tpu.concatenate %356, %371 in 0 : vector<64x16xf32>, vector<64x16xf32> -> vector<128x16xf32>
    %373 = arith.addf %372, %88 : vector<128x16xf32>
    %374 = vector.shape_cast %373 : vector<128x16xf32> to vector<2x8x8x16xf32>
    %375 = vector.extract_strided_slice %374 {offsets = [0, 0, 0, 0], sizes = [2, 8, 1, 16], strides = [1, 1, 1, 1]} : vector<2x8x8x16xf32> to vector<2x8x1x16xf32>
    %376 = vector.shape_cast %375 : vector<2x8x1x16xf32> to vector<2x8x16xf32>
    %377 = vector.extract_strided_slice %374 {offsets = [0, 0, 1, 0], sizes = [2, 8, 1, 16], strides = [1, 1, 1, 1]} : vector<2x8x8x16xf32> to vector<2x8x1x16xf32>
    %378 = vector.shape_cast %377 : vector<2x8x1x16xf32> to vector<2x8x16xf32>
    %379 = vector.extract_strided_slice %374 {offsets = [0, 0, 2, 0], sizes = [2, 8, 1, 16], strides = [1, 1, 1, 1]} : vector<2x8x8x16xf32> to vector<2x8x1x16xf32>
    %380 = vector.shape_cast %379 : vector<2x8x1x16xf32> to vector<2x8x16xf32>
    %381 = vector.extract_strided_slice %374 {offsets = [0, 0, 3, 0], sizes = [2, 8, 1, 16], strides = [1, 1, 1, 1]} : vector<2x8x8x16xf32> to vector<2x8x1x16xf32>
    %382 = vector.shape_cast %381 : vector<2x8x1x16xf32> to vector<2x8x16xf32>
    %383 = vector.extract_strided_slice %374 {offsets = [0, 0, 4, 0], sizes = [2, 8, 1, 16], strides = [1, 1, 1, 1]} : vector<2x8x8x16xf32> to vector<2x8x1x16xf32>
    %384 = vector.shape_cast %383 : vector<2x8x1x16xf32> to vector<2x8x16xf32>
    %385 = vector.extract_strided_slice %374 {offsets = [0, 0, 5, 0], sizes = [2, 8, 1, 16], strides = [1, 1, 1, 1]} : vector<2x8x8x16xf32> to vector<2x8x1x16xf32>
    %386 = vector.shape_cast %385 : vector<2x8x1x16xf32> to vector<2x8x16xf32>
    %387 = vector.extract_strided_slice %374 {offsets = [0, 0, 6, 0], sizes = [2, 8, 1, 16], strides = [1, 1, 1, 1]} : vector<2x8x8x16xf32> to vector<2x8x1x16xf32>
    %388 = vector.shape_cast %387 : vector<2x8x1x16xf32> to vector<2x8x16xf32>
    %389 = vector.extract_strided_slice %374 {offsets = [0, 0, 7, 0], sizes = [2, 8, 1, 16], strides = [1, 1, 1, 1]} : vector<2x8x8x16xf32> to vector<2x8x1x16xf32>
    %390 = vector.shape_cast %389 : vector<2x8x1x16xf32> to vector<2x8x16xf32>
    %391 = tpu.concatenate %376, %378, %380, %382, %384, %386, %388, %390 in 2 : vector<2x8x16xf32>, vector<2x8x16xf32>, vector<2x8x16xf32>, vector<2x8x16xf32>, vector<2x8x16xf32>, vector<2x8x16xf32>, vector<2x8x16xf32>, vector<2x8x16xf32> -> vector<2x8x128xf32>
    %cst_234 = arith.constant 0.000000e+00 : f32
    %392 = vector.broadcast %cst_234 : f32 to vector<2x8x128xf32>
    %393 = arith.cmpf ogt, %391, %392 : vector<2x8x128xf32>
    %cst_235 = arith.constant 0.000000e+00 : f32
    %394 = vector.broadcast %cst_235 : f32 to vector<2x8x128xf32>
    %395 = arith.minimumf %391, %394 : vector<2x8x128xf32>
    %396 = math.exp %395 : vector<2x8x128xf32>
    %cst_236 = arith.constant 1.000000e+00 : f32
    %397 = vector.broadcast %cst_236 : f32 to vector<2x8x128xf32>
    %398 = arith.subf %396, %397 : vector<2x8x128xf32>
    %399 = arith.select %393, %391, %398 : vector<2x8x128xi1>, vector<2x8x128xf32>
    %c0_237 = arith.constant 0 : index
    %c0_238 = arith.constant 0 : index
    %c0_239 = arith.constant 0 : index
    %400 = vector.load %arg7[%c0_237, %c0_238, %c0_239] : memref<2x8x128xf32, #tpu.memory_space<vmem>>, vector<2x8x128xf32>
    tpu.vector_store %arg7[%c0_237, %c0_238, %c0_239], %399 {strides = array<i32>} : memref<2x8x128xf32, #tpu.memory_space<vmem>>, vector<2x8x128xf32>,
    return
  }
  func.func @transform_0(%arg0: i32) -> (i32, i32) {
    %c0_i32 = arith.constant 0 : i32
    %c0_i32_0 = arith.constant 0 : i32
    %c0_i32_1 = arith.constant 0 : i32
    return %c0_i32, %c0_i32_0 : i32, i32
  }
  func.func @transform_1(%arg0: i32) -> (i32, i32) {
    %c0_i32 = arith.constant 0 : i32
    %c0_i32_0 = arith.constant 0 : i32
    %c0_i32_1 = arith.constant 0 : i32
    return %c0_i32, %c0_i32_0 : i32, i32
  }
  func.func @transform_2(%arg0: i32) -> (i32, i32) {
    %c0_i32 = arith.constant 0 : i32
    %c0_i32_0 = arith.constant 0 : i32
    %c0_i32_1 = arith.constant 0 : i32
    return %c0_i32, %c0_i32_0 : i32, i32
  }
  func.func @transform_3(%arg0: i32) -> (i32, i32, i32, i32) {
    %c0_i32 = arith.constant 0 : i32
    %c0_i32_0 = arith.constant 0 : i32
    %c0_i32_1 = arith.constant 0 : i32
    %c0_i32_2 = arith.constant 0 : i32
    %c0_i32_3 = arith.constant 0 : i32
    return %c0_i32, %c0_i32_0, %c0_i32_1, %c0_i32_2 : i32, i32, i32, i32
  }
  func.func @transform_4(%arg0: i32) -> (i32, i32, i32) {
    %c0_i32 = arith.constant 0 : i32
    %c0_i32_0 = arith.constant 0 : i32
    %c0_i32_1 = arith.constant 0 : i32
    %c0_i32_2 = arith.constant 0 : i32
    return %c0_i32, %c0_i32_0, %c0_i32_1 : i32, i32, i32
  }
  func.func @transform_5(%arg0: i32) -> (i32, i32) {
    %c0_i32 = arith.constant 0 : i32
    %c0_i32_0 = arith.constant 0 : i32
    %c0_i32_1 = arith.constant 0 : i32
    return %c0_i32, %c0_i32_0 : i32, i32
  }
  func.func @transform_6(%arg0: i32) -> (i32, i32, i32) {
    %c0_i32 = arith.constant 0 : i32
    %c0_i32_0 = arith.constant 0 : i32
    %c0_i32_1 = arith.constant 0 : i32
    %c0_i32_2 = arith.constant 0 : i32
    return %c0_i32, %c0_i32_0, %c0_i32_1 : i32, i32, i32
  }
}

</mosaic_0001>

<bundles_post_ra>
// kernel: tpu_custom_call.1
= control target key start
LH: loop header
LB: loop body
LE: loop exit
PB: predicated region body
PF: predicated region fallthrough
CT: control target
= control target key end

     0   :  { %11 = vsyncpa [#allocation4], 0  ;;  %s9713_s0 = inlined_call_operand.vmem [shape: f32[128,16], index: 0, kind: input, shape index: {}]   ;;  %s9714_s1 = inlined_call_operand.vmem [shape: f32[16,16], index: 1, kind: input, shape index: {}]   ;;  %s9715_s2 = inlined_call_operand.vmem [shape: f32[3,16], index: 2, kind: input, shape index: {}]   ;;  %s9716_s3 = inlined_call_operand.hbm [shape: f32[2,9,16,16], index: 3, kind: input, shape index: {}]   ;;  %s9717_s4 = inlined_call_operand.vmem [shape: f32[2,3,16], index: 4, kind: input, shape index: {}]   ;;  %s9718_s5 = inlined_call_operand.vmem [shape: f32[16,16], index: 5, kind: input, shape index: {}]   ;;  %s9719_s6 = inlined_call_operand.hbm [shape: f32[2,8,128], index: 6, kind: output, shape index: {}]  }
   0x1   :  { %12 = vsyncpa [#allocation5], 0  ;;  %s7607_s21 = smov [#allocation3]   ;;  %s7559_s25 = scalar_lea.hbm %s9716_s3, 4608 }
   0x2   :  { %s24_s22 = sshll.u32 %s7607_s21, 4  ;;  %p7560_p0 = scmp.ne.s32.totalorder %s9716_s3, %s7559_s25  ;;  %s25_s22 = int_to_ptr.vmem [resolvable:$true] %s24_s22 }
   0x3   :  { %p7563_p1 = scmp.lt.u32.totalorder %s7559_s25, %s9716_s3 }
   0x5   :  { %p7565_p2 = pnand %p7563_p1, %p7560_p0 }
   0x7   :  { %7568 = shalt.err (!%p7565_p2)
}
   0x8   :  { %s7569_s30 = scalar_lea.vmem %s25_s22, 4608  ;;  %p7574_p4 = scmp.lt.s32.totalorder %s25_s22, %s25_s22 }
   0x9   :  { %p7570_p3 = scmp.ne.s32.totalorder %s25_s22, %s7569_s30  ;;  %p7575_p5 = scmp.lt.s32.totalorder %s7569_s30, %s7569_s30 }
   0xb   :  { %p7576_p6 = por %p7575_p5, %p7574_p4 }
   0xd   :  { %p7577_p7 = pnand %p7576_p6, %p7570_p3 }
   0xf   :  { %7580 = shalt.err (!%p7577_p7)
}
  0x10   :  { %s7608_s7 = smov 128   ;;  %s7609_s8 = smov 8  }
  0x11   :  { %30 = dma.hbm_to_vmem [thread:$0]  %s9716_s3, 4608, %s25_s22, [#allocation4], %s7608_s7, %s7608_s7, %s7609_s8  }
  0x12   :  { %7603 = dma.done.wait [#allocation4], 4608  }
  0x13   :  { %7604 = vsyncadd [#allocation4], 4294962688  ;;  %vm58_vm0 = vcmask 130048   ;;  %v56_v0 = vld [vmem:[%s9714_s1] sm:$0xff]  ;;  %v57_v1 = vld [vmem:[%s9714_s1 + $0x8] sm:$0xff]  ;;  %v9721_v21 = vmov 0.0|0.0  }
  0x14   :  { %v40_v2 = vld [vmem:[%s9713_s0] sm:$0xff]  ;;  %v7096_v3 = vpack.c.bf16 %v57_v1, %v56_v0  ;;  %v41_v4 = vld [vmem:[%s9713_s0 + $0x8] sm:$0xff]  ;;  %v50_v5 = vld [vmem:[%s9713_s0 + $0x50] sm:$0xff]  ;;  %vm7611_vm1 = vmmov 0   ;;  %v9720_v23 = vmov 0.0   ;;  %vm357_vm2 = vcmask 1040384  }
  0x15   :  { %6547 = vmatprep.mubr.msk.f32.mxu0 %vm58_vm0, %v40_v2  ;;  %v51_v6 = vld [vmem:[%s9713_s0 + $0x58] sm:$0xff]  ;;  %v42_v7 = vld [vmem:[%s9713_s0 + $0x10] sm:$0xff]  ;;  %6562 = vmatprep.mubr.msk.f32.mxu1 %vm58_vm0, %v50_v5  ;;  %v52_v8 = vld [vmem:[%s9713_s0 + $0x60] sm:$0xff]  ;;  %623 = vst.msk [vmem:[#allocation2] sm:$0xff] %vm58_vm0, %v9720_v23  ;;  %vm381_vm3 = vcmask 1041408   ;;  %vm624_vm4 = vcmask 123904  }
  0x16   :  { %7097 = vmatprep.subr.bf16.mxu0 %v7096_v3  ;;  %7181 = vmatprep.subr.bf16.mxu1 %v7096_v3  ;;  %v43_v9 = vld [vmem:[%s9713_s0 + $0x18] sm:$0xff]  ;;  %v53_v10 = vld [vmem:[%s9713_s0 + $0x68] sm:$0xff]  ;;  %v44_v11 = vld [vmem:[%s9713_s0 + $0x20] sm:$0xff]  ;;  %626 = vst.msk [vmem:[#allocation2 + $0x10] sm:$0xff] %vm58_vm0, %v9720_v23  ;;  %s7614_s28 = smov 16   ;;  %s7615_s29 = smov 48  }
  0x17   :  { %7099 = vmatpush3.bf16.msra.mxu0 %v7096_v3  ;;  %7182 = vmatpush3.bf16.msra.mxu1 %v7096_v3  ;;  %v54_v12 = vld [vmem:[%s9713_s0 + $0x70] sm:$0xff]  ;;  %v45_v13 = vld [vmem:[%s9713_s0 + $0x28] sm:$0xff]  ;;  %v55_v14 = vld [vmem:[%s9713_s0 + $0x78] sm:$0xff]  ;;  %628 = vst.msk [vmem:[#allocation2 + $0x20] sm:$0xff] %vm58_vm0, %v9720_v23  ;;  %s7616_s30 = smov 64   ;;  %s7617_s9 = smov 80  }
  0x18   :  { %v46_v15 = vld [vmem:[%s9713_s0 + $0x30] sm:$0xff]  ;;  %v47_v16 = vld [vmem:[%s9713_s0 + $0x38] sm:$0xff]  ;;  %v48_v17 = vld [vmem:[%s9713_s0 + $0x40] sm:$0xff]  ;;  %7100 = vmatprep.subr.bf16.mxu1 %v9721_v21  ;;  %630 = vst.msk [vmem:[#allocation2 + $0x30] sm:$0xff] %vm58_vm0, %v9720_v23  ;;  %7139 = vmatprep.subr.bf16.mxu0 %v9721_v21  ;;  %s7618_s10 = smov 96   ;;  %s7619_s11 = smov 112  }
  0x19   :  { %v49_v18 = vld [vmem:[%s9713_s0 + $0x48] sm:$0xff]  ;;  %v38_v19 = vld [vmem:[%s9718_s5] sm:$0xff]  ;;  %632 = vst.msk [vmem:[#allocation2 + $0x40] sm:$0xff] %vm58_vm0, %v9720_v23  ;;  %634 = vst.msk [vmem:[#allocation2 + $0x50] sm:$0xff] %vm58_vm0, %v9720_v23  ;;  %s7620_s12 = smov [#allocation6]  }
  0x1a   :  { %6548 = vmatmul.mubr.msk.f32.vlgmr.msra.gmra.mrb[0].mxu0 %vm58_vm0, %v41_v4  ;;  %6563 = vmatmul.mubr.msk.f32.vlgmr.msra.gmra.mrb[0].mxu1 %vm58_vm0, %v51_v6  ;;  %v39_v20 = vld [vmem:[%s9718_s5 + $0x8] sm:$0xff]  ;;  %636 = vst.msk [vmem:[#allocation2 + $0x60] sm:$0xff] %vm58_vm0, %v9720_v23  ;;  %638 = vst.msk [vmem:[#allocation2 + $0x70] sm:$0xff] %vm58_vm0, %v9720_v23  ;;  %s5822_s13 = sshll.u32 %s7620_s12, 4  ;;  %s5823_s13 = int_to_ptr.vmem [resolvable:$true] %s5822_s13 }
  0x1b   :  { %6550 = vmatprep.mubr.msk.f32.mxu0 %vm58_vm0, %v42_v7  ;;  %6565 = vmatprep.mubr.msk.f32.mxu1 %vm58_vm0, %v52_v8  ;;  %v7748_v22 = vpack.c.bf16 %v39_v20, %v38_v19  ;;  %640 = vst.msk [vmem:[#allocation2 + $0x80] sm:$0xff] %vm58_vm0, %v9720_v23  ;;  %642 = vst.msk [vmem:[#allocation2 + $0x90] sm:$0xff] %vm58_vm0, %v9720_v23  ;;  %s7581_s14 = scalar_lea.vmem %s5823_s13, 256  ;;  %p7586_p9 = scmp.lt.s32.totalorder %s5823_s13, %s5823_s13 }
  0x1c   :  { %644 = vst.msk [vmem:[#allocation2 + $0xa0] sm:$0xff] %vm58_vm0, %v9720_v23  ;;  %646 = vst.msk [vmem:[#allocation2 + $0xb0] sm:$0xff] %vm58_vm0, %v9720_v23  ;;  %p7582_p8 = scmp.ne.s32.totalorder %s5823_s13, %s7581_s14  ;;  %p7587_p10 = scmp.lt.s32.totalorder %s7581_s14, %s7581_s14 }
  0x1d   :  { %648 = vst.msk [vmem:[#allocation2 + $0xc0] sm:$0xff] %vm58_vm0, %v9720_v23  ;;  %650 = vst.msk [vmem:[#allocation2 + $0xd0] sm:$0xff] %vm58_vm0, %v9720_v23  ;;  %7102 = vmatpush3.bf16.msra.mxu1 %v7748_v22  ;;  %7141 = vmatpush3.bf16.msra.mxu0 %v7748_v22 }
  0x1e   :  { %6551 = vmatmul.mubr.msk.f32.gmra.mrb[2].mxu0 %vm58_vm0, %v43_v9  ;;  %6566 = vmatmul.mubr.msk.f32.gmra.mrb[2].mxu1 %vm58_vm0, %v53_v10  ;;  %652 = vst.msk [vmem:[#allocation2 + $0xe0] sm:$0xff] %vm58_vm0, %v9720_v23  ;;  %654 = vst.msk [vmem:[#allocation2 + $0xf0] sm:$0xff] %vm58_vm0, %v9720_v23  ;;  %p7588_p11 = por %p7587_p10, %p7586_p9 }
  0x1f   :  { %6553 = vmatprep.mubr.msk.f32.mxu0 %vm58_vm0, %v44_v11  ;;  %6568 = vmatprep.mubr.msk.f32.mxu1 %vm58_vm0, %v54_v12  ;;  %656 = vst.msk [vmem:[#allocation2 + $0x100] sm:$0xff] %vm58_vm0, %v9720_v23  ;;  %658 = vst.msk [vmem:[#allocation2 + $0x110] sm:$0xff] %vm58_vm0, %v9720_v23 }
  0x20   :  { %660 = vst.msk [vmem:[#allocation2 + $0x120] sm:$0xff] %vm58_vm0, %v9720_v23  ;;  %662 = vst.msk [vmem:[#allocation2 + $0x130] sm:$0xff] %vm58_vm0, %v9720_v23  ;;  %p7589_p12 = pnand %p7588_p11, %p7582_p8 }
  0x21   :  { %625 = vst.msk [vmem:[#allocation2 + $0x8] sm:$0x3] %vm624_vm4, %v9720_v23  ;;  %627 = vst.msk [vmem:[#allocation2 + $0x18] sm:$0x3] %vm624_vm4, %v9720_v23 }
  0x22   :  { %6554 = vmatmul.mubr.msk.f32.gmra.mrb[4].mxu0 %vm58_vm0, %v45_v13  ;;  %6569 = vmatmul.mubr.msk.f32.gmra.mrb[4].mxu1 %vm58_vm0, %v55_v14  ;;  %629 = vst.msk [vmem:[#allocation2 + $0x28] sm:$0x3] %vm624_vm4, %v9720_v23  ;;  %631 = vst.msk [vmem:[#allocation2 + $0x38] sm:$0x3] %vm624_vm4, %v9720_v23 }
  0x23   :  { %6556 = vmatprep.mubr.msk.f32.mxu0 %vm58_vm0, %v46_v15  ;;  %6575 = vmatprep.mubr.msk.f32.mxu1 %vm7611_vm1, %v9720_v23  ;;  %633 = vst.msk [vmem:[#allocation2 + $0x48] sm:$0x3] %vm624_vm4, %v9720_v23  ;;  %635 = vst.msk [vmem:[#allocation2 + $0x58] sm:$0x3] %vm624_vm4, %v9720_v23 }
  0x24   :  { %637 = vst.msk [vmem:[#allocation2 + $0x68] sm:$0x3] %vm624_vm4, %v9720_v23  ;;  %639 = vst.msk [vmem:[#allocation2 + $0x78] sm:$0x3] %vm624_vm4, %v9720_v23 }
  0x25   :  { %641 = vst.msk [vmem:[#allocation2 + $0x88] sm:$0x3] %vm624_vm4, %v9720_v23  ;;  %643 = vst.msk [vmem:[#allocation2 + $0x98] sm:$0x3] %vm624_vm4, %v9720_v23 }
  0x26   :  { %6557 = vmatmul.mubr.msk.f32.gmra.mrb[6].mxu0 %vm58_vm0, %v47_v16  ;;  %645 = vst.msk [vmem:[#allocation2 + $0xa8] sm:$0x3] %vm624_vm4, %v9720_v23  ;;  %647 = vst.msk [vmem:[#allocation2 + $0xb8] sm:$0x3] %vm624_vm4, %v9720_v23 }
  0x27   :  { %6559 = vmatprep.mubr.msk.f32.mxu0 %vm58_vm0, %v48_v17  ;;  %649 = vst.msk [vmem:[#allocation2 + $0xc8] sm:$0x3] %vm624_vm4, %v9720_v23  ;;  %651 = vst.msk [vmem:[#allocation2 + $0xd8] sm:$0x3] %vm624_vm4, %v9720_v23 }
  0x28   :  { %653 = vst.msk [vmem:[#allocation2 + $0xe8] sm:$0x3] %vm624_vm4, %v9720_v23  ;;  %655 = vst.msk [vmem:[#allocation2 + $0xf8] sm:$0x3] %vm624_vm4, %v9720_v23 }
  0x29   :  { %657 = vst.msk [vmem:[#allocation2 + $0x108] sm:$0x3] %vm624_vm4, %v9720_v23  ;;  %659 = vst.msk [vmem:[#allocation2 + $0x118] sm:$0x3] %vm624_vm4, %v9720_v23 }
  0x2a   :  { %6560 = vmatmul.mubr.msk.f32.gmra.mrb[8].mxu0 %vm58_vm0, %v49_v18  ;;  %661 = vst.msk [vmem:[#allocation2 + $0x128] sm:$0x3] %vm624_vm4, %v9720_v23  ;;  %663 = vst.msk [vmem:[#allocation2 + $0x138] sm:$0x3] %vm624_vm4, %v9720_v23 }
  0x2b   :  { %6834 = vmatprep.mubr.msk.f32.mxu0 %vm7611_vm1, %v9720_v23 }
  0xed   :  { %v7797_v24 = vpop.f32.mrb[0].mxu0  ;;  %v7799_v25 = vpop.f32.mrb[0].mxu1 }
  0xee   :  { %v254_v26 = vsel %vm58_vm0, %v7797_v24, 0.0  ;;  %v276_v27 = vmul.f32 %v7797_v24, %v7797_v24  ;;  %v7805_v28 = vpop.f32.mrb[1].mxu0  ;;  %v7807_v29 = vpop.f32.mrb[1].mxu1 }
  0xef   :  { %v253_v30 = vsel %vm58_vm0, %v7805_v28, 0.0  ;;  %v275_v31 = vmul.f32 %v7805_v28, %v7805_v28  ;;  %v329_v9 = vmul.f32 %v7807_v29, %v7807_v29  ;;  %v308_v18 = vsel %vm58_vm0, %v7807_v29, 0.0 }
  0xf0   :  { %v284_v32 = vsel %vm58_vm0, %v276_v27, 0.0  ;;  %v255_v33 = vadd.f32 %v254_v26, %v253_v30  ;;  %v330_v30 = vmul.f32 %v7799_v25, %v7799_v25 }
  0xf1   :  { %v283_v34 = vsel %vm58_vm0, %v275_v31, 0.0  ;;  %v7815_v35 = vpop.f32.mrb[2].mxu0  ;;  %v7817_v36 = vpop.f32.mrb[2].mxu1  ;;  %v338_v31 = vsel %vm58_vm0, %v329_v9, 0.0 }
  0xf2   :  { %v285_v37 = vadd.f32 %v284_v32, %v283_v34  ;;  %v7819_v38 = vpop.f32.mrb[3].mxu0  ;;  %v7821_v39 = vpop.f32.mrb[3].mxu1  ;;  %v278_v40 = vmul.f32 %v7815_v35, %v7815_v35  ;;  %v258_v44 = vsel %vm58_vm0, %v7815_v35, 0.0 }
  0xf3   :  { %v256_v41 = vsel %vm58_vm0, %v7819_v38, 0.0  ;;  %v277_v42 = vmul.f32 %v7819_v38, %v7819_v38  ;;  %v331_v32 = vmul.f32 %v7821_v39, %v7821_v39 }
  0xf4   :  { %v257_v43 = vadd.f32 %v256_v41, %v255_v33  ;;  %v288_v52 = vsel %vm58_vm0, %v278_v40, 0.0  ;;  %v310_v40 = vsel %vm58_vm0, %v7799_v25, 0.0  ;;  %v312_v41 = vsel %vm58_vm0, %v7821_v39, 0.0 }
  0xf5   :  { %v286_v45 = vsel %vm58_vm0, %v277_v42, 0.0  ;;  %v7832_v46 = vpop.f32.mrb[4].mxu0  ;;  %v7834_v47 = vpop.f32.mrb[4].mxu1 }
  0xf6   :  { %v287_v48 = vadd.f32 %v286_v45, %v285_v37  ;;  %v7836_v49 = vpop.f32.mrb[5].mxu0  ;;  %v259_v50 = vadd.f32 %v258_v44, %v257_v43  ;;  %v7838_v51 = vpop.f32.mrb[5].mxu1  ;;  %v280_v53 = vmul.f32 %v7832_v46, %v7832_v46  ;;  %v262_v58 = vsel %vm58_vm0, %v7832_v46, 0.0 }
  0xf7   :  { %v260_v54 = vsel %vm58_vm0, %v7836_v49, 0.0  ;;  %v279_v55 = vmul.f32 %v7836_v49, %v7836_v49  ;;  %v340_v45 = vsel %vm58_vm0, %v330_v30, 0.0  ;;  %v7914_v30 = vld [vmem:[%s9715_s2] sm:$0x7] }
  0xf8   :  { %v261_v56 = vadd.f32 %v260_v54, %v259_v50  ;;  %v289_v57 = vadd.f32 %v288_v52, %v287_v48  ;;  %v292_v0 = vsel %vm58_vm0, %v280_v53, 0.0  ;;  %v332_v48 = vmul.f32 %v7817_v36, %v7817_v36 }
  0xf9   :  { %v290_v59 = vsel %vm58_vm0, %v279_v55, 0.0  ;;  %v7850_v60 = vpop.f32.mrb[6].mxu0  ;;  %v342_v50 = vsel %vm58_vm0, %v331_v32, 0.0  ;;  %v333_v52 = vmul.f32 %v7838_v51, %v7838_v51 }
  0xfa   :  { %v291_v61 = vadd.f32 %v290_v59, %v289_v57  ;;  %v7852_v62 = vpop.f32.mrb[7].mxu0  ;;  %v263_v63 = vadd.f32 %v262_v58, %v261_v56  ;;  %v282_v1 = vmul.f32 %v7850_v60, %v7850_v60  ;;  %v266_v6 = vsel %vm58_vm0, %v7850_v60, 0.0 }
  0xfb   :  { %v264_v2 = vsel %vm58_vm0, %v7852_v62, 0.0  ;;  %v281_v3 = vmul.f32 %v7852_v62, %v7852_v62  ;;  %v314_v56 = vsel %vm58_vm0, %v7817_v36, 0.0  ;;  %v316_v57 = vsel %vm58_vm0, %v7838_v51, 0.0 }
  0xfc   :  { %v265_v4 = vadd.f32 %v264_v2, %v263_v63  ;;  %v293_v5 = vadd.f32 %v292_v0, %v291_v61  ;;  %v296_v15 = vsel %vm58_vm0, %v282_v1, 0.0  ;;  %v344_v63 = vsel %vm58_vm0, %v332_v48, 0.0 }
  0xfd   :  { %v294_v7 = vsel %vm58_vm0, %v281_v3, 0.0  ;;  %v7864_v8 = vpop.f32.mrb[8].mxu0  ;;  %v334_v0 = vmul.f32 %v7834_v47, %v7834_v47  ;;  %v346_v1 = vsel %vm58_vm0, %v333_v52, 0.0 }
  0xfe   :  { %v267_v10 = vadd.f32 %v266_v6, %v265_v4  ;;  %v295_v11 = vadd.f32 %v294_v7, %v293_v5  ;;  %v306_v12 = vsel %vm58_vm0, %v7864_v8, 0.0  ;;  %v328_v13 = vmul.f32 %v7864_v8, %v7864_v8  ;;  %v7872_v14 = vpop.f32.mrb[9].mxu0 }
  0xff   :  { %v305_v16 = vsel %vm58_vm0, %v7872_v14, 0.0  ;;  %v327_v17 = vmul.f32 %v7872_v14, %v7872_v14  ;;  %v318_v5 = vsel %vm58_vm0, %v7834_v47, 0.0 }
 0x100   :  { %v297_v19 = vadd.f32 %v296_v15, %v295_v11  ;;  %v336_v20 = vsel %vm58_vm0, %v328_v13, 0.0  ;;  %v307_v26 = vadd.f32 %v306_v12, %v305_v16  ;;  %v268_v33 = vrot.slane %v267_v10, 4 }
 0x101   :  { %v335_v27 = vsel %vm58_vm0, %v327_v17, 0.0  ;;  %v360_v11 = vlaneseq }
 0x102   :  { %v337_v34 = vadd.f32 %v336_v20, %v335_v27  ;;  %v309_v37 = vadd.f32 %v308_v18, %v307_v26  ;;  %v298_v42 = vrot.slane %v297_v19, 4  ;;  %v269_v53 = vadd.f32 %v268_v33, %v267_v10 }
 0x103   :  { %v348_v10 = vsel %vm58_vm0, %v334_v0, 0.0 }
 0x104   :  { %v339_v43 = vadd.f32 %v338_v31, %v337_v34  ;;  %v311_v44 = vadd.f32 %v310_v40, %v309_v37  ;;  %v299_v58 = vadd.f32 %v298_v42, %v297_v19  ;;  %v270_v2 = vrot.slane %v269_v53, 2 }
 0x105   :  { %v7909_v19 = vshrl.u32 %v360_v11, 7  ;;  %v365_v37 = vmul.f32 2.0, %v7914_v30 }
 0x106   :  { %v313_v54 = vadd.f32 %v312_v41, %v311_v44  ;;  %v341_v55 = vadd.f32 %v340_v45, %v339_v43  ;;  %v300_v6 = vrot.slane %v299_v58, 2  ;;  %v271_v12 = vadd.f32 %v270_v2, %v269_v53 }
 0x107   :  { %v7917_v34 = vsub.s32 0, %v7909_v19 }
 0x108   :  { %v343_v59 = vadd.f32 %v342_v50, %v341_v55  ;;  %v315_v61 = vadd.f32 %v314_v56, %v313_v54  ;;  %v301_v16 = vadd.f32 %v300_v6, %v299_v58  ;;  %v272_v20 = vrot.slane %v271_v12, 1  ;;  %v718_v6 = vld [vmem:[#allocation3 + $0x18] sm:$0xff] }
 0x109   :  { %v369_v48 = vrot.slane %v365_v37, %v7917_v34  ;;  %v372_v50 = vmul.f32 %v7914_v30, %v7914_v30 }
 0x10a   :  { %v317_v3 = vadd.f32 %v316_v57, %v315_v61  ;;  %v345_v4 = vadd.f32 %v344_v63, %v343_v59  ;;  %v302_v31 = vrot.slane %v301_v16, 1  ;;  %v273_v40 = vadd.f32 %v272_v20, %v271_v12  ;;  %v700_v12 = vld [vmem:[#allocation2 + $0x1] sm:$0xff] }
 0x10b   :  { %v376_v59 = vrot.slane %v372_v50, %v7917_v34  ;;  %v363_v63 = vrot.slane %v7914_v30, %v7917_v34 }
 0x10c   :  { %v319_v7 = vadd.f32 %v318_v5, %v317_v3  ;;  %v347_v9 = vadd.f32 %v346_v1, %v345_v4  ;;  %v303_v43 = vadd.f32 %v302_v31, %v301_v16  ;;  %v274_v52 = vmul.f32 0.015625, %v273_v40  ;;  %v717_v5 = vld [vmem:[#allocation3 + $0x10] sm:$0xff] }
 0x10e   :  { %v320_v13 = vrot.slane %v319_v7, 4  ;;  %v349_v15 = vadd.f32 %v348_v10, %v347_v9  ;;  %v304_v55 = vmul.f32 0.015625, %v303_v43  ;;  %v7103_v9 = vpack.c.bf16 %v718_v6, %v717_v5  ;;  %v699_v10 = vld [vmem:[#allocation3 + $0x8] sm:$0xff] }
 0x110   :  { %v321_v17 = vadd.f32 %v320_v13, %v319_v7  ;;  %v350_v18 = vrot.slane %v349_v15, 4  ;;  %v698_v7 = vld [vmem:[#allocation3] sm:$0xff]  ;;  %7104 = vmatprep.subr.bf16.mxu1 %v7103_v9 }
 0x111   :  { %v7970_v11 = vpack.c.bf16 %v699_v10, %v698_v7 }
 0x112   :  { %v322_v26 = vrot.slane %v321_v17, 2  ;;  %v351_v27 = vadd.f32 %v350_v18, %v349_v15 }
 0x114   :  { %v323_v32 = vadd.f32 %v322_v26, %v321_v17  ;;  %v352_v33 = vrot.slane %v351_v27, 2 }
 0x116   :  { %v324_v41 = vrot.slane %v323_v32, 1  ;;  %v353_v42 = vadd.f32 %v352_v33, %v351_v27  ;;  %v7975_v27 = vsub.s32 1, %v7909_v19  ;;  %v7983_v33 = vsub.s32 3, %v7909_v19 }
 0x118   :  { %v325_v44 = vadd.f32 %v324_v41, %v323_v32  ;;  %v354_v45 = vrot.slane %v353_v42, 1  ;;  %v467_v31 = vrot.slane %v7914_v30, %v7975_v27  ;;  %v7980_v32 = vsub.s32 2, %v7909_v19 }
 0x11a   :  { %v326_v53 = vmul.f32 0.015625, %v325_v44  ;;  %v355_v54 = vadd.f32 %v354_v45, %v353_v42  ;;  %v477_v41 = vrot.slane %v7914_v30, %v7980_v32 }
 0x11c   :  { %v356_v56 = vmul.f32 0.015625, %v355_v54  ;;  %v358_v57 = vsel %vm357_vm2, %v274_v52, %v326_v53 }
 0x11d   :  { %v370_v58 = vmul.f32 %v369_v48, %v358_v57  ;;  %v364_v2 = vadd.f32 %v363_v63, %v358_v57 }
 0x11e   :  { %v359_v61 = vsel %vm357_vm2, %v304_v55, %v356_v56 }
 0x11f   :  { %v371_v0 = vadd.f32 %v370_v58, %v359_v61 }
 0x121   :  { %v377_v1 = vadd.f32 %v376_v59, %v371_v0 }
 0x123   :  { %v379_v3 = vrot.slane %v377_v1, 6 }
 0x125   :  { %v382_v4 = vsel %vm381_vm3, %v364_v2, %v379_v3 }
 0x126   :  { %6576 = vmatmul.mubr.msk.f32.vlgmr.msra.gmra.mrb[6].mxu1 %vm58_vm0, %v382_v4 }
 0x127   :  { %7106 = vmatpush3.bf16.msra.mxu1 %v7103_v9  ;;  %6582 = vmatprep.mubr.msk.f32.mxu1 %vm58_vm0, %v700_v12 }
 0x128   :  { %7108 = vmatprep.subr.bf16.mxu1 %v7970_v11 }
 0x1f9   :  { %v452_v13 = vpop.f32.mrb[6].mxu1 }
 0x1fa   :  { %v456_v15 = vmul.f32 %v452_v13, %v452_v13  ;;  %v6577_v16 = vpop.f32.mrb[7].mxu1  ;;  %v469_v42 = vsub.f32 %v363_v63, %v452_v13 }
 0x1fc   :  { %v458_v17 = vrot.slane %v456_v15, 6 }
 0x1fe   :  { %v460_v18 = vsub.f32 %v452_v13, %v458_v17 }
 0x200   :  { %v461_v20 = vmax.f32 %v460_v18, 0.0 }
 0x202   :  { %v462_v26 = vadd.f32 1e-05, %v461_v20 }
 0x204   :  { %7453 = vrsqrt.f32 %v462_v26 }
 0x20e   :  { %v7454_v37 = vpop.eup %7453 }
 0x20f   :  { %v468_v40 = vmul.f32 %v7454_v37, %v467_v31 }
 0x211   :  { %v471_v43 = vrot.slane %v468_v40, 2  ;;  %v482_v44 = vrot.slane %v468_v40, %v7980_v32  ;;  %v554_v45 = vrot.slane %v468_v40, %v7983_v33 }
 0x213   :  { %v473_v48 = vmul.f32 %v471_v43, %v469_v42  ;;  %v483_v50 = vmul.f32 %v482_v44, %v7805_v28  ;;  %v484_v52 = vmul.f32 %v7797_v24, %v482_v44  ;;  %v485_v53 = vmul.f32 %v482_v44, %v7819_v38 }
 0x214   :  { %v486_v19 = vmul.f32 %v7815_v35, %v482_v44  ;;  %v487_v54 = vmul.f32 %v482_v44, %v7836_v49  ;;  %v488_v55 = vmul.f32 %v7832_v46, %v482_v44  ;;  %v489_v30 = vmul.f32 %v482_v44, %v7852_v62 }
 0x215   :  { %v478_v56 = vadd.f32 %v477_v41, %v473_v48  ;;  %v490_v57 = vmul.f32 %v7850_v60, %v482_v44  ;;  %v555_v58 = vmul.f32 %v554_v45, %v7872_v14  ;;  %v556_v59 = vmul.f32 %v7864_v8, %v554_v45 }
 0x216   :  { %v557_v28 = vmul.f32 %v554_v45, %v7807_v29  ;;  %v558_v24 = vmul.f32 %v7799_v25, %v554_v45  ;;  %v559_v38 = vmul.f32 %v554_v45, %v7821_v39  ;;  %v560_v35 = vmul.f32 %v7817_v36, %v554_v45 }
 0x217   :  { %v494_v49 = vrot.slane %v478_v56, %v7917_v34  ;;  %v561_v46 = vmul.f32 %v554_v45, %v7838_v51  ;;  %v562_v62 = vmul.f32 %v7834_v47, %v554_v45  ;;  %v566_v60 = vrot.slane %v478_v56, %v7975_v27 }
 0x219   :  { %v8007_v61 = vadd.f32 %v494_v49, %v483_v50  ;;  %v8009_v14 = vadd.f32 %v494_v49, %v484_v52  ;;  %v8011_v8 = vadd.f32 %v494_v49, %v485_v53  ;;  %v8013_v29 = vadd.f32 %v494_v49, %v486_v19 }
 0x21a   :  { %v8015_v25 = vadd.f32 %v494_v49, %v487_v54  ;;  %v8017_v39 = vadd.f32 %v494_v49, %v488_v55  ;;  %v8019_v36 = vadd.f32 %v494_v49, %v489_v30  ;;  %v8021_v63 = vadd.f32 %v494_v49, %v490_v57 }
 0x21b   :  { %v511_v47 = vmin.f32 %v8007_v61, 0.0  ;;  %v512_v51 = vmin.f32 %v8009_v14, 0.0  ;;  %v513_v0 = vmin.f32 %v8011_v8, 0.0  ;;  %v514_v1 = vmin.f32 %v8013_v29, 0.0 }
 0x21c   :  { %v515_v2 = vmin.f32 %v8015_v25, 0.0  ;;  %v516_v3 = vmin.f32 %v8017_v39, 0.0  ;;  %v517_v4 = vmin.f32 %v8019_v36, 0.0  ;;  %v518_v5 = vmin.f32 %v8021_v63, 0.0 }
 0x21d   :  { %v519_v6 = vmul.f32 1.442695, %v511_v47  ;;  %v521_v7 = vmul.f32 1.442695, %v512_v51  ;;  %v8031_v9 = vadd.f32 %v566_v60, %v555_v58  ;;  %v523_v10 = vmul.f32 1.442695, %v513_v0 }
 0x21e   :  { %v525_v12 = vmul.f32 1.442695, %v514_v1  ;;  %v527_v13 = vmul.f32 1.442695, %v515_v2  ;;  %v8033_v15 = vadd.f32 %v566_v60, %v556_v59  ;;  %v529_v16 = vmul.f32 1.442695, %v516_v3 }
 0x21f   :  { %7455 = vpow2.f32 %v519_v6  ;;  %v531_v17 = vmul.f32 1.442695, %v517_v4  ;;  %v533_v18 = vmul.f32 1.442695, %v518_v5  ;;  %v8035_v20 = vadd.f32 %v566_v60, %v557_v28 }
 0x220   :  { %7457 = vpow2.f32 %v521_v7  ;;  %v8037_v26 = vadd.f32 %v566_v60, %v558_v24  ;;  %v8039_v31 = vadd.f32 %v566_v60, %v559_v38  ;;  %v8041_v37 = vadd.f32 %v566_v60, %v560_v35  ;;  %v1122_v7 = vld [vmem:[#allocation3 + $0x20] sm:$0xff] }
 0x221   :  { %7459 = vpow2.f32 %v523_v10  ;;  %v8043_v40 = vadd.f32 %v566_v60, %v561_v46  ;;  %v8045_v41 = vadd.f32 %v566_v60, %v562_v62  ;;  %v583_v42 = vmin.f32 %v8031_v9, 0.0  ;;  %v1123_v10 = vld [vmem:[#allocation3 + $0x28] sm:$0xff] }
 0x222   :  { %7461 = vpow2.f32 %v525_v12  ;;  %v584_v43 = vmin.f32 %v8033_v15, 0.0  ;;  %v585_v44 = vmin.f32 %v8035_v20, 0.0  ;;  %v586_v45 = vmin.f32 %v8037_v26, 0.0 }
 0x223   :  { %7463 = vpow2.f32 %v527_v13  ;;  %v587_v48 = vmin.f32 %v8039_v31, 0.0  ;;  %v588_v50 = vmin.f32 %v8041_v37, 0.0  ;;  %v591_v52 = vmul.f32 1.442695, %v583_v42 }
 0x224   :  { %7465 = vpow2.f32 %v529_v16  ;;  %v589_v53 = vmin.f32 %v8043_v40, 0.0  ;;  %v593_v19 = vmul.f32 1.442695, %v584_v43  ;;  %v595_v54 = vmul.f32 1.442695, %v585_v44 }
 0x225   :  { %7467 = vpow2.f32 %v531_v17  ;;  %v590_v55 = vmin.f32 %v8045_v41, 0.0  ;;  %v597_v30 = vmul.f32 1.442695, %v586_v45  ;;  %v599_v56 = vmul.f32 1.442695, %v587_v48 }
 0x226   :  { %7469 = vpow2.f32 %v533_v18  ;;  %v601_v57 = vmul.f32 1.442695, %v588_v50  ;;  %v603_v59 = vmul.f32 1.442695, %v589_v53  ;;  %vm503_vm5 = vcmp.gt.f32.partialorder %v8007_v61, 0.0 }
 0x227   :  { %7471 = vpow2.f32 %v591_v52  ;;  %v605_v24 = vmul.f32 1.442695, %v590_v55  ;;  %vm504_vm6 = vcmp.gt.f32.partialorder %v8009_v14, 0.0  ;;  %vm505_vm7 = vcmp.gt.f32.partialorder %v8011_v8, 0.0 }
 0x228   :  { %7473 = vpow2.f32 %v593_v19  ;;  %vm506_vm8 = vcmp.gt.f32.partialorder %v8013_v29, 0.0  ;;  %vm507_vm9 = vcmp.gt.f32.partialorder %v8015_v25, 0.0  ;;  %vm508_vm10 = vcmp.gt.f32.partialorder %v8017_v39, 0.0 }
 0x229   :  { %v7456_v58 = vpop.eup %7455  ;;  %7475 = vpow2.f32 %v595_v54  ;;  %vm509_vm11 = vcmp.gt.f32.partialorder %v8019_v36, 0.0  ;;  %vm510_vm12 = vcmp.gt.f32.partialorder %v8021_v63, 0.0  ;;  %vm575_vm13 = vcmp.gt.f32.partialorder %v8031_v9, 0.0 }
 0x22a   :  { %v7458_v28 = vpop.eup %7457  ;;  %7477 = vpow2.f32 %v597_v30  ;;  %v5851_v38 = vadd.f32 -1.0, %v7456_v58  ;;  %v8099_v42 = vpack.c.bf16 %v1123_v10, %v1122_v7  ;;  %vm576_vm14 = vcmp.gt.f32.partialorder %v8033_v15, 0.0 }
 0x22b   :  { %v7460_v35 = vpop.eup %7459  ;;  %7479 = vpow2.f32 %v599_v56  ;;  %v5852_v49 = vadd.f32 -1.0, %v7458_v28  ;;  %vm577_vm15 = vcmp.gt.f32.partialorder %v8035_v20, 0.0  ;;  %vm578_vm4 = vcmp.gt.f32.partialorder %v8037_v26, 0.0 }
 0x22c   :  { %v7462_v46 = vpop.eup %7461  ;;  %7481 = vpow2.f32 %v601_v57  ;;  %v8057_v62 = vsel %vm503_vm5, %v8007_v61, %v5851_v38  ;;  %v5853_v60 = vadd.f32 -1.0, %v7460_v35  ;;  %vm579_vm5 = vcmp.gt.f32.partialorder %v8039_v31, 0.0 }
 0x22d   :  { %v7464_v47 = vpop.eup %7463  ;;  %7483 = vpow2.f32 %v603_v59  ;;  %665 = vst.msk [vmem:[#allocation2 + $0x11] sm:$0xff] %vm58_vm0, %v8057_v62  ;;  %v8063_v51 = vsel %vm504_vm6, %v8009_v14, %v5852_v49  ;;  %v5854_v0 = vadd.f32 -1.0, %v7462_v46  ;;  %vm580_vm6 = vcmp.gt.f32.partialorder %v8041_v37, 0.0 }
 0x22e   :  { %v7466_v1 = vpop.eup %7465  ;;  %7485 = vpow2.f32 %v605_v24  ;;  %666 = vst.msk [vmem:[#allocation2 + $0x21] sm:$0xff] %vm58_vm0, %v8063_v51  ;;  %v8069_v61 = vsel %vm505_vm7, %v8011_v8, %v5853_v60  ;;  %v5855_v2 = vadd.f32 -1.0, %v7464_v47  ;;  %vm581_vm7 = vcmp.gt.f32.partialorder %v8043_v40, 0.0 }
 0x22f   :  { %v7468_v3 = vpop.eup %7467  ;;  %667 = vst.msk [vmem:[#allocation2 + $0x31] sm:$0xff] %vm58_vm0, %v8069_v61  ;;  %v8075_v14 = vsel %vm506_vm8, %v8013_v29, %v5854_v0  ;;  %v5856_v4 = vadd.f32 -1.0, %v7466_v1  ;;  %vm582_vm8 = vcmp.gt.f32.partialorder %v8045_v41, 0.0  ;;  %v682_v0 = vld [vmem:[#allocation2] sm:$0xff] }
 0x230   :  { %v7470_v5 = vpop.eup %7469  ;;  %668 = vst.msk [vmem:[#allocation2 + $0x41] sm:$0xff] %vm58_vm0, %v8075_v14  ;;  %v8081_v8 = vsel %vm507_vm9, %v8015_v25, %v5855_v2  ;;  %v5857_v6 = vadd.f32 -1.0, %v7468_v3  ;;  %v1350_v2 = vld [vmem:[#allocation3 + $0x30] sm:$0xff]  ;;  %v1351_v3 = vld [vmem:[#allocation3 + $0x38] sm:$0xff] }
 0x231   :  { %v7472_v12 = vpop.eup %7471  ;;  %669 = vst.msk [vmem:[#allocation2 + $0x51] sm:$0xff] %vm58_vm0, %v8081_v8  ;;  %v8087_v29 = vsel %vm508_vm10, %v8017_v39, %v5856_v4  ;;  %v5858_v13 = vadd.f32 -1.0, %v7470_v5  ;;  %v7115_v4 = vpack.c.bf16 %v1351_v3, %v1350_v2  ;;  %v1113_v3 = vld [vmem:[#allocation2 + $0xa2] sm:$0xff] }
 0x232   :  { %v7474_v16 = vpop.eup %7473  ;;  %670 = vst.msk [vmem:[#allocation2 + $0x61] sm:$0xff] %vm58_vm0, %v8087_v29  ;;  %v8093_v25 = vsel %vm509_vm11, %v8019_v36, %v5857_v6  ;;  %v5859_v17 = vadd.f32 -1.0, %v7472_v12 }
 0x233   :  { %v7476_v18 = vpop.eup %7475  ;;  %671 = vst.msk [vmem:[#allocation2 + $0x71] sm:$0xff] %vm58_vm0, %v8093_v25  ;;  %v5860_v39 = vadd.f32 -1.0, %v7474_v16  ;;  %v8102_v43 = vsel %vm510_vm12, %v8021_v63, %v5858_v13  ;;  %v690_v16 = vld [vmem:[#allocation2 + $0xa0] sm:$0xff] }
 0x234   :  { %v7478_v44 = vpop.eup %7477  ;;  %v8104_v45 = vld [vmem:[#allocation2 + $0x11] sm:$0xff]  ;;  %v8107_v36 = vsel %vm575_vm13, %v8031_v9, %v5859_v17  ;;  %v5861_v48 = vadd.f32 -1.0, %v7476_v18  ;;  %672 = vst.msk [vmem:[#allocation2 + $0x81] sm:$0xff] %vm58_vm0, %v8102_v43 }
 0x235   :  { %v7480_v50 = vpop.eup %7479  ;;  %6583 = vmatmul.mubr.msk.f32.vlgmr.msra.gmra.mrb[8].mxu1 %vm58_vm0, %v8104_v45  ;;  %v8114_v52 = vld [vmem:[#allocation2 + $0x21] sm:$0xff]  ;;  %673 = vst.msk [vmem:[#allocation2 + $0xb1] sm:$0xff] %vm58_vm0, %v8107_v36  ;;  %v8119_v63 = vsel %vm576_vm14, %v8033_v15, %v5860_v39  ;;  %v5862_v9 = vadd.f32 -1.0, %v7478_v44  ;;  %v8213_v5 = vld [vmem:[#allocation2 + $0x10] sm:$0xff] }
 0x236   :  { %v7482_v53 = vpop.eup %7481  ;;  %7110 = vmatpush3.bf16.msra.mxu1 %v7970_v11  ;;  %6585 = vmatprep.mubr.msk.f32.mxu1 %vm58_vm0, %v8114_v52  ;;  %674 = vst.msk [vmem:[#allocation2 + $0xc1] sm:$0xff] %vm58_vm0, %v8119_v63  ;;  %v8128_v19 = vsel %vm577_vm15, %v8035_v20, %v5861_v48  ;;  %v5863_v54 = vadd.f32 -1.0, %v7480_v50  ;;  %v8138_v56 = vld [vmem:[#allocation2 + $0x31] sm:$0xff]  ;;  %v8217_v6 = vld [vmem:[#allocation2 + $0x20] sm:$0xff] }
 0x237   :  { %v7484_v15 = vpop.eup %7483  ;;  %675 = vst.msk [vmem:[#allocation2 + $0xd1] sm:$0xff] %vm58_vm0, %v8128_v19  ;;  %v8134_v55 = vsel %vm578_vm4, %v8037_v26, %v5862_v9  ;;  %v5864_v11 = vadd.f32 -1.0, %v7482_v53  ;;  %7112 = vmatprep.subr.bf16.mxu1 %v8099_v42  ;;  %v8148_v26 = vld [vmem:[#allocation2 + $0x41] sm:$0xff]  ;;  %v8222_v7 = vld [vmem:[#allocation2 + $0x30] sm:$0xff] }
 0x238   :  { %v7486_v30 = vpop.eup %7485  ;;  %676 = vst.msk [vmem:[#allocation2 + $0xe1] sm:$0xff] %vm58_vm0, %v8134_v55  ;;  %v8143_v20 = vsel %vm579_vm5, %v8039_v31, %v5863_v54  ;;  %v5865_v57 = vadd.f32 -1.0, %v7484_v15  ;;  %v8169_v28 = vld [vmem:[#allocation2 + $0x51] sm:$0xff]  ;;  %v8226_v10 = vld [vmem:[#allocation2 + $0x40] sm:$0xff]  ;;  %v1579_v15 = vld [vmem:[#allocation3 + $0x48] sm:$0xff] }
 0x239   :  { %6586 = vmatmul.mubr.msk.f32.gmra.mrb[10].mxu1 %vm58_vm0, %v8138_v56  ;;  %677 = vst.msk [vmem:[#allocation2 + $0xf1] sm:$0xff] %vm58_vm0, %v8143_v20  ;;  %v8153_v58 = vsel %vm580_vm6, %v8041_v37, %v5864_v11  ;;  %v5866_v59 = vadd.f32 -1.0, %v7486_v30  ;;  %v8175_v24 = vld [vmem:[#allocation2 + $0x61] sm:$0xff]  ;;  %v8230_v12 = vld [vmem:[#allocation2 + $0x50] sm:$0xff] }
 0x23a   :  { %9725 = vst [vmem:[#allocation9_spill] sm:$0xff] %v8153_v58  ;;  %6588 = vmatprep.mubr.msk.f32.mxu1 %vm58_vm0, %v8148_v26  ;;  %678 = vst.msk [vmem:[#allocation2 + $0x101] sm:$0xff] %vm58_vm0, %v8153_v58  ;;  %v8161_v31 = vsel %vm581_vm7, %v8043_v40, %v5865_v57  ;;  %v708_v40 = vld [vmem:[#allocation2 + $0xa1] sm:$0xff]  ;;  %v8179_v38 = vld [vmem:[#allocation2 + $0x71] sm:$0xff] }
 0x23b   :  { %9726 = vst [vmem:[#allocation10_spill] sm:$0xff] %v8161_v31  ;;  %679 = vst.msk [vmem:[#allocation2 + $0x111] sm:$0xff] %vm58_vm0, %v8161_v31  ;;  %v8167_v37 = vsel %vm582_vm8, %v8045_v41, %v5866_v59  ;;  %v8234_v13 = vld [vmem:[#allocation2 + $0x60] sm:$0xff]  ;;  %v8238_v17 = vld [vmem:[#allocation2 + $0x70] sm:$0xff] }
 0x23c   :  { %9727 = vst [vmem:[#allocation11_spill] sm:$0xff] %v8167_v37  ;;  %680 = vst.msk [vmem:[#allocation2 + $0x121] sm:$0xff] %vm58_vm0, %v8167_v37  ;;  %v8184_v41 = vld [vmem:[#allocation2 + $0xb1] sm:$0xff]  ;;  %v1105_v9 = vld [vmem:[#allocation2 + $0x2] sm:$0xff] }
 0x23d   :  { %6589 = vmatmul.mubr.msk.f32.gmra.mrb[12].mxu1 %vm58_vm0, %v8169_v28  ;;  %v8188_v35 = vld [vmem:[#allocation2 + $0xc1] sm:$0xff]  ;;  %v8243_v18 = vld [vmem:[#allocation2 + $0xb0] sm:$0xff]  ;;  %v1807_v31 = vld [vmem:[#allocation3 + $0x58] sm:$0xff] }
 0x23e   :  { %6591 = vmatprep.mubr.msk.f32.mxu1 %vm58_vm0, %v8175_v24  ;;  %v8192_v49 = vld [vmem:[#allocation2 + $0xd1] sm:$0xff]  ;;  %v8247_v39 = vld [vmem:[#allocation2 + $0xc0] sm:$0xff] }
 0x23f   :  { %v8196_v46 = vld [vmem:[#allocation2 + $0xe1] sm:$0xff]  ;;  %v8272_v30 = vld [vmem:[#allocation2 + $0x12] sm:$0xff] }
 0x240   :  { %v8200_v60 = vld [vmem:[#allocation2 + $0xf1] sm:$0xff]  ;;  %v8255_v44 = vld [vmem:[#allocation2 + $0xe0] sm:$0xff] }
 0x241   :  { %6592 = vmatmul.mubr.msk.f32.gmra.mrb[14].mxu1 %vm58_vm0, %v8179_v38  ;;  %v8204_v47 = vld [vmem:[#allocation2 + $0x101] sm:$0xff]  ;;  %v8259_v48 = vld [vmem:[#allocation2 + $0xf0] sm:$0xff] }
 0x242   :  { %6594 = vmatprep.mubr.msk.f32.mxu1 %vm58_vm0, %v708_v40  ;;  %v8208_v1 = vld [vmem:[#allocation2 + $0x111] sm:$0xff]  ;;  %v8263_v50 = vld [vmem:[#allocation2 + $0x100] sm:$0xff] }
 0x243   :  { %v8267_v53 = vld [vmem:[#allocation2 + $0x110] sm:$0xff]  ;;  %v1578_v54 = vld [vmem:[#allocation3 + $0x40] sm:$0xff] }
 0x244   :  { %v7119_v11 = vpack.c.bf16 %v1579_v15, %v1578_v54  ;;  %v8276_v57 = vld [vmem:[#allocation2 + $0x22] sm:$0xff]  ;;  %v8280_v59 = vld [vmem:[#allocation2 + $0x32] sm:$0xff] }
 0x245   :  { %6595 = vmatmul.mubr.msk.f32.gmra.mrb[16].mxu1 %vm58_vm0, %v8184_v41  ;;  %v8284_v40 = vld [vmem:[#allocation2 + $0x42] sm:$0xff]  ;;  %v8309_v54 = vld [vmem:[#allocation2 + $0xd2] sm:$0xff] }
 0x246   :  { %6597 = vmatprep.mubr.msk.f32.mxu1 %vm58_vm0, %v8188_v35  ;;  %v8292_v2 = vld [vmem:[#allocation2 + $0x62] sm:$0xff]  ;;  %v8325_v21 = vld [vmem:[#allocation2 + $0x112] sm:$0xff] }
 0x247   :  { %v8313_v15 = vld [vmem:[#allocation2 + $0xe2] sm:$0xff]  ;;  %v1806_v37 = vld [vmem:[#allocation3 + $0x50] sm:$0xff] }
 0x248   :  { %v8321_v23 = vld [vmem:[#allocation2 + $0x102] sm:$0xff]  ;;  %v7123_v58 = vpack.c.bf16 %v1807_v31, %v1806_v37 }
 0x249   :  { %6598 = vmatmul.mubr.msk.f32.gmra.mrb[18].mxu1 %vm58_vm0, %v8192_v49  ;;  %v8343_v31 = vld [vmem:[#allocation2 + $0x80] sm:$0xff] }
 0x24a   :  { %6600 = vmatprep.mubr.msk.f32.mxu1 %vm58_vm0, %v8196_v46  ;;  %v8361_v37 = vld [vmem:[#allocation2 + $0x120] sm:$0xff] }
 0x24d   :  { %6601 = vmatmul.mubr.msk.f32.gmra.mrb[20].mxu1 %vm58_vm0, %v8200_v60 }
 0x24e   :  { %6603 = vmatprep.mubr.msk.f32.mxu1 %vm58_vm0, %v8204_v47 }
 0x251   :  { %6604 = vmatmul.mubr.msk.f32.gmra.mrb[22].mxu1 %vm58_vm0, %v8208_v1 }
 0x252   :  { %6610 = vmatprep.mubr.msk.f32.mxu1 %vm58_vm0, %v682_v0  ;;  %v8288_v0 = vld [vmem:[#allocation2 + $0x52] sm:$0xff] }
 0x255   :  { %6611 = vmatmul.mubr.msk.f32.vlgmr.msra.gmra.mrb[8].mxu1 %vm58_vm0, %v8213_v5 }
 0x256   :  { %7114 = vmatpush3.bf16.msra.mxu1 %v8099_v42  ;;  %6613 = vmatprep.mubr.msk.f32.mxu1 %vm58_vm0, %v8217_v6  ;;  %v8251_v42 = vld [vmem:[#allocation2 + $0xd0] sm:$0xff] }
 0x257   :  { %7116 = vmatprep.subr.bf16.mxu1 %v7115_v4 }
 0x259   :  { %6614 = vmatmul.mubr.msk.f32.gmra.mrb[10].mxu1 %vm58_vm0, %v8222_v7 }
 0x25a   :  { %6616 = vmatprep.mubr.msk.f32.mxu1 %vm58_vm0, %v8226_v10 }
 0x25d   :  { %6617 = vmatmul.mubr.msk.f32.gmra.mrb[12].mxu1 %vm58_vm0, %v8230_v12 }
 0x25e   :  { %6619 = vmatprep.mubr.msk.f32.mxu1 %vm58_vm0, %v8234_v13 }
 0x261   :  { %6620 = vmatmul.mubr.msk.f32.gmra.mrb[14].mxu1 %vm58_vm0, %v8238_v17 }
 0x262   :  { %6622 = vmatprep.mubr.msk.f32.mxu1 %vm58_vm0, %v690_v16  ;;  %v8301_v16 = vld [vmem:[#allocation2 + $0xb2] sm:$0xff] }
 0x265   :  { %6623 = vmatmul.mubr.msk.f32.gmra.mrb[16].mxu1 %vm58_vm0, %v8243_v18 }
 0x266   :  { %6625 = vmatprep.mubr.msk.f32.mxu1 %vm58_vm0, %v8247_v39 }
 0x269   :  { %6626 = vmatmul.mubr.msk.f32.gmra.mrb[18].mxu1 %vm58_vm0, %v8251_v42 }
 0x26a   :  { %6628 = vmatprep.mubr.msk.f32.mxu1 %vm58_vm0, %v8255_v44 }
 0x26d   :  { %6629 = vmatmul.mubr.msk.f32.gmra.mrb[20].mxu1 %vm58_vm0, %v8259_v48 }
 0x26e   :  { %6631 = vmatprep.mubr.msk.f32.mxu1 %vm58_vm0, %v8263_v50 }
 0x271   :  { %6632 = vmatmul.mubr.msk.f32.gmra.mrb[22].mxu1 %vm58_vm0, %v8267_v53 }
 0x272   :  { %6638 = vmatprep.mubr.msk.f32.mxu1 %vm58_vm0, %v1105_v9  ;;  %v8305_v9 = vld [vmem:[#allocation2 + $0xc2] sm:$0xff] }
 0x275   :  { %6639 = vmatmul.mubr.msk.f32.vlgmr.msra.gmra.mrb[8].mxu1 %vm58_vm0, %v8272_v30 }
 0x276   :  { %7118 = vmatpush3.bf16.msra.mxu1 %v7115_v4  ;;  %6641 = vmatprep.mubr.msk.f32.mxu1 %vm58_vm0, %v8276_v57  ;;  %v8296_v4 = vld [vmem:[#allocation2 + $0x72] sm:$0xff] }
 0x277   :  { %7120 = vmatprep.subr.bf16.mxu1 %v7119_v11 }
 0x279   :  { %6642 = vmatmul.mubr.msk.f32.gmra.mrb[10].mxu1 %vm58_vm0, %v8280_v59 }
 0x27a   :  { %6644 = vmatprep.mubr.msk.f32.mxu1 %vm58_vm0, %v8284_v40 }
 0x27d   :  { %6645 = vmatmul.mubr.msk.f32.gmra.mrb[12].mxu1 %vm58_vm0, %v8288_v0 }
 0x27e   :  { %6647 = vmatprep.mubr.msk.f32.mxu1 %vm58_vm0, %v8292_v2 }
 0x281   :  { %6648 = vmatmul.mubr.msk.f32.gmra.mrb[14].mxu1 %vm58_vm0, %v8296_v4 }
 0x282   :  { %6650 = vmatprep.mubr.msk.f32.mxu1 %vm58_vm0, %v1113_v3  ;;  %v8317_v3 = vld [vmem:[#allocation2 + $0xf2] sm:$0xff] }
 0x285   :  { %6651 = vmatmul.mubr.msk.f32.gmra.mrb[16].mxu1 %vm58_vm0, %v8301_v16 }
 0x286   :  { %6653 = vmatprep.mubr.msk.f32.mxu1 %vm58_vm0, %v8305_v9 }
 0x289   :  { %6654 = vmatmul.mubr.msk.f32.gmra.mrb[18].mxu1 %vm58_vm0, %v8309_v54 }
 0x28a   :  { %6656 = vmatprep.mubr.msk.f32.mxu1 %vm58_vm0, %v8313_v15 }
 0x28d   :  { %6657 = vmatmul.mubr.msk.f32.gmra.mrb[20].mxu1 %vm58_vm0, %v8317_v3 }
 0x28e   :  { %6659 = vmatprep.mubr.msk.f32.mxu1 %vm58_vm0, %v8321_v23 }
 0x291   :  { %6660 = vmatmul.mubr.msk.f32.gmra.mrb[22].mxu1 %vm58_vm0, %v8325_v21 }
 0x292   :  { %6666 = vmatprep.mubr.msk.f32.mxu1 %vm58_vm0, %v8213_v5  ;;  %v2035_v5 = vld [vmem:[#allocation3 + $0x60] sm:$0xff] }
 0x295   :  { %6667 = vmatmul.mubr.msk.f32.vlgmr.msra.gmra.mrb[8].mxu1 %vm58_vm0, %v8217_v6 }
 0x296   :  { %7122 = vmatpush3.bf16.msra.mxu1 %v7119_v11  ;;  %6669 = vmatprep.mubr.msk.f32.mxu1 %vm58_vm0, %v8222_v7 }
 0x297   :  { %7124 = vmatprep.subr.bf16.mxu1 %v7123_v58 }
 0x299   :  { %6670 = vmatmul.mubr.msk.f32.gmra.mrb[10].mxu1 %vm58_vm0, %v8226_v10 }
 0x29a   :  { %6672 = vmatprep.mubr.msk.f32.mxu1 %vm58_vm0, %v8230_v12 }
 0x29d   :  { %6673 = vmatmul.mubr.msk.f32.gmra.mrb[12].mxu1 %vm58_vm0, %v8234_v13 }
 0x29e   :  { %6675 = vmatprep.mubr.msk.f32.mxu1 %vm58_vm0, %v8238_v17 }
 0x2a1   :  { %6676 = vmatmul.mubr.msk.f32.gmra.mrb[14].mxu1 %vm58_vm0, %v8343_v31 }
 0x2a2   :  { %6678 = vmatprep.mubr.msk.f32.mxu1 %vm58_vm0, %v8243_v18  ;;  %v2036_v18 = vld [vmem:[#allocation3 + $0x68] sm:$0xff] }
 0x2a3   :  { %v7127_v11 = vpack.c.bf16 %v2036_v18, %v2035_v5  ;;  %v2264_v5 = vld [vmem:[#allocation3 + $0x78] sm:$0xff] }
 0x2a5   :  { %6679 = vmatmul.mubr.msk.f32.gmra.mrb[16].mxu1 %vm58_vm0, %v8247_v39 }
 0x2a6   :  { %6681 = vmatprep.mubr.msk.f32.mxu1 %vm58_vm0, %v8251_v42 }
 0x2a9   :  { %6682 = vmatmul.mubr.msk.f32.gmra.mrb[18].mxu1 %vm58_vm0, %v8255_v44 }
 0x2aa   :  { %6684 = vmatprep.mubr.msk.f32.mxu1 %vm58_vm0, %v8259_v48 }
 0x2ad   :  { %6685 = vmatmul.mubr.msk.f32.gmra.mrb[20].mxu1 %vm58_vm0, %v8263_v50 }
 0x2ae   :  { %6687 = vmatprep.mubr.msk.f32.mxu1 %vm58_vm0, %v8267_v53 }
 0x2b1   :  { %6688 = vmatmul.mubr.msk.f32.gmra.mrb[22].mxu1 %vm58_vm0, %v8361_v37 }
 0x2b2   :  { %6694 = vmatprep.mubr.msk.f32.mxu1 %vm58_vm0, %v8104_v45  ;;  %v8379_v45 = vld [vmem:[#allocation2 + $0x81] sm:$0xff] }
 0x2b5   :  { %6695 = vmatmul.mubr.msk.f32.vlgmr.msra.gmra.mrb[8].mxu1 %vm58_vm0, %v8114_v52 }
 0x2b6   :  { %7126 = vmatpush3.bf16.msra.mxu1 %v7123_v58  ;;  %6697 = vmatprep.mubr.msk.f32.mxu1 %vm58_vm0, %v8138_v56  ;;  %v8397_v58 = vld [vmem:[#allocation2 + $0x121] sm:$0xff] }
 0x2b7   :  { %7128 = vmatprep.subr.bf16.mxu1 %v7127_v11 }
 0x2b9   :  { %6698 = vmatmul.mubr.msk.f32.gmra.mrb[10].mxu1 %vm58_vm0, %v8148_v26 }
 0x2ba   :  { %6700 = vmatprep.mubr.msk.f32.mxu1 %vm58_vm0, %v8169_v28 }
 0x2bd   :  { %6701 = vmatmul.mubr.msk.f32.gmra.mrb[12].mxu1 %vm58_vm0, %v8175_v24 }
 0x2be   :  { %6703 = vmatprep.mubr.msk.f32.mxu1 %vm58_vm0, %v8179_v38 }
 0x2c1   :  { %6704 = vmatmul.mubr.msk.f32.gmra.mrb[14].mxu1 %vm58_vm0, %v8379_v45 }
 0x2c2   :  { %6706 = vmatprep.mubr.msk.f32.mxu1 %vm58_vm0, %v8184_v41  ;;  %v2263_v41 = vld [vmem:[#allocation3 + $0x70] sm:$0xff] }
 0x2c3   :  { %v7131_v18 = vpack.c.bf16 %v2264_v5, %v2263_v41  ;;  %v2492_v41 = vld [vmem:[#allocation3 + $0x88] sm:$0xff] }
 0x2c5   :  { %6707 = vmatmul.mubr.msk.f32.gmra.mrb[16].mxu1 %vm58_vm0, %v8188_v35 }
 0x2c6   :  { %6709 = vmatprep.mubr.msk.f32.mxu1 %vm58_vm0, %v8192_v49 }
 0x2c9   :  { %6710 = vmatmul.mubr.msk.f32.gmra.mrb[18].mxu1 %vm58_vm0, %v8196_v46 }
 0x2ca   :  { %6712 = vmatprep.mubr.msk.f32.mxu1 %vm58_vm0, %v8200_v60 }
 0x2cd   :  { %6713 = vmatmul.mubr.msk.f32.gmra.mrb[20].mxu1 %vm58_vm0, %v8204_v47 }
 0x2ce   :  { %6715 = vmatprep.mubr.msk.f32.mxu1 %vm58_vm0, %v8208_v1 }
 0x2d1   :  { %6716 = vmatmul.mubr.msk.f32.gmra.mrb[22].mxu1 %vm58_vm0, %v8397_v58 }
 0x2d2   :  { %6722 = vmatprep.mubr.msk.f32.mxu1 %vm58_vm0, %v8272_v30  ;;  %v1796_v30 = vld [vmem:[#allocation2 + $0x82] sm:$0xff] }
 0x2d5   :  { %6723 = vmatmul.mubr.msk.f32.vlgmr.msra.gmra.mrb[8].mxu1 %vm58_vm0, %v8276_v57 }
 0x2d6   :  { %7130 = vmatpush3.bf16.msra.mxu1 %v7127_v11  ;;  %6725 = vmatprep.mubr.msk.f32.mxu1 %vm58_vm0, %v8280_v59  ;;  %v1804_v11 = vld [vmem:[#allocation2 + $0x122] sm:$0xff] }
 0x2d7   :  { %7132 = vmatprep.subr.bf16.mxu1 %v7131_v18 }
 0x2d9   :  { %6726 = vmatmul.mubr.msk.f32.gmra.mrb[10].mxu1 %vm58_vm0, %v8284_v40 }
 0x2da   :  { %6728 = vmatprep.mubr.msk.f32.mxu1 %vm58_vm0, %v8288_v0 }
 0x2dd   :  { %6729 = vmatmul.mubr.msk.f32.gmra.mrb[12].mxu1 %vm58_vm0, %v8292_v2 }
 0x2de   :  { %6731 = vmatprep.mubr.msk.f32.mxu1 %vm58_vm0, %v8296_v4 }
 0x2e1   :  { %6732 = vmatmul.mubr.msk.f32.gmra.mrb[14].mxu1 %vm58_vm0, %v1796_v30 }
 0x2e2   :  { %6734 = vmatprep.mubr.msk.f32.mxu1 %vm58_vm0, %v8301_v16  ;;  %v2491_v16 = vld [vmem:[#allocation3 + $0x80] sm:$0xff] }
 0x2e3   :  { %v7135_v5 = vpack.c.bf16 %v2492_v41, %v2491_v16 }
 0x2e5   :  { %6735 = vmatmul.mubr.msk.f32.gmra.mrb[16].mxu1 %vm58_vm0, %v8305_v9 }
 0x2e6   :  { %6737 = vmatprep.mubr.msk.f32.mxu1 %vm58_vm0, %v8309_v54 }
 0x2e9   :  { %6738 = vmatmul.mubr.msk.f32.gmra.mrb[18].mxu1 %vm58_vm0, %v8313_v15 }
 0x2ea   :  { %6740 = vmatprep.mubr.msk.f32.mxu1 %vm58_vm0, %v8317_v3 }
 0x2ed   :  { %6741 = vmatmul.mubr.msk.f32.gmra.mrb[20].mxu1 %vm58_vm0, %v8321_v23 }
 0x2ee   :  { %6743 = vmatprep.mubr.msk.f32.mxu1 %vm58_vm0, %v8325_v21 }
 0x2f1   :  { %6744 = vmatmul.mubr.msk.f32.gmra.mrb[22].mxu1 %vm58_vm0, %v1804_v11 }
 0x2f2   :  { %6750 = vmatprep.mubr.msk.f32.mxu1 %vm58_vm0, %v8217_v6  ;;  %v2025_v6 = vld [vmem:[#allocation2 + $0x90] sm:$0xff] }
 0x2f5   :  { %6751 = vmatmul.mubr.msk.f32.vlgmr.msra.gmra.mrb[8].mxu1 %vm58_vm0, %v8222_v7  ;;  %v2033_v7 = vld [vmem:[#allocation2 + $0x130] sm:$0xff] }
 0x2f6   :  { %7134 = vmatpush3.bf16.msra.mxu1 %v7131_v18  ;;  %6753 = vmatprep.mubr.msk.f32.mxu1 %vm58_vm0, %v8226_v10  ;;  %v9728_v10 = vmov 0.0|0.0  }
 0x2f7   :  { %7136 = vmatprep.subr.bf16.mxu1 %v7135_v5 }
 0x2f9   :  { %6754 = vmatmul.mubr.msk.f32.gmra.mrb[10].mxu1 %vm58_vm0, %v8230_v12 }
 0x2fa   :  { %6756 = vmatprep.mubr.msk.f32.mxu1 %vm58_vm0, %v8234_v13 }
 0x2fd   :  { %6757 = vmatmul.mubr.msk.f32.gmra.mrb[12].mxu1 %vm58_vm0, %v8238_v17 }
 0x2fe   :  { %6759 = vmatprep.mubr.msk.f32.mxu1 %vm58_vm0, %v8343_v31 }
 0x301   :  { %6760 = vmatmul.mubr.msk.f32.gmra.mrb[14].mxu1 %vm58_vm0, %v2025_v6 }
 0x302   :  { %6762 = vmatprep.mubr.msk.f32.mxu1 %vm58_vm0, %v8247_v39 }
 0x305   :  { %6763 = vmatmul.mubr.msk.f32.gmra.mrb[16].mxu1 %vm58_vm0, %v8251_v42 }
 0x306   :  { %6765 = vmatprep.mubr.msk.f32.mxu1 %vm58_vm0, %v8255_v44 }
 0x309   :  { %6766 = vmatmul.mubr.msk.f32.gmra.mrb[18].mxu1 %vm58_vm0, %v8259_v48 }
 0x30a   :  { %6768 = vmatprep.mubr.msk.f32.mxu1 %vm58_vm0, %v8263_v50 }
 0x30d   :  { %6769 = vmatmul.mubr.msk.f32.gmra.mrb[20].mxu1 %vm58_vm0, %v8267_v53 }
 0x30e   :  { %6771 = vmatprep.mubr.msk.f32.mxu1 %vm58_vm0, %v8361_v37 }
 0x311   :  { %6772 = vmatmul.mubr.msk.f32.gmra.mrb[22].mxu1 %vm58_vm0, %v2033_v7 }
 0x312   :  { %6778 = vmatprep.mubr.msk.f32.mxu1 %vm58_vm0, %v8114_v52  ;;  %v2253_v52 = vld [vmem:[#allocation2 + $0x91] sm:$0xff] }
 0x315   :  { %6779 = vmatmul.mubr.msk.f32.vlgmr.msra.gmra.mrb[8].mxu1 %vm58_vm0, %v8138_v56  ;;  %v2261_v56 = vld [vmem:[#allocation2 + $0x131] sm:$0xff] }
 0x316   :  { %7138 = vmatpush3.bf16.msra.mxu1 %v7135_v5  ;;  %6781 = vmatprep.mubr.msk.f32.mxu1 %vm58_vm0, %v8148_v26  ;;  %v2481_v26 = vld [vmem:[#allocation2 + $0x92] sm:$0xff] }
 0x317   :  { %7178 = vmatprep.subr.bf16.mxu1 %v9728_v10 }
 0x319   :  { %6782 = vmatmul.mubr.msk.f32.gmra.mrb[10].mxu1 %vm58_vm0, %v8169_v28  ;;  %v9729_v28 = vmov 0.0  }
 0x31a   :  { %6784 = vmatprep.mubr.msk.f32.mxu1 %vm58_vm0, %v8175_v24 }
 0x31d   :  { %6785 = vmatmul.mubr.msk.f32.gmra.mrb[12].mxu1 %vm58_vm0, %v8179_v38 }
 0x31e   :  { %6787 = vmatprep.mubr.msk.f32.mxu1 %vm58_vm0, %v8379_v45 }
 0x321   :  { %6788 = vmatmul.mubr.msk.f32.gmra.mrb[14].mxu1 %vm58_vm0, %v2253_v52 }
 0x322   :  { %6790 = vmatprep.mubr.msk.f32.mxu1 %vm58_vm0, %v8188_v35 }
 0x325   :  { %6791 = vmatmul.mubr.msk.f32.gmra.mrb[16].mxu1 %vm58_vm0, %v8192_v49 }
 0x326   :  { %6793 = vmatprep.mubr.msk.f32.mxu1 %vm58_vm0, %v8196_v46 }
 0x329   :  { %6794 = vmatmul.mubr.msk.f32.gmra.mrb[18].mxu1 %vm58_vm0, %v8200_v60 }
 0x32a   :  { %6796 = vmatprep.mubr.msk.f32.mxu1 %vm58_vm0, %v8204_v47 }
 0x32d   :  { %6797 = vmatmul.mubr.msk.f32.gmra.mrb[20].mxu1 %vm58_vm0, %v8208_v1 }
 0x32e   :  { %6799 = vmatprep.mubr.msk.f32.mxu1 %vm58_vm0, %v8397_v58 }
 0x331   :  { %6800 = vmatmul.mubr.msk.f32.gmra.mrb[22].mxu1 %vm58_vm0, %v2261_v56 }
 0x332   :  { %6806 = vmatprep.mubr.msk.f32.mxu1 %vm58_vm0, %v8276_v57 }
 0x335   :  { %6807 = vmatmul.mubr.msk.f32.vlgmr.msra.gmra.mrb[8].mxu1 %vm58_vm0, %v8280_v59 }
 0x336   :  { %6809 = vmatprep.mubr.msk.f32.mxu1 %vm58_vm0, %v8284_v40  ;;  %7180 = vmatpush3.bf16.msra.mxu1 %v7748_v22  ;;  %v2489_v22 = vld [vmem:[#allocation2 + $0x132] sm:$0xff] }
 0x339   :  { %6810 = vmatmul.mubr.msk.f32.gmra.mrb[10].mxu1 %vm58_vm0, %v8288_v0 }
 0x33a   :  { %6812 = vmatprep.mubr.msk.f32.mxu1 %vm58_vm0, %v8292_v2 }
 0x33d   :  { %6813 = vmatmul.mubr.msk.f32.gmra.mrb[12].mxu1 %vm58_vm0, %v8296_v4 }
 0x33e   :  { %6815 = vmatprep.mubr.msk.f32.mxu1 %vm58_vm0, %v1796_v30 }
 0x341   :  { %6816 = vmatmul.mubr.msk.f32.gmra.mrb[14].mxu1 %vm58_vm0, %v2481_v26 }
 0x342   :  { %6818 = vmatprep.mubr.msk.f32.mxu1 %vm58_vm0, %v8305_v9 }
 0x345   :  { %6819 = vmatmul.mubr.msk.f32.gmra.mrb[16].mxu1 %vm58_vm0, %v8309_v54 }
 0x346   :  { %6821 = vmatprep.mubr.msk.f32.mxu1 %vm58_vm0, %v8313_v15 }
 0x349   :  { %6822 = vmatmul.mubr.msk.f32.gmra.mrb[18].mxu1 %vm58_vm0, %v8317_v3 }
 0x34a   :  { %6824 = vmatprep.mubr.msk.f32.mxu1 %vm58_vm0, %v8321_v23 }
 0x34d   :  { %6825 = vmatmul.mubr.msk.f32.gmra.mrb[20].mxu1 %vm58_vm0, %v8325_v21 }
 0x34e   :  { %6827 = vmatprep.mubr.msk.f32.mxu1 %vm58_vm0, %v1804_v11 }
 0x351   :  { %6828 = vmatmul.mubr.msk.f32.gmra.mrb[22].mxu1 %vm58_vm0, %v2489_v22 }
 0x352   :  { %7093 = vmatprep.mubr.msk.f32.mxu1 %vm7611_vm1, %v9729_v28 }
 0x408   :  { %v8523_v24 = vpop.f32.mrb[8].mxu1 }
 0x409   :  { %v2703_v38 = vsel %vm58_vm0, %v8523_v24, 0.0  ;;  %v2725_v35 = vmul.f32 %v8523_v24, %v8523_v24  ;;  %v8529_v23 = vpop.f32.mrb[9].mxu1 }
 0x40a   :  { %v2702_v21 = vsel %vm58_vm0, %v8529_v23, 0.0  ;;  %v2724_v49 = vmul.f32 %v8529_v23, %v8529_v23 }
 0x40b   :  { %v2733_v46 = vsel %vm58_vm0, %v2725_v35, 0.0  ;;  %v2704_v60 = vadd.f32 %v2703_v38, %v2702_v21 }
 0x40c   :  { %v2732_v47 = vsel %vm58_vm0, %v2724_v49, 0.0  ;;  %v8537_v1 = vpop.f32.mrb[10].mxu1 }
 0x40d   :  { %v2734_v12 = vadd.f32 %v2733_v46, %v2732_v47  ;;  %v8539_v13 = vpop.f32.mrb[11].mxu1  ;;  %v2727_v17 = vmul.f32 %v8537_v1, %v8537_v1  ;;  %v2707_v48 = vsel %vm58_vm0, %v8537_v1, 0.0 }
 0x40e   :  { %v2705_v39 = vsel %vm58_vm0, %v8539_v13, 0.0  ;;  %v2726_v42 = vmul.f32 %v8539_v13, %v8539_v13 }
 0x40f   :  { %v2706_v44 = vadd.f32 %v2705_v39, %v2704_v60  ;;  %v2737_v0 = vsel %vm58_vm0, %v2727_v17, 0.0 }
 0x410   :  { %v2735_v50 = vsel %vm58_vm0, %v2726_v42, 0.0  ;;  %v8550_v53 = vpop.f32.mrb[12].mxu1 }
 0x411   :  { %v2736_v57 = vadd.f32 %v2735_v50, %v2734_v12  ;;  %v8552_v59 = vpop.f32.mrb[13].mxu1  ;;  %v2708_v40 = vadd.f32 %v2707_v48, %v2706_v44  ;;  %v2729_v2 = vmul.f32 %v8550_v53, %v8550_v53  ;;  %v2711_v3 = vsel %vm58_vm0, %v8550_v53, 0.0 }
 0x412   :  { %v2709_v4 = vsel %vm58_vm0, %v8552_v59, 0.0  ;;  %v2728_v9 = vmul.f32 %v8552_v59, %v8552_v59 }
 0x413   :  { %v2710_v54 = vadd.f32 %v2709_v4, %v2708_v40  ;;  %v2738_v15 = vadd.f32 %v2737_v0, %v2736_v57  ;;  %v2741_v30 = vsel %vm58_vm0, %v2729_v2, 0.0 }
 0x414   :  { %v2739_v31 = vsel %vm58_vm0, %v2728_v9, 0.0  ;;  %v8564_v37 = vpop.f32.mrb[14].mxu1 }
 0x415   :  { %v2740_v45 = vadd.f32 %v2739_v31, %v2738_v15  ;;  %v8566_v58 = vpop.f32.mrb[15].mxu1  ;;  %v2712_v18 = vadd.f32 %v2711_v3, %v2710_v54  ;;  %v2731_v11 = vmul.f32 %v8564_v37, %v8564_v37  ;;  %v2715_v7 = vsel %vm58_vm0, %v8564_v37, 0.0 }
 0x416   :  { %v2713_v16 = vsel %vm58_vm0, %v8566_v58, 0.0  ;;  %v2730_v41 = vmul.f32 %v8566_v58, %v8566_v58 }
 0x417   :  { %v2714_v5 = vadd.f32 %v2713_v16, %v2712_v18  ;;  %v2742_v6 = vadd.f32 %v2741_v30, %v2740_v45  ;;  %v2745_v35 = vsel %vm58_vm0, %v2731_v11, 0.0 }
 0x418   :  { %v2743_v10 = vsel %vm58_vm0, %v2730_v41, 0.0  ;;  %v8578_v52 = vpop.f32.mrb[16].mxu1 }
 0x419   :  { %v2716_v56 = vadd.f32 %v2715_v7, %v2714_v5  ;;  %v2744_v26 = vadd.f32 %v2743_v10, %v2742_v6  ;;  %v2755_v22 = vsel %vm58_vm0, %v8578_v52, 0.0  ;;  %v2777_v28 = vmul.f32 %v8578_v52, %v8578_v52  ;;  %v8584_v38 = vpop.f32.mrb[17].mxu1 }
 0x41a   :  { %v2754_v21 = vsel %vm58_vm0, %v8584_v38, 0.0  ;;  %v2776_v49 = vmul.f32 %v8584_v38, %v8584_v38 }
 0x41b   :  { %v2746_v46 = vadd.f32 %v2745_v35, %v2744_v26  ;;  %v2785_v60 = vsel %vm58_vm0, %v2777_v28, 0.0  ;;  %v2756_v47 = vadd.f32 %v2755_v22, %v2754_v21  ;;  %v2717_v40 = vrot.slane %v2716_v56, 4 }
 0x41c   :  { %v2784_v12 = vsel %vm58_vm0, %v2776_v49, 0.0  ;;  %v8593_v17 = vpop.f32.mrb[18].mxu1 }
 0x41d   :  { %v2786_v39 = vadd.f32 %v2785_v60, %v2784_v12  ;;  %v8595_v42 = vpop.f32.mrb[19].mxu1  ;;  %v2779_v44 = vmul.f32 %v8593_v17, %v8593_v17  ;;  %v2747_v4 = vrot.slane %v2746_v46, 4  ;;  %v2759_v9 = vsel %vm58_vm0, %v8593_v17, 0.0 }
 0x41e   :  { %v2757_v48 = vsel %vm58_vm0, %v8595_v42, 0.0  ;;  %v2778_v50 = vmul.f32 %v8595_v42, %v8595_v42  ;;  %v2718_v16 = vadd.f32 %v2717_v40, %v2716_v56 }
 0x41f   :  { %v2758_v57 = vadd.f32 %v2757_v48, %v2756_v47  ;;  %v2789_v54 = vsel %vm58_vm0, %v2779_v44, 0.0  ;;  %v2748_v7 = vadd.f32 %v2747_v4, %v2746_v46 }
 0x420   :  { %v2787_v0 = vsel %vm58_vm0, %v2778_v50, 0.0  ;;  %v8604_v2 = vpop.f32.mrb[20].mxu1  ;;  %v2719_v46 = vrot.slane %v2718_v16, 2 }
 0x421   :  { %v2788_v15 = vadd.f32 %v2787_v0, %v2786_v39  ;;  %v8609_v3 = vpop.f32.mrb[21].mxu1  ;;  %v2781_v31 = vmul.f32 %v8604_v2, %v8604_v2  ;;  %v2760_v45 = vadd.f32 %v2759_v9, %v2758_v57  ;;  %v2763_v10 = vsel %vm58_vm0, %v8604_v2, 0.0 }
 0x422   :  { %v2761_v18 = vsel %vm58_vm0, %v8609_v3, 0.0  ;;  %v2780_v30 = vmul.f32 %v8609_v3, %v8609_v3  ;;  %v2749_v39 = vrot.slane %v2748_v7, 2  ;;  %v2720_v0 = vadd.f32 %v2719_v46, %v2718_v16 }
 0x423   :  { %v2790_v11 = vadd.f32 %v2789_v54, %v2788_v15  ;;  %v2762_v41 = vadd.f32 %v2761_v18, %v2760_v45  ;;  %v2793_v26 = vsel %vm58_vm0, %v2781_v31, 0.0 }
 0x424   :  { %v2791_v5 = vsel %vm58_vm0, %v2780_v30, 0.0  ;;  %v8618_v6 = vpop.f32.mrb[22].mxu1  ;;  %v2750_v9 = vadd.f32 %v2749_v39, %v2748_v7  ;;  %v2721_v45 = vrot.slane %v2720_v0, 1  ;;  %v8638_v30 = vld [vmem:[%s9717_s4] sm:$0x7] }
 0x425   :  { %v2792_v22 = vadd.f32 %v2791_v5, %v2790_v11  ;;  %v8623_v28 = vpop.f32.mrb[23].mxu1  ;;  %v2783_v35 = vmul.f32 %v8618_v6, %v8618_v6  ;;  %v2764_v21 = vadd.f32 %v2763_v10, %v2762_v41  ;;  %v2767_v44 = vsel %vm58_vm0, %v8618_v6, 0.0 }
 0x426   :  { %v2765_v56 = vsel %vm58_vm0, %v8623_v28, 0.0  ;;  %v2782_v49 = vmul.f32 %v8623_v28, %v8623_v28  ;;  %v2751_v11 = vrot.slane %v2750_v9, 1 }
 0x427   :  { %v2794_v60 = vadd.f32 %v2793_v26, %v2792_v22  ;;  %v2766_v47 = vadd.f32 %v2765_v56, %v2764_v21  ;;  %v2797_v50 = vsel %vm58_vm0, %v2783_v35, 0.0  ;;  %v2813_v26 = vmul.f32 2.0, %v8638_v30 }
 0x428   :  { %v2795_v12 = vsel %vm58_vm0, %v2782_v49, 0.0  ;;  %v2722_v22 = vadd.f32 %v2721_v45, %v2720_v0  ;;  %v2752_v35 = vadd.f32 %v2751_v11, %v2750_v9  ;;  %v3125_v45 = vld [vmem:[#allocation3 + $0xa8] sm:$0xff] }
 0x429   :  { %v2796_v48 = vadd.f32 %v2795_v12, %v2794_v60  ;;  %v2768_v57 = vadd.f32 %v2767_v44, %v2766_v47  ;;  %v2817_v49 = vrot.slane %v2813_v26, %v7917_v34  ;;  %v2820_v60 = vmul.f32 %v8638_v30, %v8638_v30 }
 0x42a   :  { %v2723_v46 = vmul.f32 0.015625, %v2722_v22  ;;  %v2753_v12 = vmul.f32 0.015625, %v2752_v35 }
 0x42b   :  { %v2798_v40 = vadd.f32 %v2797_v50, %v2796_v48  ;;  %v2769_v4 = vrot.slane %v2768_v57, 4 }
 0x42d   :  { %v2799_v54 = vrot.slane %v2798_v40, 4  ;;  %v2770_v15 = vadd.f32 %v2769_v4, %v2768_v57  ;;  %v2824_v57 = vrot.slane %v2820_v60, %v7917_v34 }
 0x42f   :  { %v2800_v31 = vadd.f32 %v2799_v54, %v2798_v40  ;;  %v2771_v18 = vrot.slane %v2770_v15, 2  ;;  %v2811_v40 = vrot.slane %v8638_v30, %v7917_v34 }
 0x431   :  { %v2801_v41 = vrot.slane %v2800_v31, 2  ;;  %v2772_v5 = vadd.f32 %v2771_v18, %v2770_v15  ;;  %v3107_v18 = vld [vmem:[#allocation2 + $0x1] sm:$0xff] }
 0x433   :  { %v2802_v10 = vadd.f32 %v2801_v41, %v2800_v31  ;;  %v2773_v16 = vrot.slane %v2772_v5, 1  ;;  %v3124_v31 = vld [vmem:[#allocation3 + $0xa0] sm:$0xff]  ;;  %v3105_v41 = vld [vmem:[#allocation3 + $0x90] sm:$0xff] }
 0x434   :  { %v7142_v11 = vpack.c.bf16 %v3125_v45, %v3124_v31 }
 0x435   :  { %v2803_v7 = vrot.slane %v2802_v10, 1  ;;  %v2774_v21 = vadd.f32 %v2773_v16, %v2772_v5  ;;  %v3106_v5 = vld [vmem:[#allocation3 + $0x98] sm:$0xff] }
 0x436   :  { %7143 = vmatprep.subr.bf16.mxu0 %v7142_v11 }
 0x437   :  { %v2804_v56 = vadd.f32 %v2803_v7, %v2802_v10  ;;  %v2775_v47 = vmul.f32 0.015625, %v2774_v21  ;;  %v8652_v10 = vpack.c.bf16 %v3106_v5, %v3105_v41 }
 0x439   :  { %v2805_v39 = vmul.f32 0.015625, %v2804_v56  ;;  %v2806_v44 = vsel %vm357_vm2, %v2723_v46, %v2775_v47  ;;  %v2924_v47 = vrot.slane %v8638_v30, %v7980_v32 }
 0x43a   :  { %v2818_v50 = vmul.f32 %v2817_v49, %v2806_v44  ;;  %v2812_v9 = vadd.f32 %v2811_v40, %v2806_v44  ;;  %v2914_v49 = vrot.slane %v8638_v30, %v7975_v27 }
 0x43b   :  { %v2807_v48 = vsel %vm357_vm2, %v2753_v12, %v2805_v39 }
 0x43c   :  { %v2819_v0 = vadd.f32 %v2818_v50, %v2807_v48 }
 0x43e   :  { %v2825_v4 = vadd.f32 %v2824_v57, %v2819_v0 }
 0x440   :  { %v2827_v54 = vrot.slane %v2825_v4, 6 }
 0x442   :  { %v2829_v15 = vsel %vm381_vm3, %v2812_v9, %v2827_v54 }
 0x443   :  { %6835 = vmatmul.mubr.msk.f32.vlgmr.msra.gmra.mrb[10].mxu0 %vm58_vm0, %v2829_v15 }
 0x444   :  { %6841 = vmatprep.mubr.msk.f32.mxu0 %vm58_vm0, %v3107_v18  ;;  %7145 = vmatpush3.bf16.msra.mxu0 %v7142_v11 }
 0x445   :  { %7147 = vmatprep.subr.bf16.mxu0 %v8652_v10 }
 0x516   :  { %v2899_v26 = vpop.f32.mrb[10].mxu0 }
 0x517   :  { %v2903_v22 = vmul.f32 %v2899_v26, %v2899_v26  ;;  %v6836_v16 = vpop.f32.mrb[11].mxu0  ;;  %v2916_v12 = vsub.f32 %v2811_v40, %v2899_v26 }
 0x519   :  { %v2905_v35 = vrot.slane %v2903_v22, 6 }
 0x51b   :  { %v2907_v7 = vsub.f32 %v2899_v26, %v2905_v35 }
 0x51d   :  { %v2908_v21 = vmax.f32 %v2907_v7, 0.0 }
 0x51f   :  { %v2909_v56 = vadd.f32 1e-05, %v2908_v21 }
 0x521   :  { %7487 = vrsqrt.f32 %v2909_v56 }
 0x52b   :  { %v7488_v60 = vpop.eup %7487 }
 0x52c   :  { %v2915_v46 = vmul.f32 %v7488_v60, %v2914_v49 }
 0x52e   :  { %v2918_v39 = vrot.slane %v2915_v46, 2  ;;  %v2929_v44 = vrot.slane %v2915_v46, %v7980_v32  ;;  %v3001_v48 = vrot.slane %v2915_v46, %v7983_v33 }
 0x530   :  { %v2920_v50 = vmul.f32 %v2918_v39, %v2916_v12  ;;  %v2930_v57 = vmul.f32 %v2929_v44, %v8529_v23  ;;  %v2931_v0 = vmul.f32 %v8523_v24, %v2929_v44  ;;  %v2932_v4 = vmul.f32 %v2929_v44, %v8539_v13 }
 0x531   :  { %v2933_v9 = vmul.f32 %v8537_v1, %v2929_v44  ;;  %v2934_v54 = vmul.f32 %v2929_v44, %v8552_v59  ;;  %v2935_v15 = vmul.f32 %v8550_v53, %v2929_v44  ;;  %v2936_v30 = vmul.f32 %v2929_v44, %v8566_v58 }
 0x532   :  { %v2925_v40 = vadd.f32 %v2924_v47, %v2920_v50  ;;  %v2937_v31 = vmul.f32 %v8564_v37, %v2929_v44  ;;  %v3002_v45 = vmul.f32 %v3001_v48, %v8584_v38  ;;  %v3003_v18 = vmul.f32 %v8578_v52, %v3001_v48 }
 0x533   :  { %v3004_v23 = vmul.f32 %v3001_v48, %v8595_v42  ;;  %v3005_v24 = vmul.f32 %v8593_v17, %v3001_v48  ;;  %v3006_v13 = vmul.f32 %v3001_v48, %v8609_v3  ;;  %v3007_v1 = vmul.f32 %v8604_v2, %v3001_v48 }
 0x534   :  { %v2941_v59 = vrot.slane %v2925_v40, %v7917_v34  ;;  %v3008_v53 = vmul.f32 %v3001_v48, %v8623_v28  ;;  %v3009_v58 = vmul.f32 %v8618_v6, %v3001_v48  ;;  %v3013_v28 = vrot.slane %v2925_v40, %v7975_v27 }
 0x536   :  { %v8678_v11 = vadd.f32 %v2941_v59, %v2930_v57  ;;  %v8680_v37 = vadd.f32 %v2941_v59, %v2931_v0  ;;  %v8682_v38 = vadd.f32 %v2941_v59, %v2932_v4  ;;  %v8684_v52 = vadd.f32 %v2941_v59, %v2933_v9 }
 0x537   :  { %v8686_v42 = vadd.f32 %v2941_v59, %v2934_v54  ;;  %v8688_v17 = vadd.f32 %v2941_v59, %v2935_v15  ;;  %v8690_v3 = vadd.f32 %v2941_v59, %v2936_v30  ;;  %v8692_v2 = vadd.f32 %v2941_v59, %v2937_v31 }
 0x538   :  { %v2958_v6 = vmin.f32 %v8678_v11, 0.0  ;;  %v2959_v41 = vmin.f32 %v8680_v37, 0.0  ;;  %v2960_v5 = vmin.f32 %v8682_v38, 0.0  ;;  %v2961_v26 = vmin.f32 %v8684_v52, 0.0 }
 0x539   :  { %v2962_v22 = vmin.f32 %v8686_v42, 0.0  ;;  %v2963_v16 = vmin.f32 %v8688_v17, 0.0  ;;  %v2964_v35 = vmin.f32 %v8690_v3, 0.0  ;;  %v8702_v49 = vadd.f32 %v3013_v28, %v3002_v45 }
 0x53a   :  { %v2966_v7 = vmul.f32 1.442695, %v2958_v6  ;;  %v2968_v21 = vmul.f32 1.442695, %v2959_v41  ;;  %v2970_v56 = vmul.f32 1.442695, %v2960_v5  ;;  %v8705_v47 = vadd.f32 %v3013_v28, %v3003_v18 }
 0x53b   :  { %v2965_v60 = vmin.f32 %v8692_v2, 0.0  ;;  %v2972_v46 = vmul.f32 1.442695, %v2961_v26  ;;  %v2974_v12 = vmul.f32 1.442695, %v2962_v22  ;;  %v8707_v44 = vadd.f32 %v3013_v28, %v3004_v23 }
 0x53c   :  { %7489 = vpow2.f32 %v2966_v7  ;;  %v2976_v39 = vmul.f32 1.442695, %v2963_v16  ;;  %v8709_v48 = vadd.f32 %v3013_v28, %v3005_v24  ;;  %v8711_v50 = vadd.f32 %v3013_v28, %v3006_v13 }
 0x53d   :  { %7491 = vpow2.f32 %v2968_v21  ;;  %v8713_v57 = vadd.f32 %v3013_v28, %v3007_v1  ;;  %v2978_v0 = vmul.f32 1.442695, %v2964_v35  ;;  %v8715_v4 = vadd.f32 %v3013_v28, %v3008_v53 }
 0x53e   :  { %7493 = vpow2.f32 %v2970_v56  ;;  %v8717_v9 = vadd.f32 %v3013_v28, %v3009_v58  ;;  %v2980_v54 = vmul.f32 1.442695, %v2965_v60  ;;  %v3030_v15 = vmin.f32 %v8702_v49, 0.0 }
 0x53f   :  { %7495 = vpow2.f32 %v2972_v46  ;;  %v3031_v30 = vmin.f32 %v8705_v47, 0.0  ;;  %v3032_v40 = vmin.f32 %v8707_v44, 0.0  ;;  %v3033_v31 = vmin.f32 %v8709_v48, 0.0 }
 0x540   :  { %7497 = vpow2.f32 %v2974_v12  ;;  %v3034_v45 = vmin.f32 %v8711_v50, 0.0  ;;  %v3035_v18 = vmin.f32 %v8713_v57, 0.0  ;;  %v3036_v23 = vmin.f32 %v8715_v4, 0.0 }
 0x541   :  { %7499 = vpow2.f32 %v2976_v39  ;;  %v3038_v24 = vmul.f32 1.442695, %v3030_v15  ;;  %v3040_v13 = vmul.f32 1.442695, %v3031_v30  ;;  %v3042_v1 = vmul.f32 1.442695, %v3032_v40 }
 0x542   :  { %7501 = vpow2.f32 %v2978_v0  ;;  %v3037_v59 = vmin.f32 %v8717_v9, 0.0  ;;  %v3044_v53 = vmul.f32 1.442695, %v3033_v31  ;;  %v3046_v28 = vmul.f32 1.442695, %v3034_v45  ;;  %v3530_v45 = vld [vmem:[#allocation3 + $0xb8] sm:$0xff] }
 0x543   :  { %7503 = vpow2.f32 %v2980_v54  ;;  %vm2950_vm1 = vcmp.gt.f32.partialorder %v8678_v11, 0.0  ;;  %v3048_v5 = vmul.f32 1.442695, %v3035_v18  ;;  %vm2951_vm9 = vcmp.gt.f32.partialorder %v8680_v37, 0.0 }
 0x544   :  { %7505 = vpow2.f32 %v3038_v24  ;;  %v3050_v16 = vmul.f32 1.442695, %v3036_v23  ;;  %v3052_v56 = vmul.f32 1.442695, %v3037_v59  ;;  %vm2952_vm10 = vcmp.gt.f32.partialorder %v8682_v38, 0.0 }
 0x545   :  { %7507 = vpow2.f32 %v3040_v13  ;;  %vm2953_vm11 = vcmp.gt.f32.partialorder %v8684_v52, 0.0  ;;  %vm2954_vm12 = vcmp.gt.f32.partialorder %v8686_v42, 0.0  ;;  %vm2955_vm13 = vcmp.gt.f32.partialorder %v8688_v17, 0.0 }
 0x546   :  { %v7490_v58 = vpop.eup %7489  ;;  %7509 = vpow2.f32 %v3042_v1  ;;  %vm2956_vm14 = vcmp.gt.f32.partialorder %v8690_v3, 0.0  ;;  %vm2957_vm15 = vcmp.gt.f32.partialorder %v8692_v2, 0.0  ;;  %vm3022_vm4 = vcmp.gt.f32.partialorder %v8702_v49, 0.0 }
 0x547   :  { %v7492_v6 = vpop.eup %7491  ;;  %v6012_v41 = vadd.f32 -1.0, %v7490_v58  ;;  %7511 = vpow2.f32 %v3044_v53  ;;  %vm3023_vm5 = vcmp.gt.f32.partialorder %v8705_v47, 0.0  ;;  %vm3024_vm6 = vcmp.gt.f32.partialorder %v8707_v44, 0.0 }
 0x548   :  { %v7494_v26 = vpop.eup %7493  ;;  %v6013_v22 = vadd.f32 -1.0, %v7492_v6  ;;  %7513 = vpow2.f32 %v3046_v28  ;;  %vm3025_vm7 = vcmp.gt.f32.partialorder %v8709_v48, 0.0  ;;  %vm3026_vm8 = vcmp.gt.f32.partialorder %v8711_v50, 0.0 }
 0x549   :  { %v7496_v35 = vpop.eup %7495  ;;  %v6014_v7 = vadd.f32 -1.0, %v7494_v26  ;;  %v2990_v21 = vsel %vm2950_vm1, %v8678_v11, %v6012_v41  ;;  %7515 = vpow2.f32 %v3048_v5  ;;  %vm3027_vm1 = vcmp.gt.f32.partialorder %v8713_v57, 0.0 }
 0x54a   :  { %v7498_v60 = vpop.eup %7497  ;;  %v6015_v46 = vadd.f32 -1.0, %v7496_v35  ;;  %v2991_v12 = vsel %vm2951_vm9, %v8680_v37, %v6013_v22  ;;  %3070 = vst.msk [vmem:[#allocation2 + $0x11] sm:$0xff] %vm58_vm0, %v2990_v21  ;;  %7517 = vpow2.f32 %v3050_v16  ;;  %vm3028_vm9 = vcmp.gt.f32.partialorder %v8715_v4, 0.0 }
 0x54b   :  { %v7500_v39 = vpop.eup %7499  ;;  %v6016_v0 = vadd.f32 -1.0, %v7498_v60  ;;  %v2992_v54 = vsel %vm2952_vm10, %v8682_v38, %v6014_v7  ;;  %3071 = vst.msk [vmem:[#allocation2 + $0x21] sm:$0xff] %vm58_vm0, %v2991_v12  ;;  %7519 = vpow2.f32 %v3052_v56  ;;  %v3529_v38 = vld [vmem:[#allocation3 + $0xb0] sm:$0xff]  ;;  %vm3029_vm10 = vcmp.gt.f32.partialorder %v8717_v9, 0.0 }
 0x54c   :  { %v7502_v11 = vpop.eup %7501  ;;  %v6017_v15 = vadd.f32 -1.0, %v7500_v39  ;;  %v2993_v30 = vsel %vm2953_vm11, %v8684_v52, %v6015_v46  ;;  %3072 = vst.msk [vmem:[#allocation2 + $0x31] sm:$0xff] %vm58_vm0, %v2992_v54  ;;  %v8750_v13 = vpack.c.bf16 %v3530_v45, %v3529_v38  ;;  %v3757_v38 = vld [vmem:[#allocation3 + $0xc0] sm:$0xff]  ;;  %v3758_v45 = vld [vmem:[#allocation3 + $0xc8] sm:$0xff] }
 0x54d   :  { %v7504_v37 = vpop.eup %7503  ;;  %v6018_v40 = vadd.f32 -1.0, %v7502_v11  ;;  %v2994_v31 = vsel %vm2954_vm12, %v8686_v42, %v6016_v0  ;;  %3073 = vst.msk [vmem:[#allocation2 + $0x41] sm:$0xff] %vm58_vm0, %v2993_v30  ;;  %vm5509_vm12 = vcmask 1041409  }
 0x54e   :  { %v6019_v18 = vadd.f32 -1.0, %v7504_v37  ;;  %v2995_v23 = vsel %vm2955_vm13, %v8688_v17, %v6017_v15  ;;  %3074 = vst.msk [vmem:[#allocation2 + $0x51] sm:$0xff] %vm58_vm0, %v2994_v31  ;;  %v7506_v24 = vpop.eup %7505 }
 0x54f   :  { %v2996_v52 = vsel %vm2956_vm14, %v8690_v3, %v6018_v40  ;;  %3075 = vst.msk [vmem:[#allocation2 + $0x61] sm:$0xff] %vm58_vm0, %v2995_v23  ;;  %v7508_v1 = vpop.eup %7507  ;;  %v6020_v59 = vadd.f32 -1.0, %v7506_v24  ;;  %v3088_v40 = vld [vmem:[#allocation2] sm:$0xff] }
 0x550   :  { %v2997_v42 = vsel %vm2957_vm15, %v8692_v2, %v6019_v18  ;;  %3076 = vst.msk [vmem:[#allocation2 + $0x71] sm:$0xff] %vm58_vm0, %v2996_v52  ;;  %v7510_v53 = vpop.eup %7509  ;;  %v6021_v58 = vadd.f32 -1.0, %v7508_v1  ;;  %v7154_v18 = vpack.c.bf16 %v3758_v45, %v3757_v38  ;;  %vm5512_vm15 = vcmask 1042434  }
 0x551   :  { %3077 = vst.msk [vmem:[#allocation2 + $0x81] sm:$0xff] %vm58_vm0, %v2997_v42  ;;  %v8753_v17 = vld [vmem:[#allocation2 + $0x11] sm:$0xff]  ;;  %v7512_v2 = vpop.eup %7511  ;;  %v6022_v28 = vadd.f32 -1.0, %v7510_v53  ;;  %v3062_v6 = vsel %vm3022_vm4, %v8702_v49, %v6020_v59  ;;  %v3096_v59 = vld [vmem:[#allocation2 + $0xa0] sm:$0xff]  ;;  %vm5515_vm4 = vcmask 1043459  }
 0x552   :  { %6842 = vmatmul.mubr.msk.f32.vlgmr.msra.gmra.mrb[12].mxu0 %vm58_vm0, %v8753_v17  ;;  %v8758_v3 = vld [vmem:[#allocation2 + $0x21] sm:$0xff]  ;;  %v7514_v41 = vpop.eup %7513  ;;  %v6023_v5 = vadd.f32 -1.0, %v7512_v2  ;;  %v3063_v26 = vsel %vm3023_vm5, %v8705_v47, %v6021_v58  ;;  %3078 = vst.msk [vmem:[#allocation2 + $0xb1] sm:$0xff] %vm58_vm0, %v3062_v6  ;;  %v8837_v23 = vld [vmem:[#allocation2 + $0x10] sm:$0xff] }
 0x553   :  { %7149 = vmatpush3.bf16.msra.mxu0 %v8652_v10  ;;  %6844 = vmatprep.mubr.msk.f32.mxu0 %vm58_vm0, %v8758_v3  ;;  %v7516_v22 = vpop.eup %7515  ;;  %v6024_v16 = vadd.f32 -1.0, %v7514_v41  ;;  %v3064_v49 = vsel %vm3024_vm6, %v8707_v44, %v6022_v28  ;;  %3079 = vst.msk [vmem:[#allocation2 + $0xc1] sm:$0xff] %vm58_vm0, %v3063_v26  ;;  %v8772_v10 = vld [vmem:[#allocation2 + $0x31] sm:$0xff]  ;;  %v8841_v52 = vld [vmem:[#allocation2 + $0x20] sm:$0xff]  ;;  %vm5518_vm6 = vcmask 1044484  }
 0x554   :  { %7151 = vmatprep.subr.bf16.mxu0 %v8750_v13  ;;  %v7518_v35 = vpop.eup %7517  ;;  %v6025_v7 = vadd.f32 -1.0, %v7516_v22  ;;  %v3065_v47 = vsel %vm3025_vm7, %v8709_v48, %v6023_v5  ;;  %3080 = vst.msk [vmem:[#allocation2 + $0xd1] sm:$0xff] %vm58_vm0, %v3064_v49  ;;  %v8779_v21 = vld [vmem:[#allocation2 + $0x41] sm:$0xff]  ;;  %v8846_v24 = vld [vmem:[#allocation2 + $0x30] sm:$0xff]  ;;  %v3986_v49 = vld [vmem:[#allocation3 + $0xd8] sm:$0xff] }
 0x555   :  { %v7520_v56 = vpop.eup %7519  ;;  %v6026_v44 = vadd.f32 -1.0, %v7518_v35  ;;  %v3066_v60 = vsel %vm3026_vm8, %v8711_v50, %v6024_v16  ;;  %3081 = vst.msk [vmem:[#allocation2 + $0xe1] sm:$0xff] %vm58_vm0, %v3065_v47  ;;  %v8792_v39 = vld [vmem:[#allocation2 + $0x51] sm:$0xff]  ;;  %v8850_v42 = vld [vmem:[#allocation2 + $0x40] sm:$0xff] }
 0x556   :  { %6845 = vmatmul.mubr.msk.f32.gmra.mrb[14].mxu0 %vm58_vm0, %v8772_v10  ;;  %v6027_v48 = vadd.f32 -1.0, %v7520_v56  ;;  %v3067_v46 = vsel %vm3027_vm1, %v8713_v57, %v6025_v7  ;;  %3082 = vst.msk [vmem:[#allocation2 + $0xf1] sm:$0xff] %vm58_vm0, %v3066_v60  ;;  %v8798_v0 = vld [vmem:[#allocation2 + $0x61] sm:$0xff]  ;;  %v8854_v1 = vld [vmem:[#allocation2 + $0x50] sm:$0xff]  ;;  %vm5521_vm1 = vcmask 1045509  }
 0x557   :  { %6847 = vmatprep.mubr.msk.f32.mxu0 %vm58_vm0, %v8779_v21  ;;  %v3068_v12 = vsel %vm3028_vm9, %v8715_v4, %v6026_v44  ;;  %3083 = vst.msk [vmem:[#allocation2 + $0x101] sm:$0xff] %vm58_vm0, %v3067_v46  ;;  %v3115_v57 = vld [vmem:[#allocation2 + $0xa1] sm:$0xff]  ;;  %v8803_v4 = vld [vmem:[#allocation2 + $0x71] sm:$0xff] }
 0x558   :  { %v3069_v50 = vsel %vm3029_vm10, %v8717_v9, %v6027_v48  ;;  %3084 = vst.msk [vmem:[#allocation2 + $0x111] sm:$0xff] %vm58_vm0, %v3068_v12  ;;  %v8862_v53 = vld [vmem:[#allocation2 + $0x70] sm:$0xff]  ;;  %v3512_v26 = vld [vmem:[#allocation2 + $0x2] sm:$0xff]  ;;  %vm5524_vm10 = vcmask 1046534  }
 0x559   :  { %3085 = vst.msk [vmem:[#allocation2 + $0x121] sm:$0xff] %vm58_vm0, %v3069_v50  ;;  %v8808_v9 = vld [vmem:[#allocation2 + $0xb1] sm:$0xff]  ;;  %v8900_v47 = vld [vmem:[#allocation2 + $0x22] sm:$0xff] }
 0x55a   :  { %6848 = vmatmul.mubr.msk.f32.gmra.mrb[16].mxu0 %vm58_vm0, %v8792_v39  ;;  %v8812_v54 = vld [vmem:[#allocation2 + $0xc1] sm:$0xff]  ;;  %v8867_v58 = vld [vmem:[#allocation2 + $0xb0] sm:$0xff] }
 0x55b   :  { %6850 = vmatprep.mubr.msk.f32.mxu0 %vm58_vm0, %v8798_v0  ;;  %v8816_v11 = vld [vmem:[#allocation2 + $0xd1] sm:$0xff]  ;;  %v8871_v2 = vld [vmem:[#allocation2 + $0xc0] sm:$0xff] }
 0x55c   :  { %v8820_v15 = vld [vmem:[#allocation2 + $0xe1] sm:$0xff]  ;;  %v8875_v28 = vld [vmem:[#allocation2 + $0xd0] sm:$0xff] }
 0x55d   :  { %v8824_v30 = vld [vmem:[#allocation2 + $0xf1] sm:$0xff]  ;;  %v8879_v6 = vld [vmem:[#allocation2 + $0xe0] sm:$0xff] }
 0x55e   :  { %6851 = vmatmul.mubr.msk.f32.gmra.mrb[18].mxu0 %vm58_vm0, %v8803_v4  ;;  %v8828_v37 = vld [vmem:[#allocation2 + $0x101] sm:$0xff]  ;;  %v8883_v41 = vld [vmem:[#allocation2 + $0xf0] sm:$0xff] }
 0x55f   :  { %6853 = vmatprep.mubr.msk.f32.mxu0 %vm58_vm0, %v3115_v57  ;;  %v8832_v31 = vld [vmem:[#allocation2 + $0x111] sm:$0xff]  ;;  %v8887_v5 = vld [vmem:[#allocation2 + $0x100] sm:$0xff] }
 0x560   :  { %v8891_v22 = vld [vmem:[#allocation2 + $0x110] sm:$0xff]  ;;  %v8908_v44 = vld [vmem:[#allocation2 + $0x42] sm:$0xff] }
 0x561   :  { %v3985_v16 = vld [vmem:[#allocation3 + $0xd0] sm:$0xff]  ;;  %v8916_v48 = vld [vmem:[#allocation2 + $0x62] sm:$0xff] }
 0x562   :  { %6854 = vmatmul.mubr.msk.f32.gmra.mrb[20].mxu0 %vm58_vm0, %v8808_v9  ;;  %v7158_v35 = vpack.c.bf16 %v3986_v49, %v3985_v16  ;;  %v8896_v7 = vld [vmem:[#allocation2 + $0x12] sm:$0xff]  ;;  %v3520_v46 = vld [vmem:[#allocation2 + $0xa2] sm:$0xff] }
 0x563   :  { %6856 = vmatprep.mubr.msk.f32.mxu0 %vm58_vm0, %v8812_v54  ;;  %v8904_v56 = vld [vmem:[#allocation2 + $0x32] sm:$0xff]  ;;  %v8929_v57 = vld [vmem:[#allocation2 + $0xc2] sm:$0xff] }
 0x564   :  { %v8912_v60 = vld [vmem:[#allocation2 + $0x52] sm:$0xff]  ;;  %v8937_v38 = vld [vmem:[#allocation2 + $0xe2] sm:$0xff] }
 0x565   :  { %v8920_v12 = vld [vmem:[#allocation2 + $0x72] sm:$0xff]  ;;  %v4214_v16 = vld [vmem:[#allocation3 + $0xe8] sm:$0xff] }
 0x566   :  { %6857 = vmatmul.mubr.msk.f32.gmra.mrb[22].mxu0 %vm58_vm0, %v8816_v11  ;;  %v8925_v50 = vld [vmem:[#allocation2 + $0xb2] sm:$0xff] }
 0x567   :  { %6859 = vmatprep.mubr.msk.f32.mxu0 %vm58_vm0, %v8820_v15  ;;  %v8941_v45 = vld [vmem:[#allocation2 + $0xf2] sm:$0xff] }
 0x56a   :  { %6860 = vmatmul.mubr.msk.f32.gmra.mrb[24].mxu0 %vm58_vm0, %v8824_v30 }
 0x56b   :  { %6862 = vmatprep.mubr.msk.f32.mxu0 %vm58_vm0, %v8828_v37 }
 0x56e   :  { %6863 = vmatmul.mubr.msk.f32.gmra.mrb[26].mxu0 %vm58_vm0, %v8832_v31 }
 0x56f   :  { %6869 = vmatprep.mubr.msk.f32.mxu0 %vm58_vm0, %v3088_v40  ;;  %v8933_v40 = vld [vmem:[#allocation2 + $0xd2] sm:$0xff] }
 0x572   :  { %6870 = vmatmul.mubr.msk.f32.vlgmr.msra.gmra.mrb[12].mxu0 %vm58_vm0, %v8837_v23 }
 0x573   :  { %7153 = vmatpush3.bf16.msra.mxu0 %v8750_v13  ;;  %6872 = vmatprep.mubr.msk.f32.mxu0 %vm58_vm0, %v8841_v52  ;;  %v8858_v13 = vld [vmem:[#allocation2 + $0x60] sm:$0xff] }
 0x574   :  { %7155 = vmatprep.subr.bf16.mxu0 %v7154_v18 }
 0x576   :  { %6873 = vmatmul.mubr.msk.f32.gmra.mrb[14].mxu0 %vm58_vm0, %v8846_v24 }
 0x577   :  { %6875 = vmatprep.mubr.msk.f32.mxu0 %vm58_vm0, %v8850_v42 }
 0x57a   :  { %6876 = vmatmul.mubr.msk.f32.gmra.mrb[16].mxu0 %vm58_vm0, %v8854_v1 }
 0x57b   :  { %6878 = vmatprep.mubr.msk.f32.mxu0 %vm58_vm0, %v8858_v13 }
 0x57e   :  { %6879 = vmatmul.mubr.msk.f32.gmra.mrb[18].mxu0 %vm58_vm0, %v8862_v53 }
 0x57f   :  { %6881 = vmatprep.mubr.msk.f32.mxu0 %vm58_vm0, %v3096_v59  ;;  %v8949_v59 = vld [vmem:[#allocation2 + $0x112] sm:$0xff] }
 0x582   :  { %6882 = vmatmul.mubr.msk.f32.gmra.mrb[20].mxu0 %vm58_vm0, %v8867_v58 }
 0x583   :  { %6884 = vmatprep.mubr.msk.f32.mxu0 %vm58_vm0, %v8871_v2 }
 0x586   :  { %6885 = vmatmul.mubr.msk.f32.gmra.mrb[22].mxu0 %vm58_vm0, %v8875_v28 }
 0x587   :  { %6887 = vmatprep.mubr.msk.f32.mxu0 %vm58_vm0, %v8879_v6 }
 0x58a   :  { %6888 = vmatmul.mubr.msk.f32.gmra.mrb[24].mxu0 %vm58_vm0, %v8883_v41 }
 0x58b   :  { %6890 = vmatprep.mubr.msk.f32.mxu0 %vm58_vm0, %v8887_v5 }
 0x58e   :  { %6891 = vmatmul.mubr.msk.f32.gmra.mrb[26].mxu0 %vm58_vm0, %v8891_v22 }
 0x58f   :  { %6897 = vmatprep.mubr.msk.f32.mxu0 %vm58_vm0, %v3512_v26  ;;  %v4213_v26 = vld [vmem:[#allocation3 + $0xe0] sm:$0xff] }
 0x590   :  { %v7162_v49 = vpack.c.bf16 %v4214_v16, %v4213_v26  ;;  %v9021_v16 = vld [vmem:[#allocation2 + $0x121] sm:$0xff] }
 0x592   :  { %6898 = vmatmul.mubr.msk.f32.vlgmr.msra.gmra.mrb[12].mxu0 %vm58_vm0, %v8896_v7 }
 0x593   :  { %7157 = vmatpush3.bf16.msra.mxu0 %v7154_v18  ;;  %6900 = vmatprep.mubr.msk.f32.mxu0 %vm58_vm0, %v8900_v47  ;;  %v8945_v18 = vld [vmem:[#allocation2 + $0x102] sm:$0xff] }
 0x594   :  { %7159 = vmatprep.subr.bf16.mxu0 %v7158_v35 }
 0x596   :  { %6901 = vmatmul.mubr.msk.f32.gmra.mrb[14].mxu0 %vm58_vm0, %v8904_v56 }
 0x597   :  { %6903 = vmatprep.mubr.msk.f32.mxu0 %vm58_vm0, %v8908_v44 }
 0x59a   :  { %6904 = vmatmul.mubr.msk.f32.gmra.mrb[16].mxu0 %vm58_vm0, %v8912_v60 }
 0x59b   :  { %6906 = vmatprep.mubr.msk.f32.mxu0 %vm58_vm0, %v8916_v48 }
 0x59e   :  { %6907 = vmatmul.mubr.msk.f32.gmra.mrb[18].mxu0 %vm58_vm0, %v8920_v12 }
 0x59f   :  { %6909 = vmatprep.mubr.msk.f32.mxu0 %vm58_vm0, %v3520_v46  ;;  %v4442_v46 = vld [vmem:[#allocation3 + $0xf8] sm:$0xff] }
 0x5a2   :  { %6910 = vmatmul.mubr.msk.f32.gmra.mrb[20].mxu0 %vm58_vm0, %v8925_v50 }
 0x5a3   :  { %6912 = vmatprep.mubr.msk.f32.mxu0 %vm58_vm0, %v8929_v57 }
 0x5a6   :  { %6913 = vmatmul.mubr.msk.f32.gmra.mrb[22].mxu0 %vm58_vm0, %v8933_v40 }
 0x5a7   :  { %6915 = vmatprep.mubr.msk.f32.mxu0 %vm58_vm0, %v8937_v38 }
 0x5aa   :  { %6916 = vmatmul.mubr.msk.f32.gmra.mrb[24].mxu0 %vm58_vm0, %v8941_v45 }
 0x5ab   :  { %6918 = vmatprep.mubr.msk.f32.mxu0 %vm58_vm0, %v8945_v18 }
 0x5ae   :  { %6919 = vmatmul.mubr.msk.f32.gmra.mrb[26].mxu0 %vm58_vm0, %v8949_v59 }
 0x5af   :  { %6925 = vmatprep.mubr.msk.f32.mxu0 %vm58_vm0, %v8837_v23  ;;  %v8967_v23 = vld [vmem:[#allocation2 + $0x80] sm:$0xff] }
 0x5b2   :  { %6926 = vmatmul.mubr.msk.f32.vlgmr.msra.gmra.mrb[12].mxu0 %vm58_vm0, %v8841_v52 }
 0x5b3   :  { %7161 = vmatpush3.bf16.msra.mxu0 %v7158_v35  ;;  %6928 = vmatprep.mubr.msk.f32.mxu0 %vm58_vm0, %v8846_v24  ;;  %v8985_v35 = vld [vmem:[#allocation2 + $0x120] sm:$0xff] }
 0x5b4   :  { %7163 = vmatprep.subr.bf16.mxu0 %v7162_v49 }
 0x5b6   :  { %6929 = vmatmul.mubr.msk.f32.gmra.mrb[14].mxu0 %vm58_vm0, %v8850_v42 }
 0x5b7   :  { %6931 = vmatprep.mubr.msk.f32.mxu0 %vm58_vm0, %v8854_v1 }
 0x5ba   :  { %6932 = vmatmul.mubr.msk.f32.gmra.mrb[16].mxu0 %vm58_vm0, %v8858_v13 }
 0x5bb   :  { %6934 = vmatprep.mubr.msk.f32.mxu0 %vm58_vm0, %v8862_v53 }
 0x5be   :  { %6935 = vmatmul.mubr.msk.f32.gmra.mrb[18].mxu0 %vm58_vm0, %v8967_v23 }
 0x5bf   :  { %6937 = vmatprep.mubr.msk.f32.mxu0 %vm58_vm0, %v8867_v58  ;;  %v4441_v58 = vld [vmem:[#allocation3 + $0xf0] sm:$0xff] }
 0x5c0   :  { %v7166_v26 = vpack.c.bf16 %v4442_v46, %v4441_v58  ;;  %v4211_v46 = vld [vmem:[#allocation2 + $0x122] sm:$0xff] }
 0x5c2   :  { %6938 = vmatmul.mubr.msk.f32.gmra.mrb[20].mxu0 %vm58_vm0, %v8871_v2 }
 0x5c3   :  { %6940 = vmatprep.mubr.msk.f32.mxu0 %vm58_vm0, %v8875_v28 }
 0x5c6   :  { %6941 = vmatmul.mubr.msk.f32.gmra.mrb[22].mxu0 %vm58_vm0, %v8879_v6 }
 0x5c7   :  { %6943 = vmatprep.mubr.msk.f32.mxu0 %vm58_vm0, %v8883_v41 }
 0x5ca   :  { %6944 = vmatmul.mubr.msk.f32.gmra.mrb[24].mxu0 %vm58_vm0, %v8887_v5 }
 0x5cb   :  { %6946 = vmatprep.mubr.msk.f32.mxu0 %vm58_vm0, %v8891_v22 }
 0x5ce   :  { %6947 = vmatmul.mubr.msk.f32.gmra.mrb[26].mxu0 %vm58_vm0, %v8985_v35 }
 0x5cf   :  { %6953 = vmatprep.mubr.msk.f32.mxu0 %vm58_vm0, %v8753_v17  ;;  %v9003_v17 = vld [vmem:[#allocation2 + $0x81] sm:$0xff] }
 0x5d2   :  { %6954 = vmatmul.mubr.msk.f32.vlgmr.msra.gmra.mrb[12].mxu0 %vm58_vm0, %v8758_v3 }
 0x5d3   :  { %7165 = vmatpush3.bf16.msra.mxu0 %v7162_v49  ;;  %6956 = vmatprep.mubr.msk.f32.mxu0 %vm58_vm0, %v8772_v10  ;;  %v4670_v49 = vld [vmem:[#allocation3 + $0x108] sm:$0xff] }
 0x5d4   :  { %7167 = vmatprep.subr.bf16.mxu0 %v7166_v26 }
 0x5d6   :  { %6957 = vmatmul.mubr.msk.f32.gmra.mrb[14].mxu0 %vm58_vm0, %v8779_v21 }
 0x5d7   :  { %6959 = vmatprep.mubr.msk.f32.mxu0 %vm58_vm0, %v8792_v39 }
 0x5da   :  { %6960 = vmatmul.mubr.msk.f32.gmra.mrb[16].mxu0 %vm58_vm0, %v8798_v0 }
 0x5db   :  { %6962 = vmatprep.mubr.msk.f32.mxu0 %vm58_vm0, %v8803_v4 }
 0x5de   :  { %6963 = vmatmul.mubr.msk.f32.gmra.mrb[18].mxu0 %vm58_vm0, %v9003_v17 }
 0x5df   :  { %6965 = vmatprep.mubr.msk.f32.mxu0 %vm58_vm0, %v8808_v9  ;;  %v4669_v9 = vld [vmem:[#allocation3 + $0x100] sm:$0xff] }
 0x5e0   :  { %v7170_v58 = vpack.c.bf16 %v4670_v49, %v4669_v9 }
 0x5e2   :  { %6966 = vmatmul.mubr.msk.f32.gmra.mrb[20].mxu0 %vm58_vm0, %v8812_v54 }
 0x5e3   :  { %6968 = vmatprep.mubr.msk.f32.mxu0 %vm58_vm0, %v8816_v11 }
 0x5e6   :  { %6969 = vmatmul.mubr.msk.f32.gmra.mrb[22].mxu0 %vm58_vm0, %v8820_v15 }
 0x5e7   :  { %6971 = vmatprep.mubr.msk.f32.mxu0 %vm58_vm0, %v8824_v30 }
 0x5ea   :  { %6972 = vmatmul.mubr.msk.f32.gmra.mrb[24].mxu0 %vm58_vm0, %v8828_v37 }
 0x5eb   :  { %6974 = vmatprep.mubr.msk.f32.mxu0 %vm58_vm0, %v8832_v31 }
 0x5ee   :  { %6975 = vmatmul.mubr.msk.f32.gmra.mrb[26].mxu0 %vm58_vm0, %v9021_v16 }
 0x5ef   :  { %6981 = vmatprep.mubr.msk.f32.mxu0 %vm58_vm0, %v8896_v7  ;;  %v4203_v7 = vld [vmem:[#allocation2 + $0x82] sm:$0xff] }
 0x5f2   :  { %6982 = vmatmul.mubr.msk.f32.vlgmr.msra.gmra.mrb[12].mxu0 %vm58_vm0, %v8900_v47 }
 0x5f3   :  { %7169 = vmatpush3.bf16.msra.mxu0 %v7166_v26  ;;  %6984 = vmatprep.mubr.msk.f32.mxu0 %vm58_vm0, %v8904_v56  ;;  %v4898_v26 = vld [vmem:[#allocation3 + $0x118] sm:$0xff] }
 0x5f4   :  { %7171 = vmatprep.subr.bf16.mxu0 %v7170_v58 }
 0x5f6   :  { %6985 = vmatmul.mubr.msk.f32.gmra.mrb[14].mxu0 %vm58_vm0, %v8908_v44 }
 0x5f7   :  { %6987 = vmatprep.mubr.msk.f32.mxu0 %vm58_vm0, %v8912_v60 }
 0x5fa   :  { %6988 = vmatmul.mubr.msk.f32.gmra.mrb[16].mxu0 %vm58_vm0, %v8916_v48 }
 0x5fb   :  { %6990 = vmatprep.mubr.msk.f32.mxu0 %vm58_vm0, %v8920_v12 }
 0x5fe   :  { %6991 = vmatmul.mubr.msk.f32.gmra.mrb[18].mxu0 %vm58_vm0, %v4203_v7 }
 0x5ff   :  { %6993 = vmatprep.mubr.msk.f32.mxu0 %vm58_vm0, %v8925_v50  ;;  %v4897_v50 = vld [vmem:[#allocation3 + $0x110] sm:$0xff] }
 0x600   :  { %v7174_v9 = vpack.c.bf16 %v4898_v26, %v4897_v50 }
 0x602   :  { %6994 = vmatmul.mubr.msk.f32.gmra.mrb[20].mxu0 %vm58_vm0, %v8929_v57 }
 0x603   :  { %6996 = vmatprep.mubr.msk.f32.mxu0 %vm58_vm0, %v8933_v40 }
 0x606   :  { %6997 = vmatmul.mubr.msk.f32.gmra.mrb[22].mxu0 %vm58_vm0, %v8937_v38 }
 0x607   :  { %6999 = vmatprep.mubr.msk.f32.mxu0 %vm58_vm0, %v8941_v45 }
 0x60a   :  { %7000 = vmatmul.mubr.msk.f32.gmra.mrb[24].mxu0 %vm58_vm0, %v8945_v18 }
 0x60b   :  { %7002 = vmatprep.mubr.msk.f32.mxu0 %vm58_vm0, %v8949_v59 }
 0x60e   :  { %7003 = vmatmul.mubr.msk.f32.gmra.mrb[26].mxu0 %vm58_vm0, %v4211_v46 }
 0x60f   :  { %7009 = vmatprep.mubr.msk.f32.mxu0 %vm58_vm0, %v8841_v52  ;;  %v4431_v52 = vld [vmem:[#allocation2 + $0x90] sm:$0xff] }
 0x612   :  { %7010 = vmatmul.mubr.msk.f32.vlgmr.msra.gmra.mrb[12].mxu0 %vm58_vm0, %v8846_v24  ;;  %v4439_v24 = vld [vmem:[#allocation2 + $0x130] sm:$0xff] }
 0x613   :  { %7173 = vmatpush3.bf16.msra.mxu0 %v7170_v58  ;;  %7012 = vmatprep.mubr.msk.f32.mxu0 %vm58_vm0, %v8850_v42 }
 0x614   :  { %7175 = vmatprep.subr.bf16.mxu0 %v7174_v9 }
 0x616   :  { %7013 = vmatmul.mubr.msk.f32.gmra.mrb[14].mxu0 %vm58_vm0, %v8854_v1 }
 0x617   :  { %7015 = vmatprep.mubr.msk.f32.mxu0 %vm58_vm0, %v8858_v13 }
 0x61a   :  { %7016 = vmatmul.mubr.msk.f32.gmra.mrb[16].mxu0 %vm58_vm0, %v8862_v53 }
 0x61b   :  { %7018 = vmatprep.mubr.msk.f32.mxu0 %vm58_vm0, %v8967_v23 }
 0x61e   :  { %7019 = vmatmul.mubr.msk.f32.gmra.mrb[18].mxu0 %vm58_vm0, %v4431_v52 }
 0x61f   :  { %7021 = vmatprep.mubr.msk.f32.mxu0 %vm58_vm0, %v8871_v2 }
 0x622   :  { %7022 = vmatmul.mubr.msk.f32.gmra.mrb[20].mxu0 %vm58_vm0, %v8875_v28 }
 0x623   :  { %7024 = vmatprep.mubr.msk.f32.mxu0 %vm58_vm0, %v8879_v6 }
 0x626   :  { %7025 = vmatmul.mubr.msk.f32.gmra.mrb[22].mxu0 %vm58_vm0, %v8883_v41 }
 0x627   :  { %7027 = vmatprep.mubr.msk.f32.mxu0 %vm58_vm0, %v8887_v5 }
 0x62a   :  { %7028 = vmatmul.mubr.msk.f32.gmra.mrb[24].mxu0 %vm58_vm0, %v8891_v22 }
 0x62b   :  { %7030 = vmatprep.mubr.msk.f32.mxu0 %vm58_vm0, %v8985_v35 }
 0x62e   :  { %7031 = vmatmul.mubr.msk.f32.gmra.mrb[26].mxu0 %vm58_vm0, %v4439_v24 }
 0x62f   :  { %7037 = vmatprep.mubr.msk.f32.mxu0 %vm58_vm0, %v8758_v3  ;;  %v4659_v3 = vld [vmem:[#allocation2 + $0x91] sm:$0xff] }
 0x632   :  { %7038 = vmatmul.mubr.msk.f32.vlgmr.msra.gmra.mrb[12].mxu0 %vm58_vm0, %v8772_v10  ;;  %v4667_v10 = vld [vmem:[#allocation2 + $0x131] sm:$0xff] }
 0x633   :  { %7177 = vmatpush3.bf16.msra.mxu0 %v7174_v9  ;;  %7040 = vmatprep.mubr.msk.f32.mxu0 %vm58_vm0, %v8779_v21  ;;  %v4887_v21 = vld [vmem:[#allocation2 + $0x92] sm:$0xff] }
 0x636   :  { %7041 = vmatmul.mubr.msk.f32.gmra.mrb[14].mxu0 %vm58_vm0, %v8792_v39  ;;  %v4895_v39 = vld [vmem:[#allocation2 + $0x132] sm:$0xff] }
 0x637   :  { %7043 = vmatprep.mubr.msk.f32.mxu0 %vm58_vm0, %v8798_v0 }
 0x63a   :  { %7044 = vmatmul.mubr.msk.f32.gmra.mrb[16].mxu0 %vm58_vm0, %v8803_v4 }
 0x63b   :  { %7046 = vmatprep.mubr.msk.f32.mxu0 %vm58_vm0, %v9003_v17 }
 0x63e   :  { %7047 = vmatmul.mubr.msk.f32.gmra.mrb[18].mxu0 %vm58_vm0, %v4659_v3 }
 0x63f   :  { %7049 = vmatprep.mubr.msk.f32.mxu0 %vm58_vm0, %v8812_v54 }
 0x642   :  { %7050 = vmatmul.mubr.msk.f32.gmra.mrb[20].mxu0 %vm58_vm0, %v8816_v11 }
 0x643   :  { %7052 = vmatprep.mubr.msk.f32.mxu0 %vm58_vm0, %v8820_v15 }
 0x646   :  { %7053 = vmatmul.mubr.msk.f32.gmra.mrb[22].mxu0 %vm58_vm0, %v8824_v30 }
 0x647   :  { %7055 = vmatprep.mubr.msk.f32.mxu0 %vm58_vm0, %v8828_v37 }
 0x64a   :  { %7056 = vmatmul.mubr.msk.f32.gmra.mrb[24].mxu0 %vm58_vm0, %v8832_v31 }
 0x64b   :  { %7058 = vmatprep.mubr.msk.f32.mxu0 %vm58_vm0, %v9021_v16 }
 0x64e   :  { %7059 = vmatmul.mubr.msk.f32.gmra.mrb[26].mxu0 %vm58_vm0, %v4667_v10 }
 0x64f   :  { %7065 = vmatprep.mubr.msk.f32.mxu0 %vm58_vm0, %v8900_v47 }
 0x652   :  { %7066 = vmatmul.mubr.msk.f32.vlgmr.msra.gmra.mrb[12].mxu0 %vm58_vm0, %v8904_v56 }
 0x653   :  { %7068 = vmatprep.mubr.msk.f32.mxu0 %vm58_vm0, %v8908_v44 }
 0x656   :  { %7069 = vmatmul.mubr.msk.f32.gmra.mrb[14].mxu0 %vm58_vm0, %v8912_v60 }
 0x657   :  { %7071 = vmatprep.mubr.msk.f32.mxu0 %vm58_vm0, %v8916_v48 }
 0x65a   :  { %7072 = vmatmul.mubr.msk.f32.gmra.mrb[16].mxu0 %vm58_vm0, %v8920_v12 }
 0x65b   :  { %7074 = vmatprep.mubr.msk.f32.mxu0 %vm58_vm0, %v4203_v7 }
 0x65e   :  { %7075 = vmatmul.mubr.msk.f32.gmra.mrb[18].mxu0 %vm58_vm0, %v4887_v21 }
 0x65f   :  { %7077 = vmatprep.mubr.msk.f32.mxu0 %vm58_vm0, %v8929_v57 }
 0x662   :  { %7078 = vmatmul.mubr.msk.f32.gmra.mrb[20].mxu0 %vm58_vm0, %v8933_v40 }
 0x663   :  { %7080 = vmatprep.mubr.msk.f32.mxu0 %vm58_vm0, %v8937_v38 }
 0x666   :  { %7081 = vmatmul.mubr.msk.f32.gmra.mrb[22].mxu0 %vm58_vm0, %v8941_v45 }
 0x667   :  { %7083 = vmatprep.mubr.msk.f32.mxu0 %vm58_vm0, %v8945_v18 }
 0x66a   :  { %7084 = vmatmul.mubr.msk.f32.gmra.mrb[24].mxu0 %vm58_vm0, %v8949_v59 }
 0x66b   :  { %7086 = vmatprep.mubr.msk.f32.mxu0 %vm58_vm0, %v4211_v46 }
 0x66e   :  { %7087 = vmatmul.mubr.msk.f32.gmra.mrb[26].mxu0 %vm58_vm0, %v4895_v39 }
 0x725   :  { %v9143_v0 = vpop.f32.mrb[12].mxu0 }
 0x726   :  { %v5109_v4 = vsel %vm58_vm0, %v9143_v0, 0.0  ;;  %v5131_v54 = vmul.f32 %v9143_v0, %v9143_v0  ;;  %v9149_v11 = vpop.f32.mrb[13].mxu0 }
 0x727   :  { %v5108_v15 = vsel %vm58_vm0, %v9149_v11, 0.0  ;;  %v5130_v30 = vmul.f32 %v9149_v11, %v9149_v11 }
 0x728   :  { %v5139_v37 = vsel %vm58_vm0, %v5131_v54, 0.0  ;;  %v5110_v31 = vadd.f32 %v5109_v4, %v5108_v15 }
 0x729   :  { %v5138_v42 = vsel %vm58_vm0, %v5130_v30, 0.0  ;;  %v9157_v1 = vpop.f32.mrb[14].mxu0 }
 0x72a   :  { %v5140_v13 = vadd.f32 %v5139_v37, %v5138_v42  ;;  %v9159_v53 = vpop.f32.mrb[15].mxu0  ;;  %v5133_v2 = vmul.f32 %v9157_v1, %v9157_v1  ;;  %v5113_v5 = vsel %vm58_vm0, %v9157_v1, 0.0 }
 0x72b   :  { %v5111_v28 = vsel %vm58_vm0, %v9159_v53, 0.0  ;;  %v5132_v6 = vmul.f32 %v9159_v53, %v9159_v53 }
 0x72c   :  { %v5112_v41 = vadd.f32 %v5111_v28, %v5110_v31  ;;  %v5143_v48 = vsel %vm58_vm0, %v5133_v2, 0.0 }
 0x72d   :  { %v5141_v22 = vsel %vm58_vm0, %v5132_v6, 0.0  ;;  %v9170_v47 = vpop.f32.mrb[16].mxu0 }
 0x72e   :  { %v5142_v56 = vadd.f32 %v5141_v22, %v5140_v13  ;;  %v9172_v44 = vpop.f32.mrb[17].mxu0  ;;  %v5114_v60 = vadd.f32 %v5113_v5, %v5112_v41  ;;  %v5135_v12 = vmul.f32 %v9170_v47, %v9170_v47  ;;  %v5117_v18 = vsel %vm58_vm0, %v9170_v47, 0.0 }
 0x72f   :  { %v5115_v57 = vsel %vm58_vm0, %v9172_v44, 0.0  ;;  %v5134_v40 = vmul.f32 %v9172_v44, %v9172_v44 }
 0x730   :  { %v5116_v38 = vadd.f32 %v5115_v57, %v5114_v60  ;;  %v5144_v45 = vadd.f32 %v5143_v48, %v5142_v56  ;;  %v5147_v49 = vsel %vm58_vm0, %v5135_v12, 0.0 }
 0x731   :  { %v5145_v59 = vsel %vm58_vm0, %v5134_v40, 0.0  ;;  %v9184_v23 = vpop.f32.mrb[18].mxu0 }
 0x732   :  { %v5146_v35 = vadd.f32 %v5145_v59, %v5144_v45  ;;  %v9186_v17 = vpop.f32.mrb[19].mxu0  ;;  %v5118_v16 = vadd.f32 %v5117_v18, %v5116_v38  ;;  %v5137_v58 = vmul.f32 %v9184_v23, %v9184_v23  ;;  %v5121_v9 = vsel %vm58_vm0, %v9184_v23, 0.0 }
 0x733   :  { %v5119_v7 = vsel %vm58_vm0, %v9186_v17, 0.0  ;;  %v5136_v46 = vmul.f32 %v9186_v17, %v9186_v17 }
 0x734   :  { %v5120_v50 = vadd.f32 %v5119_v7, %v5118_v16  ;;  %v5148_v26 = vadd.f32 %v5147_v49, %v5146_v35  ;;  %v5151_v54 = vsel %vm58_vm0, %v5137_v58, 0.0 }
 0x735   :  { %v5149_v52 = vsel %vm58_vm0, %v5136_v46, 0.0  ;;  %v9198_v24 = vpop.f32.mrb[20].mxu0 }
 0x736   :  { %v5122_v3 = vadd.f32 %v5121_v9, %v5120_v50  ;;  %v5150_v10 = vadd.f32 %v5149_v52, %v5148_v26  ;;  %v5161_v21 = vsel %vm58_vm0, %v9198_v24, 0.0  ;;  %v5183_v39 = vmul.f32 %v9198_v24, %v9198_v24  ;;  %v9204_v4 = vpop.f32.mrb[21].mxu0 }
 0x737   :  { %v5160_v15 = vsel %vm58_vm0, %v9204_v4, 0.0  ;;  %v5182_v30 = vmul.f32 %v9204_v4, %v9204_v4 }
 0x738   :  { %v5152_v37 = vadd.f32 %v5151_v54, %v5150_v10  ;;  %v5191_v31 = vsel %vm58_vm0, %v5183_v39, 0.0  ;;  %v5162_v42 = vadd.f32 %v5161_v21, %v5160_v15  ;;  %v5123_v60 = vrot.slane %v5122_v3, 4 }
 0x739   :  { %v5190_v13 = vsel %vm58_vm0, %v5182_v30, 0.0  ;;  %v9213_v2 = vpop.f32.mrb[22].mxu0 }
 0x73a   :  { %v5192_v28 = vadd.f32 %v5191_v31, %v5190_v13  ;;  %v9215_v6 = vpop.f32.mrb[23].mxu0  ;;  %v5185_v41 = vmul.f32 %v9213_v2, %v9213_v2  ;;  %v5153_v57 = vrot.slane %v5152_v37, 4  ;;  %v5165_v40 = vsel %vm58_vm0, %v9213_v2, 0.0 }
 0x73b   :  { %v5163_v5 = vsel %vm58_vm0, %v9215_v6, 0.0  ;;  %v5184_v22 = vmul.f32 %v9215_v6, %v9215_v6  ;;  %v5124_v7 = vadd.f32 %v5123_v60, %v5122_v3 }
 0x73c   :  { %v5164_v56 = vadd.f32 %v5163_v5, %v5162_v42  ;;  %v5195_v38 = vsel %vm58_vm0, %v5185_v41, 0.0  ;;  %v5154_v9 = vadd.f32 %v5153_v57, %v5152_v37 }
 0x73d   :  { %v5193_v48 = vsel %vm58_vm0, %v5184_v22, 0.0  ;;  %v9224_v12 = vpop.f32.mrb[24].mxu0  ;;  %v5125_v37 = vrot.slane %v5124_v7, 2 }
 0x73e   :  { %v5194_v45 = vadd.f32 %v5193_v48, %v5192_v28  ;;  %v9229_v18 = vpop.f32.mrb[25].mxu0  ;;  %v5187_v59 = vmul.f32 %v9224_v12, %v9224_v12  ;;  %v5166_v35 = vadd.f32 %v5165_v40, %v5164_v56  ;;  %v5169_v52 = vsel %vm58_vm0, %v9224_v12, 0.0 }
 0x73f   :  { %v5167_v16 = vsel %vm58_vm0, %v9229_v18, 0.0  ;;  %v5186_v49 = vmul.f32 %v9229_v18, %v9229_v18  ;;  %v5155_v28 = vrot.slane %v5154_v9, 2  ;;  %v5126_v48 = vadd.f32 %v5125_v37, %v5124_v7 }
 0x740   :  { %v5196_v58 = vadd.f32 %v5195_v38, %v5194_v45  ;;  %v5168_v46 = vadd.f32 %v5167_v16, %v5166_v35  ;;  %v5199_v10 = vsel %vm58_vm0, %v5187_v59, 0.0 }
 0x741   :  { %v5197_v50 = vsel %vm58_vm0, %v5186_v49, 0.0  ;;  %v9238_v26 = vpop.f32.mrb[26].mxu0  ;;  %v5156_v40 = vadd.f32 %v5155_v28, %v5154_v9  ;;  %v5127_v35 = vrot.slane %v5126_v48, 1  ;;  %v6028_v49 = vld [vmem:[%s9717_s4 + $0x4] sm:$0x7]  ;;  %s7613_s4 = smov 32  }
 0x742   :  { %v5198_v21 = vadd.f32 %v5197_v50, %v5196_v58  ;;  %v9243_v39 = vpop.f32.mrb[27].mxu0  ;;  %v5189_v54 = vmul.f32 %v9238_v26, %v9238_v26  ;;  %v5170_v15 = vadd.f32 %v5169_v52, %v5168_v46  ;;  %v5173_v41 = vsel %vm58_vm0, %v9238_v26, 0.0 }
 0x743   :  { %v5171_v3 = vsel %vm58_vm0, %v9243_v39, 0.0  ;;  %v5188_v30 = vmul.f32 %v9243_v39, %v9243_v39  ;;  %v5157_v58 = vrot.slane %v5156_v40, 1 }
 0x744   :  { %v5200_v31 = vadd.f32 %v5199_v10, %v5198_v21  ;;  %v5172_v42 = vadd.f32 %v5171_v3, %v5170_v15  ;;  %v5203_v22 = vsel %vm58_vm0, %v5189_v54, 0.0  ;;  %v5219_v10 = vmul.f32 2.0, %v6028_v49 }
 0x745   :  { %v5201_v13 = vsel %vm58_vm0, %v5188_v30, 0.0  ;;  %v5128_v21 = vadd.f32 %v5127_v35, %v5126_v48  ;;  %v5158_v15 = vadd.f32 %v5157_v58, %v5156_v40 }
 0x746   :  { %v5202_v5 = vadd.f32 %v5201_v13, %v5200_v31  ;;  %v5174_v56 = vadd.f32 %v5173_v41, %v5172_v42  ;;  %v5223_v30 = vrot.slane %v5219_v10, %v7917_v34  ;;  %v5226_v31 = vmul.f32 %v6028_v49, %v6028_v49 }
 0x747   :  { %v5129_v37 = vmul.f32 0.015625, %v5128_v21  ;;  %v5159_v13 = vmul.f32 0.015625, %v5158_v15  ;;  %v5320_v10 = vrot.slane %v6028_v49, %v7975_v27  ;;  %v5330_v15 = vrot.slane %v6028_v49, %v7980_v32 }
 0x748   :  { %v5204_v60 = vadd.f32 %v5203_v22, %v5202_v5  ;;  %v5175_v57 = vrot.slane %v5174_v56, 4 }
 0x74a   :  { %v5205_v38 = vrot.slane %v5204_v60, 4  ;;  %v5176_v45 = vadd.f32 %v5175_v57, %v5174_v56  ;;  %v5230_v56 = vrot.slane %v5226_v31, %v7917_v34 }
 0x74c   :  { %v5206_v59 = vadd.f32 %v5205_v38, %v5204_v60  ;;  %v5177_v16 = vrot.slane %v5176_v45, 2  ;;  %v5217_v60 = vrot.slane %v6028_v49, %v7917_v34 }
 0x74e   :  { %v5207_v46 = vrot.slane %v5206_v59, 2  ;;  %v5178_v50 = vadd.f32 %v5177_v16, %v5176_v45 }
 0x750   :  { %v5208_v52 = vadd.f32 %v5207_v46, %v5206_v59  ;;  %v5179_v54 = vrot.slane %v5178_v50, 1 }
 0x752   :  { %v5209_v7 = vrot.slane %v5208_v52, 1  ;;  %v5180_v3 = vadd.f32 %v5179_v54, %v5178_v50 }
 0x754   :  { %v5210_v9 = vadd.f32 %v5209_v7, %v5208_v52  ;;  %v5181_v42 = vmul.f32 0.015625, %v5180_v3 }
 0x756   :  { %v5211_v28 = vmul.f32 0.015625, %v5210_v9  ;;  %v5212_v41 = vsel %vm357_vm2, %v5129_v37, %v5181_v42 }
 0x757   :  { %v5224_v22 = vmul.f32 %v5223_v30, %v5212_v41  ;;  %v5218_v40 = vadd.f32 %v5217_v60, %v5212_v41 }
 0x758   :  { %v5213_v5 = vsel %vm357_vm2, %v5159_v13, %v5211_v28 }
 0x759   :  { %v5225_v48 = vadd.f32 %v5224_v22, %v5213_v5 }
 0x75b   :  { %v5231_v57 = vadd.f32 %v5230_v56, %v5225_v48 }
 0x75d   :  { %v5233_v38 = vrot.slane %v5231_v57, 6 }
 0x75f   :  { %v5235_v45 = vsel %vm381_vm3, %v5218_v40, %v5233_v38 }
 0x760   :  { %7094 = vmatmul.mubr.msk.f32.vlgmr.msra.gmra.mrb[24].mxu1 %vm58_vm0, %v5235_v45 }
 0x833   :  { %v5305_v59 = vpop.f32.mrb[24].mxu1 }
 0x834   :  { %v5309_v35 = vmul.f32 %v5305_v59, %v5305_v59  ;;  %v7095_v16 = vpop.f32.mrb[25].mxu1  ;;  %v5322_v7 = vsub.f32 %v5217_v60, %v5305_v59 }
 0x836   :  { %v5311_v58 = vrot.slane %v5309_v35, 6 }
 0x838   :  { %v5313_v46 = vsub.f32 %v5305_v59, %v5311_v58 }
 0x83a   :  { %v5314_v50 = vmax.f32 %v5313_v46, 0.0 }
 0x83c   :  { %v5315_v52 = vadd.f32 1e-05, %v5314_v50 }
 0x83e   :  { %7521 = vrsqrt.f32 %v5315_v52 }
 0x848   :  { %v7522_v21 = vpop.eup %7521 }
 0x849   :  { %v5321_v54 = vmul.f32 %v7522_v21, %v5320_v10 }
 0x84b   :  { %v5324_v3 = vrot.slane %v5321_v54, 2  ;;  %v5335_v9 = vrot.slane %v5321_v54, %v7980_v32  ;;  %v5407_v30 = vrot.slane %v5321_v54, %v7983_v33 }
 0x84d   :  { %v5326_v31 = vmul.f32 %v5324_v3, %v5322_v7  ;;  %v5336_v37 = vmul.f32 %v5335_v9, %v9149_v11  ;;  %v5337_v42 = vmul.f32 %v9143_v0, %v5335_v9  ;;  %v5338_v13 = vmul.f32 %v5335_v9, %v9159_v53 }
 0x84e   :  { %v5339_v28 = vmul.f32 %v9157_v1, %v5335_v9  ;;  %v5340_v41 = vmul.f32 %v5335_v9, %v9172_v44  ;;  %v5341_v5 = vmul.f32 %v9170_v47, %v5335_v9  ;;  %v5342_v49 = vmul.f32 %v5335_v9, %v9186_v17 }
 0x84f   :  { %v5331_v22 = vadd.f32 %v5330_v15, %v5326_v31  ;;  %v5343_v32 = vmul.f32 %v9184_v23, %v5335_v9  ;;  %v5408_v33 = vmul.f32 %v5407_v30, %v9204_v4  ;;  %v5409_v56 = vmul.f32 %v9198_v24, %v5407_v30 }
 0x850   :  { %v5410_v11 = vmul.f32 %v5407_v30, %v9215_v6  ;;  %v5411_v0 = vmul.f32 %v9213_v2, %v5407_v30  ;;  %v5412_v53 = vmul.f32 %v5407_v30, %v9229_v18  ;;  %v5413_v1 = vmul.f32 %v9224_v12, %v5407_v30 }
 0x851   :  { %v5347_v44 = vrot.slane %v5331_v22, %v7917_v34  ;;  %v5414_v47 = vmul.f32 %v5407_v30, %v9243_v39  ;;  %v5415_v17 = vmul.f32 %v9238_v26, %v5407_v30  ;;  %v5419_v23 = vrot.slane %v5331_v22, %v7975_v27 }
 0x853   :  { %v9287_v60 = vadd.f32 %v5347_v44, %v5336_v37  ;;  %v9289_v4 = vadd.f32 %v5347_v44, %v5337_v42  ;;  %v9291_v24 = vadd.f32 %v5347_v44, %v5338_v13  ;;  %v9293_v6 = vadd.f32 %v5347_v44, %v5339_v28 }
 0x854   :  { %v9295_v2 = vadd.f32 %v5347_v44, %v5340_v41  ;;  %v9297_v18 = vadd.f32 %v5347_v44, %v5341_v5  ;;  %v9299_v12 = vadd.f32 %v5347_v44, %v5342_v49  ;;  %v9301_v34 = vadd.f32 %v5347_v44, %v5343_v32 }
 0x855   :  { %v5364_v26 = vmin.f32 %v9287_v60, 0.0  ;;  %v5365_v27 = vmin.f32 %v9289_v4, 0.0  ;;  %v5366_v39 = vmin.f32 %v9291_v24, 0.0  ;;  %v5367_v48 = vmin.f32 %v9293_v6, 0.0 }
 0x856   :  { %v5368_v57 = vmin.f32 %v9295_v2, 0.0  ;;  %v5369_v40 = vmin.f32 %v9297_v18, 0.0  ;;  %v5370_v38 = vmin.f32 %v9299_v12, 0.0  ;;  %v9310_v35 = vadd.f32 %v5419_v23, %v5408_v33 }
 0x857   :  { %v5372_v45 = vmul.f32 1.442695, %v5364_v26  ;;  %v5374_v59 = vmul.f32 1.442695, %v5365_v27  ;;  %v5376_v16 = vmul.f32 1.442695, %v5366_v39  ;;  %v9312_v46 = vadd.f32 %v5419_v23, %v5409_v56 }
 0x858   :  { %v5378_v58 = vmul.f32 1.442695, %v5367_v48  ;;  %v5380_v50 = vmul.f32 1.442695, %v5368_v57  ;;  %v5382_v52 = vmul.f32 1.442695, %v5369_v40  ;;  %v9314_v10 = vadd.f32 %v5419_v23, %v5410_v11 }
 0x859   :  { %7523 = vpow2.f32 %v5372_v45  ;;  %v9316_v21 = vadd.f32 %v5419_v23, %v5411_v0  ;;  %v9318_v54 = vadd.f32 %v5419_v23, %v5412_v53  ;;  %v9320_v15 = vadd.f32 %v5419_v23, %v5413_v1 }
 0x85a   :  { %7525 = vpow2.f32 %v5374_v59  ;;  %v5384_v7 = vmul.f32 1.442695, %v5370_v38  ;;  %v9322_v3 = vadd.f32 %v5419_v23, %v5414_v47  ;;  %v9324_v9 = vadd.f32 %v5419_v23, %v5415_v17 }
 0x85b   :  { %7527 = vpow2.f32 %v5376_v16  ;;  %v5436_v30 = vmin.f32 %v9310_v35, 0.0  ;;  %v5437_v31 = vmin.f32 %v9312_v46, 0.0  ;;  %v5438_v37 = vmin.f32 %v9314_v10, 0.0 }
 0x85c   :  { %7529 = vpow2.f32 %v5378_v58  ;;  %v5439_v42 = vmin.f32 %v9316_v21, 0.0  ;;  %v5440_v13 = vmin.f32 %v9318_v54, 0.0  ;;  %v5441_v28 = vmin.f32 %v9320_v15, 0.0 }
 0x85d   :  { %7531 = vpow2.f32 %v5380_v50  ;;  %v5442_v41 = vmin.f32 %v9322_v3, 0.0  ;;  %v5443_v5 = vmin.f32 %v9324_v9, 0.0  ;;  %v5444_v49 = vmul.f32 1.442695, %v5436_v30 }
 0x85e   :  { %7533 = vpow2.f32 %v5382_v52  ;;  %v5446_v22 = vmul.f32 1.442695, %v5437_v31  ;;  %v5448_v32 = vmul.f32 1.442695, %v5438_v37  ;;  %vm5356_vm2 = vcmp.gt.f32.partialorder %v9287_v60, 0.0 }
 0x85f   :  { %7535 = vpow2.f32 %v5384_v7  ;;  %v5371_v33 = vmin.f32 %v9301_v34, 0.0  ;;  %v5450_v56 = vmul.f32 1.442695, %v5439_v42  ;;  %vm5357_vm3 = vcmp.gt.f32.partialorder %v9289_v4, 0.0 }
 0x860   :  { %vm5358_vm11 = vcmp.gt.f32.partialorder %v9291_v24, 0.0  ;;  %7537 = vpow2.f32 %v5444_v49  ;;  %v5452_v11 = vmul.f32 1.442695, %v5440_v13  ;;  %vm5359_vm13 = vcmp.gt.f32.partialorder %v9293_v6, 0.0 }
 0x861   :  { %vm5360_vm14 = vcmp.gt.f32.partialorder %v9295_v2, 0.0  ;;  %7539 = vpow2.f32 %v5446_v22  ;;  %v5454_v53 = vmul.f32 1.442695, %v5441_v28  ;;  %v5456_v47 = vmul.f32 1.442695, %v5442_v41 }
 0x862   :  { %7541 = vpow2.f32 %v5448_v32  ;;  %v9340_v17 = vmul.f32 1.442695, %v5443_v5  ;;  %vm5361_vm5 = vcmp.gt.f32.partialorder %v9297_v18, 0.0  ;;  %v5386_v27 = vmul.f32 1.442695, %v5371_v33 }
 0x863   :  { %v7524_v0 = vpop.eup %7523  ;;  %7543 = vpow2.f32 %v5450_v56  ;;  %vm5428_vm7 = vcmp.gt.f32.partialorder %v9310_v35, 0.0  ;;  %vm5362_vm8 = vcmp.gt.f32.partialorder %v9299_v12, 0.0  ;;  %vm5429_vm9 = vcmp.gt.f32.partialorder %v9312_v46, 0.0 }
 0x864   :  { %v7526_v1 = vpop.eup %7525  ;;  %v6174_v44 = vadd.f32 -1.0, %v7524_v0  ;;  %7545 = vpow2.f32 %v5452_v11 }
 0x865   :  { %v7528_v23 = vpop.eup %7527  ;;  %v6175_v26 = vadd.f32 -1.0, %v7526_v1  ;;  %7547 = vpow2.f32 %v5454_v53 }
 0x866   :  { %v7530_v39 = vpop.eup %7529  ;;  %v5396_v48 = vsel %vm5356_vm2, %v9287_v60, %v6174_v44  ;;  %v6176_v57 = vadd.f32 -1.0, %v7528_v23  ;;  %7549 = vpow2.f32 %v5456_v47  ;;  %vm5431_vm2 = vcmp.gt.f32.partialorder %v9316_v21, 0.0 }
 0x867   :  { %v7532_v40 = vpop.eup %7531  ;;  %v6177_v38 = vadd.f32 -1.0, %v7530_v39  ;;  %v5397_v45 = vsel %vm5357_vm3, %v9289_v4, %v6175_v26  ;;  %v9353_v59 = vadd.f32 %v5396_v48, %v8057_v62  ;;  %7551 = vpow2.f32 %v5386_v27 }
 0x868   :  { %v7534_v60 = vpop.eup %7533  ;;  %v9356_v16 = vadd.f32 %v5397_v45, %v8063_v51  ;;  %v6178_v58 = vadd.f32 -1.0, %v7532_v40  ;;  %v5398_v50 = vsel %vm5358_vm11, %v9291_v24, %v6176_v57  ;;  %vm5430_vm3 = vcmp.gt.f32.partialorder %v9314_v10, 0.0 }
 0x869   :  { %v7536_v52 = vpop.eup %7535  ;;  %v5399_v4 = vsel %vm5359_vm13, %v9293_v6, %v6177_v38  ;;  %v6179_v62 = vadd.f32 -1.0, %v7534_v60  ;;  %v9366_v7 = vadd.f32 %v5398_v50, %v8069_v61  ;;  %v5579_v24 = vrot.slane %v9353_v59, 2 }
 0x86a   :  { %v6180_v30 = vadd.f32 -1.0, %v7536_v52  ;;  %v5400_v51 = vsel %vm5360_vm14, %v9295_v2, %v6178_v58  ;;  %v9372_v31 = vadd.f32 %v5399_v4, %v8075_v14  ;;  %v5580_v61 = vrot.slane %v9356_v16, 1  ;;  %v7538_v13 = vpop.eup %7537 }
 0x86b   :  { %v5401_v6 = vsel %vm5361_vm5, %v9297_v18, %v6179_v62  ;;  %v9379_v37 = vadd.f32 %v5400_v51, %v8081_v8  ;;  %v5545_v42 = vrot.slane %v9353_v59, 1  ;;  %vm5432_vm11 = vcmp.gt.f32.partialorder %v9318_v54, 0.0  ;;  %v7540_v28 = vpop.eup %7539 }
 0x86c   :  { %v5402_v14 = vsel %vm5362_vm8, %v9299_v12, %v6180_v30  ;;  %v9389_v2 = vadd.f32 %v5401_v6, %v8087_v29  ;;  %v5583_v18 = vrot.slane %v9372_v31, 7  ;;  %v5547_v8 = vrot.slane %v9366_v7, 7  ;;  %v7542_v29 = vpop.eup %7541 }
 0x86d   :  { %v6182_v41 = vadd.f32 -1.0, %v7538_v13  ;;  %vm5363_vm13 = vcmp.gt.f32.partialorder %v9301_v34, 0.0  ;;  %v9395_v5 = vadd.f32 %v5402_v14, %v8093_v25  ;;  %v5581_v49 = vsel %vm5509_vm12, %v5580_v61, %v5579_v24  ;;  %v7544_v25 = vpop.eup %7543 }
 0x86e   :  { %v5585_v22 = vrot.slane %v9379_v37, 6  ;;  %vm5433_vm14 = vcmp.gt.f32.partialorder %v9320_v15, 0.0  ;;  %vm5434_vm5 = vcmp.gt.f32.partialorder %v9322_v3, 0.0  ;;  %v6183_v12 = vadd.f32 -1.0, %v7540_v28  ;;  %v7546_v44 = vpop.eup %7545 }
 0x86f   :  { %v5582_v32 = vsel %vm5512_vm15, %v9366_v7, %v5581_v49  ;;  %v5587_v33 = vrot.slane %v9389_v2, 5  ;;  %v5546_v56 = vsel %vm5509_vm12, %v9356_v16, %v5545_v42  ;;  %v6184_v11 = vadd.f32 -1.0, %v7542_v29  ;;  %v7548_v39 = vpop.eup %7547 }
 0x870   :  { %v5468_v0 = vsel %vm5428_vm7, %v9310_v35, %v6182_v41  ;;  %v5584_v53 = vsel %vm5515_vm4, %v5583_v18, %v5582_v32  ;;  %v5589_v1 = vrot.slane %v9395_v5, 4  ;;  %v6185_v47 = vadd.f32 -1.0, %v7544_v25  ;;  %v7550_v38 = vpop.eup %7549  ;;  %v9730_v18 = vld [vmem:[#allocation9_spill] sm:$0xff] }
 0x871   :  { %v5469_v23 = vsel %vm5429_vm9, %v9312_v46, %v6183_v12  ;;  %v9415_v26 = vadd.f32 %v5468_v0, %v8107_v36  ;;  %vm5527_vm8 = vcmask 1047559   ;;  %v5586_v27 = vsel %vm5518_vm6, %v5585_v22, %v5584_v53  ;;  %v7552_v58 = vpop.eup %7551 }
 0x872   :  { %v6186_v48 = vadd.f32 -1.0, %v7546_v44  ;;  %v9419_v35 = vadd.f32 %v5469_v23, %v8119_v63  ;;  %v5588_v57 = vsel %vm5521_vm1, %v5587_v33, %v5586_v27  ;;  %v5548_v40 = vsel %vm5512_vm15, %v5547_v8, %v5546_v56 }
 0x873   :  { %v5471_v46 = vsel %vm5431_vm2, %v9316_v21, %v6185_v47  ;;  %v5590_v36 = vsel %vm5524_vm10, %v5589_v1, %v5588_v57  ;;  %v5549_v45 = vrot.slane %v9372_v31, 6  ;;  %v5551_v60 = vrot.slane %v9379_v37, 5 }
 0x874   :  { %v9430_v50 = vadd.f32 %v5471_v46, %v8134_v55  ;;  %v5553_v63 = vrot.slane %v9389_v2, 4  ;;  %v5555_v52 = vrot.slane %v9395_v5, 3  ;;  %7553 = vpow2.f32 %v9340_v17 }
 0x875   :  { %v6181_v4 = vadd.f32 -1.0, %v7552_v58  ;;  %v5550_v62 = vsel %vm5515_vm4, %v5549_v45, %v5548_v40  ;;  %v6187_v21 = vadd.f32 -1.0, %v7548_v39  ;;  %v6188_v30 = vadd.f32 -1.0, %v7550_v38 }
 0x876   :  { %v5552_v51 = vsel %vm5518_vm6, %v5551_v60, %v5550_v62  ;;  %v5470_v24 = vsel %vm5430_vm3, %v9314_v10, %v6184_v11  ;;  %v5472_v55 = vsel %vm5432_vm11, %v9318_v54, %v6186_v48  ;;  %v5593_v6 = vrot.slane %v9415_v26, 2  ;;  %v9732_v62 = vld [vmem:[#allocation11_spill] sm:$0xff] }
 0x877   :  { %v5403_v17 = vsel %vm5363_vm13, %v9301_v34, %v6181_v4  ;;  %v5554_v61 = vsel %vm5521_vm1, %v5553_v63, %v5552_v51  ;;  %v5473_v42 = vsel %vm5433_vm14, %v9320_v15, %v6187_v21  ;;  %v5474_v10 = vsel %vm5434_vm5, %v9322_v3, %v6188_v30  ;;  %v9731_v15 = vld [vmem:[#allocation10_spill] sm:$0xff] }
 0x878   :  { %v9455_v13 = vadd.f32 %v5403_v17, %v8102_v43  ;;  %v5556_v54 = vsel %vm5524_vm10, %v5555_v52, %v5554_v61  ;;  %v9459_v14 = vadd.f32 %v5470_v24, %v8128_v19  ;;  %v9462_v34 = vadd.f32 %v5472_v55, %v8143_v20 }
 0x879   :  { %vm5435_vm7 = vcmp.gt.f32.partialorder %v9324_v9, 0.0  ;;  %v9466_v8 = vadd.f32 %v5473_v42, %v9730_v18  ;;  %v9469_v28 = vadd.f32 %v5474_v10, %v9731_v15  ;;  %v5594_v3 = vrot.slane %v9419_v35, 1 }
 0x87a   :  { %v5591_v43 = vrot.slane %v9455_v13, 3  ;;  %v5557_v41 = vrot.slane %v9455_v13, 2  ;;  %v5597_v19 = vrot.slane %v9430_v50, 7  ;;  %v5559_v49 = vrot.slane %v9415_v26, 1 }
 0x87b   :  { %v5595_v20 = vsel %vm5509_vm12, %v5594_v3, %v5593_v6  ;;  %v5599_v22 = vrot.slane %v9462_v34, 6  ;;  %v5601_v29 = vrot.slane %v9466_v8, 5  ;;  %v5561_v12 = vrot.slane %v9459_v14, 7 }
 0x87c   :  { %v5592_v32 = vsel %vm5527_vm8, %v5591_v43, %v5590_v36  ;;  %v5558_v33 = vsel %vm5527_vm8, %v5557_v41, %v5556_v54  ;;  %v5596_v56 = vsel %vm5512_vm15, %v9459_v14, %v5595_v20  ;;  %v5560_v25 = vsel %vm5509_vm12, %v9419_v35, %v5559_v49 }
 0x87d   :  { %5607 = vrot.lane.b32.xlu1 %v5592_v32, %s7613_s4  ;;  %5573 = vrot.lane.b32.xlu0 %v5558_v33, %s7614_s28  ;;  %v5598_v11 = vsel %vm5515_vm4, %v5597_v19, %v5596_v56  ;;  %v5603_v0 = vrot.slane %v9469_v28, 4  ;;  %v5562_v53 = vsel %vm5512_vm15, %v5561_v12, %v5560_v25  ;;  %v5563_v1 = vrot.slane %v9430_v50, 6 }
 0x87e   :  { %v7554_v44 = vpop.eup %7553  ;;  %v5600_v47 = vsel %vm5518_vm6, %v5599_v22, %v5598_v11  ;;  %v5565_v23 = vrot.slane %v9462_v34, 5  ;;  %v5567_v27 = vrot.slane %v9466_v8, 4  ;;  %v5627_v39 = vrot.slane %v9415_v26, 3 }
 0x87f   :  { %v6189_v48 = vadd.f32 -1.0, %v7554_v44  ;;  %v5602_v57 = vsel %vm5521_vm1, %v5601_v29, %v5600_v47  ;;  %v5564_v40 = vsel %vm5515_vm4, %v5563_v1, %v5562_v53  ;;  %v5628_v38 = vrot.slane %v9419_v35, 2 }
 0x880   :  { %v5604_v46 = vsel %vm5524_vm10, %v5603_v0, %v5602_v57  ;;  %v5566_v36 = vsel %vm5518_vm6, %v5565_v23, %v5564_v40  ;;  %v5569_v45 = vrot.slane %v9469_v28, 3  ;;  %v5630_v60 = vrot.slane %v9459_v14, 1 }
 0x881   :  { %v5475_v58 = vsel %vm5435_vm7, %v9324_v9, %v6189_v48  ;;  %v5568_v63 = vsel %vm5521_vm1, %v5567_v27, %v5566_v36  ;;  %v5629_v52 = vsel %vm5509_vm12, %v5628_v38, %v5627_v39  ;;  %v5633_v4 = vrot.slane %v9462_v34, 7 }
 0x882   :  { %v9510_v21 = vadd.f32 %v5475_v58, %v9732_v62  ;;  %v5570_v30 = vsel %vm5524_vm10, %v5569_v45, %v5568_v63  ;;  %v5631_v51 = vsel %vm5512_vm15, %v5630_v60, %v5629_v52  ;;  %v5635_v24 = vrot.slane %v9466_v8, 6 }
 0x883   :  { %v5632_v55 = vsel %vm5515_vm4, %v9430_v50, %v5631_v51  ;;  %v5613_v9 = vrot.slane %v9353_v59, 3  ;;  %v5614_v6 = vrot.slane %v9356_v16, 2  ;;  %v5616_v17 = vrot.slane %v9366_v7, 1 }
 0x884   :  { %v5605_v61 = vrot.slane %v9510_v21, 3  ;;  %v5571_v42 = vrot.slane %v9510_v21, 2  ;;  %v5634_v10 = vsel %vm5518_vm6, %v5633_v4, %v5632_v55  ;;  %v5637_v54 = vrot.slane %v9469_v28, 5 }
 0x885   :  { %v5636_v18 = vsel %vm5521_vm1, %v5635_v24, %v5634_v10  ;;  %v5639_v15 = vrot.slane %v9510_v21, 4  ;;  %v5615_v3 = vsel %vm5509_vm12, %v5614_v6, %v5613_v9  ;;  %v5619_v43 = vrot.slane %v9379_v37, 7 }
 0x886   :  { %v5606_v41 = vsel %vm5527_vm8, %v5605_v61, %v5604_v46  ;;  %v5572_v19 = vsel %vm5527_vm8, %v5571_v42, %v5570_v30  ;;  %v5638_v49 = vsel %vm5524_vm10, %v5637_v54, %v5636_v18  ;;  %v5617_v20 = vsel %vm5512_vm15, %v5616_v17, %v5615_v3 }
 0x887   :  { %5609 = vrot.lane.b32.xlu1 %v5606_v41, %s7613_s4  ;;  %5575 = vrot.lane.b32.xlu0 %v5572_v19, %s7614_s28  ;;  %v5640_v22 = vsel %vm5527_vm8, %v5639_v15, %v5638_v49  ;;  %v5618_v29 = vsel %vm5515_vm4, %v9372_v31, %v5617_v20  ;;  %v5621_v12 = vrot.slane %v9389_v2, 6  ;;  %v5623_v32 = vrot.slane %v9395_v5, 5 }
 0x888   :  { %v5620_v33 = vsel %vm5518_vm6, %v5619_v43, %v5618_v29  ;;  %v5661_v56 = vrot.slane %v9415_v26, 4  ;;  %v5662_v25 = vrot.slane %v9419_v35, 3  ;;  %v5664_v11 = vrot.slane %v9459_v14, 2 }
 0x889   :  { %v5622_v0 = vsel %vm5521_vm1, %v5621_v12, %v5620_v33  ;;  %v5625_v53 = vrot.slane %v9455_v13, 4  ;;  %v5666_v1 = vrot.slane %v9430_v50, 1  ;;  %v5669_v44 = vrot.slane %v9466_v8, 7 }
 0x88a   :  { %v5624_v47 = vsel %vm5524_vm10, %v5623_v32, %v5622_v0  ;;  %v5663_v23 = vsel %vm5509_vm12, %v5662_v25, %v5661_v56  ;;  %v5671_v27 = vrot.slane %v9469_v28, 6  ;;  %v5647_v39 = vrot.slane %v9353_v59, 4 }
 0x88b   :  { %5643 = vrot.lane.b32.xlu1 %v5640_v22, %s7615_s29  ;;  %v5626_v48 = vsel %vm5527_vm8, %v5625_v53, %v5624_v47  ;;  %v5665_v57 = vsel %vm5512_vm15, %v5664_v11, %v5663_v23  ;;  %v5648_v40 = vrot.slane %v9356_v16, 3  ;;  %v5650_v38 = vrot.slane %v9366_v7, 2 }
 0x88c   :  { %5641 = vrot.lane.b32.xlu0 %v5626_v48, %s7615_s29  ;;  %v5667_v46 = vsel %vm5515_vm4, %v5666_v1, %v5665_v57  ;;  %v5673_v36 = vrot.slane %v9510_v21, 5  ;;  %v5652_v45 = vrot.slane %v9372_v31, 1  ;;  %v5655_v60 = vrot.slane %v9389_v2, 7 }
 0x88d   :  { %v5668_v58 = vsel %vm5518_vm6, %v9462_v34, %v5667_v46  ;;  %v5649_v63 = vsel %vm5509_vm12, %v5648_v40, %v5647_v39  ;;  %v5657_v52 = vrot.slane %v9395_v5, 6  ;;  %v5695_v4 = vrot.slane %v9415_v26, 5 }
 0x88e   :  { %v5670_v62 = vsel %vm5521_vm1, %v5669_v44, %v5668_v58  ;;  %v5651_v30 = vsel %vm5512_vm15, %v5650_v38, %v5649_v63  ;;  %v5696_v51 = vrot.slane %v9419_v35, 4  ;;  %v5698_v24 = vrot.slane %v9459_v14, 3 }
 0x88f   :  { %v5672_v55 = vsel %vm5524_vm10, %v5671_v27, %v5670_v62  ;;  %v5653_v9 = vsel %vm5515_vm4, %v5652_v45, %v5651_v30  ;;  %v5659_v6 = vrot.slane %v9455_v13, 5  ;;  %v5700_v17 = vrot.slane %v9430_v50, 2 }
 0x890   :  { %v5674_v61 = vsel %vm5527_vm8, %v5673_v36, %v5672_v55  ;;  %v5654_v42 = vsel %vm5518_vm6, %v9379_v37, %v5653_v9  ;;  %v5697_v10 = vsel %vm5509_vm12, %v5696_v51, %v5695_v4  ;;  %v5702_v54 = vrot.slane %v9462_v34, 1 }
 0x891   :  { %5677 = vrot.lane.b32.xlu1 %v5674_v61, %s7616_s30  ;;  %v5656_v18 = vsel %vm5521_vm1, %v5655_v60, %v5654_v42  ;;  %v5699_v15 = vsel %vm5512_vm15, %v5698_v24, %v5697_v10  ;;  %v5705_v3 = vrot.slane %v9469_v28, 7  ;;  %v5681_v43 = vrot.slane %v9353_v59, 5 }
 0x892   :  { %v5658_v41 = vsel %vm5524_vm10, %v5657_v52, %v5656_v18  ;;  %v5701_v19 = vsel %vm5515_vm4, %v5700_v17, %v5699_v15  ;;  %v5682_v49 = vrot.slane %v9356_v16, 4  ;;  %v5684_v20 = vrot.slane %v9366_v7, 3 }
 0x893   :  { %v5660_v22 = vsel %vm5527_vm8, %v5659_v6, %v5658_v41  ;;  %v5703_v29 = vsel %vm5518_vm6, %v5702_v54, %v5701_v19  ;;  %v5707_v12 = vrot.slane %v9510_v21, 6  ;;  %v5686_v32 = vrot.slane %v9372_v31, 2 }
 0x894   :  { %5675 = vrot.lane.b32.xlu0 %v5660_v22, %s7616_s30  ;;  %v5704_v33 = vsel %vm5521_vm1, %v9466_v8, %v5703_v29  ;;  %v5683_v56 = vsel %vm5509_vm12, %v5682_v49, %v5681_v43  ;;  %v5688_v25 = vrot.slane %v9379_v37, 1  ;;  %v5691_v11 = vrot.slane %v9395_v5, 7 }
 0x895   :  { %v5706_v0 = vsel %vm5524_vm10, %v5705_v3, %v5704_v33  ;;  %v5685_v53 = vsel %vm5512_vm15, %v5684_v20, %v5683_v56  ;;  %v5729_v1 = vrot.slane %v9415_v26, 6  ;;  %v5730_v44 = vrot.slane %v9419_v35, 5 }
 0x896   :  { %v5708_v47 = vsel %vm5527_vm8, %v5707_v12, %v5706_v0  ;;  %v5687_v23 = vsel %vm5515_vm4, %v5686_v32, %v5685_v53  ;;  %v5693_v27 = vrot.slane %v9455_v13, 6  ;;  %v5732_v39 = vrot.slane %v9459_v14, 4 }
 0x897   :  { %5711 = vrot.lane.b32.xlu1 %v5708_v47, %s7617_s9  ;;  %v5689_v48 = vsel %vm5518_vm6, %v5688_v25, %v5687_v23  ;;  %v5731_v57 = vsel %vm5509_vm12, %v5730_v44, %v5729_v1  ;;  %v5734_v40 = vrot.slane %v9430_v50, 3  ;;  %v5736_v38 = vrot.slane %v9462_v34, 2 }
 0x898   :  { %v5690_v46 = vsel %vm5521_vm1, %v9389_v2, %v5689_v48  ;;  %v5733_v36 = vsel %vm5512_vm15, %v5732_v39, %v5731_v57  ;;  %v5738_v45 = vrot.slane %v9466_v8, 1  ;;  %v5715_v60 = vrot.slane %v9353_v59, 6 }
 0x899   :  { %v5692_v58 = vsel %vm5524_vm10, %v5691_v11, %v5690_v46  ;;  %v5735_v63 = vsel %vm5515_vm4, %v5734_v40, %v5733_v36  ;;  %v5716_v52 = vrot.slane %v9356_v16, 5  ;;  %v5718_v4 = vrot.slane %v9366_v7, 4 }
 0x89a   :  { %v5694_v62 = vsel %vm5527_vm8, %v5693_v27, %v5692_v58  ;;  %v5737_v30 = vsel %vm5518_vm6, %v5736_v38, %v5735_v63  ;;  %v5741_v51 = vrot.slane %v9510_v21, 7  ;;  %v5720_v24 = vrot.slane %v9372_v31, 3 }
 0x89b   :  { %5709 = vrot.lane.b32.xlu0 %v5694_v62, %s7617_s9  ;;  %v5739_v55 = vsel %vm5521_vm1, %v5738_v45, %v5737_v30  ;;  %v5717_v9 = vsel %vm5509_vm12, %v5716_v52, %v5715_v60  ;;  %v5722_v6 = vrot.slane %v9379_v37, 2  ;;  %v5724_v17 = vrot.slane %v9389_v2, 1 }
 0x89c   :  { %v5740_v61 = vsel %vm5524_vm10, %v9469_v28, %v5739_v55  ;;  %v5719_v42 = vsel %vm5512_vm15, %v5718_v4, %v5717_v9  ;;  %v5763_v10 = vrot.slane %v9415_v26, 7  ;;  %v5764_v54 = vrot.slane %v9419_v35, 6 }
 0x89d   :  { %v5742_v18 = vsel %vm5527_vm8, %v5741_v51, %v5740_v61  ;;  %v5721_v15 = vsel %vm5515_vm4, %v5720_v24, %v5719_v42  ;;  %v5727_v3 = vrot.slane %v9455_v13, 7  ;;  %v5766_v43 = vrot.slane %v9459_v14, 5 }
 0x89e   :  { %5745 = vrot.lane.b32.xlu1 %v5742_v18, %s7618_s10  ;;  %v5723_v41 = vsel %vm5518_vm6, %v5722_v6, %v5721_v15  ;;  %v5765_v19 = vsel %vm5509_vm12, %v5764_v54, %v5763_v10  ;;  %v5768_v49 = vrot.slane %v9430_v50, 4  ;;  %v5770_v20 = vrot.slane %v9462_v34, 3 }
 0x89f   :  { %v5725_v22 = vsel %vm5521_vm1, %v5724_v17, %v5723_v41  ;;  %v5767_v29 = vsel %vm5512_vm15, %v5766_v43, %v5765_v19  ;;  %v5772_v12 = vrot.slane %v9466_v8, 2  ;;  %v5749_v32 = vrot.slane %v9353_v59, 7 }
 0x8a0   :  { %v5726_v33 = vsel %vm5524_vm10, %v9395_v5, %v5725_v22  ;;  %v5769_v56 = vsel %vm5515_vm4, %v5768_v49, %v5767_v29  ;;  %v5750_v25 = vrot.slane %v9356_v16, 6  ;;  %v5752_v11 = vrot.slane %v9366_v7, 5 }
 0x8a1   :  { %v5728_v0 = vsel %vm5527_vm8, %v5727_v3, %v5726_v33  ;;  %v5771_v53 = vsel %vm5518_vm6, %v5770_v20, %v5769_v56  ;;  %v5774_v1 = vrot.slane %v9469_v28, 1  ;;  %v5754_v23 = vrot.slane %v9372_v31, 4 }
 0x8a2   :  { %5743 = vrot.lane.b32.xlu0 %v5728_v0, %s7618_s10  ;;  %v5773_v44 = vsel %vm5521_vm1, %v5772_v12, %v5771_v53  ;;  %v5751_v47 = vsel %vm5509_vm12, %v5750_v25, %v5749_v32  ;;  %v5756_v27 = vrot.slane %v9379_v37, 3  ;;  %v5508_v57 = vrot.slane %v9356_v16, 7 }
 0x8a3   :  { %v5775_v39 = vsel %vm5524_vm10, %v5774_v1, %v5773_v44  ;;  %v5753_v48 = vsel %vm5512_vm15, %v5752_v11, %v5751_v47  ;;  %v5511_v40 = vrot.slane %v9366_v7, 6  ;;  %v5758_v36 = vrot.slane %v9389_v2, 2 }
 0x8a4   :  { %v5776_v38 = vsel %vm5527_vm8, %v9510_v21, %v5775_v39  ;;  %v5755_v46 = vsel %vm5515_vm4, %v5754_v23, %v5753_v48  ;;  %v5760_v60 = vrot.slane %v9395_v5, 1  ;;  %v5514_v58 = vrot.slane %v9372_v31, 5 }
 0x8a5   :  { %5779 = vrot.lane.b32.xlu1 %v5776_v38, %s7619_s11  ;;  %v5757_v45 = vsel %vm5518_vm6, %v5756_v27, %v5755_v46  ;;  %v5510_v16 = vsel %vm5509_vm12, %v5508_v57, %v9353_v59  ;;  %v5529_v7 = vrot.slane %v9419_v35, 7  ;;  %v5531_v52 = vrot.slane %v9459_v14, 6 }
 0x8a6   :  { %v5759_v63 = vsel %vm5521_vm1, %v5758_v36, %v5757_v45  ;;  %v5517_v62 = vrot.slane %v9379_v37, 4  ;;  %v5520_v30 = vrot.slane %v9389_v2, 3  ;;  %v5513_v51 = vsel %vm5512_vm15, %v5511_v40, %v5510_v16 }
 0x8a7   :  { %v5761_v4 = vsel %vm5524_vm10, %v5760_v60, %v5759_v63  ;;  %v5516_v24 = vsel %vm5515_vm4, %v5514_v58, %v5513_v51  ;;  %v5530_v59 = vsel %vm5509_vm12, %v5529_v7, %v9415_v26  ;;  %v5533_v35 = vrot.slane %v9430_v50, 5 }
 0x8a8   :  { %v5762_v31 = vsel %vm5527_vm8, %v9455_v13, %v5761_v4  ;;  %v5523_v14 = vrot.slane %v9395_v5, 2  ;;  %v5519_v55 = vsel %vm5518_vm6, %v5517_v62, %v5516_v24  ;;  %v5532_v37 = vsel %vm5512_vm15, %v5531_v52, %v5530_v59 }
 0x8a9   :  { %5777 = vrot.lane.b32.xlu0 %v5762_v31, %s7619_s11  ;;  %v5535_v2 = vrot.slane %v9462_v34, 4  ;;  %v5526_v9 = vrot.slane %v9455_v13, 1  ;;  %v5522_v6 = vsel %vm5521_vm1, %v5520_v30, %v5519_v55  ;;  %v5534_v17 = vsel %vm5515_vm4, %v5533_v35, %v5532_v37 }
 0x8aa   :  { %v5537_v61 = vrot.slane %v9466_v8, 3  ;;  %v5525_v26 = vsel %vm5524_vm10, %v5523_v14, %v5522_v6  ;;  %v5539_v5 = vrot.slane %v9469_v28, 2  ;;  %v5541_v34 = vrot.slane %v9510_v21, 1 }
 0x8ab   :  { %v5536_v50 = vsel %vm5518_vm6, %v5535_v2, %v5534_v17  ;;  %v5528_v42 = vsel %vm5527_vm8, %v5526_v9, %v5525_v26  ;;  %vm5788_vm12 = vcmask 392192   ;;  %vm5785_vm15 = vcmask 261120  }
 0x8ac   :  { %v5538_v10 = vsel %vm5521_vm1, %v5537_v61, %v5536_v50  ;;  %vm5791_vm4 = vcmask 523264   ;;  %vm5794_vm6 = vcmask 654336   ;;  %vm5797_vm1 = vcmask 785408  }
 0x8ad   :  { %v5540_v13 = vsel %vm5524_vm10, %v5539_v5, %v5538_v10  ;;  %vm5800_vm9 = vcmask 916480  }
 0x8ae   :  { %v5542_v54 = vsel %vm5527_vm8, %v5541_v34, %v5540_v13 }
 0x8ef   :  { %v5608_v18 = vpop.permute.xlu1 %5607  ;;  %v5574_v15 = vpop.permute.xlu0 %5573 }
 0x8f0   :  { %v5783_v12 = vsel %vm58_vm0, %v5528_v42, %v5574_v15 }
 0x8f1   :  { %v5786_v11 = vsel %vm5785_vm15, %v5783_v12, %v5608_v18 }
 0x8f9   :  { %v5610_v3 = vpop.permute.xlu1 %5609  ;;  %v5576_v8 = vpop.permute.xlu0 %5575 }
 0x8fa   :  { %v5784_v22 = vsel %vm58_vm0, %v5542_v54, %v5576_v8 }
 0x8fb   :  { %v5787_v21 = vsel %vm5785_vm15, %v5784_v22, %v5610_v3 }
 0x8fd   :  { %v5644_v43 = vpop.permute.xlu1 %5643 }
 0x8fe   :  { %v5642_v41 = vpop.permute.xlu0 %5641  ;;  %v5790_v32 = vsel %vm5788_vm12, %v5787_v21, %v5644_v43 }
 0x8ff   :  { %v5789_v1 = vsel %vm5788_vm12, %v5786_v11, %v5642_v41 }
 0x903   :  { %v5678_v19 = vpop.permute.xlu1 %5677 }
 0x904   :  { %v5793_v33 = vsel %vm5791_vm4, %v5790_v32, %v5678_v19 }
 0x906   :  { %v5676_v49 = vpop.permute.xlu0 %5675 }
 0x907   :  { %v5792_v47 = vsel %vm5791_vm4, %v5789_v1, %v5676_v49 }
 0x909   :  { %v5712_v20 = vpop.permute.xlu1 %5711 }
 0x90a   :  { %v5796_v25 = vsel %vm5794_vm6, %v5793_v33, %v5712_v20 }
 0x90d   :  { %v5710_v28 = vpop.permute.xlu0 %5709 }
 0x90e   :  { %v5795_v27 = vsel %vm5794_vm6, %v5792_v47, %v5710_v28 }
 0x910   :  { %v5746_v29 = vpop.permute.xlu1 %5745 }
 0x911   :  { %v5799_v0 = vsel %vm5797_vm1, %v5796_v25, %v5746_v29 }
 0x914   :  { %v5744_v56 = vpop.permute.xlu0 %5743 }
 0x915   :  { %v5798_v39 = vsel %vm5797_vm1, %v5795_v27, %v5744_v56 }
 0x917   :  { %v5780_v53 = vpop.permute.xlu1 %5779 }
 0x918   :  { %v5802_v44 = vsel %vm5800_vm9, %v5799_v0, %v5780_v53 }
 0x919   :  { %v5806_v23 = vmin.f32 %v5802_v44, 0.0  ;;  %vm5804_vm0 = vcmp.gt.f32.partialorder %v5802_v44, 0.0 }
 0x91b   :  { %v5809_v48 = vmul.f32 1.442695, %v5806_v23  ;;  %v5778_v57 = vpop.permute.xlu0 %5777 }
 0x91c   :  { %v5801_v40 = vsel %vm5800_vm9, %v5798_v39, %v5778_v57 }
 0x91d   :  { %7555 = vpow2.f32 %v5809_v48  ;;  %v5805_v38 = vmin.f32 %v5801_v40, 0.0  ;;  %vm5803_vm10 = vcmp.gt.f32.partialorder %v5801_v40, 0.0 }
 0x91f   :  { %v5807_v46 = vmul.f32 1.442695, %v5805_v38 }
 0x921   :  { %7557 = vpow2.f32 %v5807_v46 }
 0x927   :  { %v7556_v36 = vpop.eup %7555 }
 0x928   :  { %v6191_v45 = vadd.f32 -1.0, %v7556_v36 }
 0x92a   :  { %v5814_v60 = vsel %vm5804_vm0, %v5802_v44, %v6191_v45 }
 0x92b   :  { %v7558_v58 = vpop.eup %7557  ;;  %5816 = vst [vmem:[#allocation6 + $0x8] sm:$0xff] %v5814_v60 }
 0x92c   :  { %v6190_v63 = vadd.f32 -1.0, %v7558_v58 }
 0x92e   :  { %v5813_v16 = vsel %vm5803_vm10, %v5801_v40, %v6190_v63 }
 0x92f   :  { %5815 = vst [vmem:[#allocation6] sm:$0xff] %v5813_v16 }
 0x930   :  { %7592 = shalt.err (!%p7589_p12)
}
 0x931   :  { %s7593_s3 = scalar_lea.hbm %s9719_s6, 256 }
 0x932   :  { %p7594_p13 = scmp.ne.s32.totalorder %s9719_s6, %s7593_s3  ;;  %p7597_p0 = scmp.lt.u32.totalorder %s7593_s3, %s9719_s6 }
 0x934   :  { %p7599_p1 = pnand %p7597_p0, %p7594_p13 }
 0x936   :  { %7602 = shalt.err (!%p7599_p1)
}
 0x937   :  { %5828 = dma.vmem_to_hbm [thread:$0]  %s5823_s13, 256, %s9719_s6, [#allocation5], %s7608_s7, %s7608_s7, %s7609_s8  }
 0x938   :  { %7605 = dma.done.wait [#allocation5], 256  }
 0x939   :  { %7606 = vsyncadd [#allocation5], 4294967040 }
 0x93a   :  { %5832 = vsyncpa [#allocation4], 1 }
 0x93b   :  { %5833 = vsyncpa [#allocation5], 1 }

</bundles_post_ra>
